<compile_context>
chip_gen: v6e
topology: v6e:2x2x1
jax: 0.10.0
libtpu: 0.0.40
codegen_flags: <defaults>
</compile_context>

<pallas_src>
import functools

import jax
import jax.numpy as jnp
from jax.experimental import pallas as pl
from jax.experimental.pallas import tpu as pltpu


# ----------------------------------------------------------------------------
# Kernel
# ----------------------------------------------------------------------------
def _gru_autoencoder_kernel(
    x_ref,            # [NK, Ep]  task inputs (zero-padded to Ep lanes)
    w_ih_enc_ref,     # [Ep, 3D]  encoder GRU weight_ih^T (gate order r,z,n), pad rows = 0
    b_ih_enc_ref,     # [1, 3D]
    w_hh_enc_ref,     # [D, 3D]   encoder GRU weight_hh^T
    b_hh_enc_ref,     # [1, 3D]
    w_dec_ref,        # [D, 6D]   fused decoder weights: [w_fc @ w_ih_dec | w_hh_dec]
    b_dec_ref,        # [1, 6D]   fused decoder biases:  [b_fc @ w_ih_dec + b_ih_dec | b_hh_dec]
    b_ih_dec_ref,     # [1, 3D]   raw decoder bias_ih (needed for step 0, zero input)
    w_fc_ref,         # [D, Ep]   fc.weight^T, pad cols = 0
    b_fc_ref,         # [1, Ep]   fc.bias, pad lanes = 0
    task_emb_ref,     # out [NK, D]   encoder hidden states (== task_emb.view(NK,-1))
    dec_out_ref,      # out [NK, Ep]  decoder reconstruction (rows already reversed)
    task_vec_ref,     # out [1, D]    mean over sequence of task_emb
    loss_ref,         # out [1, 1]    MSE reconstruction loss (over true NK*E elements)
    hdec_scr,         # scratch [NK, D]  decoder hidden states, stored reversed
    *,
    nk: int,
    d: int,
    e_true: int,
):
    f32 = jnp.float32
    d3 = 3 * d
    x = x_ref[...]                                                    # already f32

    # ---------------- encoder ----------------
    # Input-gate projections for ALL timesteps in one batched MXU call.
    gates = (jnp.dot(x, w_ih_enc_ref[...], preferred_element_type=f32)
             + b_ih_enc_ref[...])                                     # [NK, 3D]
    b_hh_enc = b_hh_enc_ref[...]                                      # hoisted bias

    def gru_cell(gi, gh, h_prev):
        # PyTorch GRU equations, gate order [r, z, n]:
        #   r = sig(gi_r + gh_r); z = sig(gi_z + gh_z)
        #   n = tanh(gi_n + r * gh_n); h = (1-z)*n + z*h_prev
        r = jax.nn.sigmoid(gi[:, 0:d] + gh[:, 0:d])
        z = jax.nn.sigmoid(gi[:, d:2 * d] + gh[:, d:2 * d])
        n = jnp.tanh(gi[:, 2 * d:3 * d] + r * gh[:, 2 * d:3 * d])
        return (1.0 - z) * n + z * h_prev

    h = jnp.zeros((1, d), f32)
    h_sum = jnp.zeros((1, d), f32)
    for t in range(nk):                                   # fully unrolled, static slices
        gh = (jnp.dot(h, w_hh_enc_ref[...], preferred_element_type=f32)
              + b_hh_enc)                                             # [1, 3D]
        h = gru_cell(gates[t:t + 1, :], gh, h)
        task_emb_ref[pl.ds(t, 1), :] = h
        h_sum = h_sum + h

    task_vec_ref[...] = h_sum * (1.0 / nk)

    # ---------------- decoder ----------------
    # Per step (t >= 1):  [gi | gh] = h_{t-1} @ W_dec + b_dec   (single MXU push,
    # the in-loop fc matmul is algebraically folded into W_dec).
    # Step 0 uses the zero input: gi = b_ih_dec, gh = h_enc @ w_hh_dec + b_hh_dec.
    b_dec = b_dec_ref[...]                                            # hoisted [1, 6D]
    for t in range(nk):                                   # fully unrolled
        if t == 0:
            gi = b_ih_dec_ref[...]
            gh = (jnp.dot(h, w_dec_ref[:, d3:], preferred_element_type=f32)
                  + b_dec[:, d3:])
        else:
            g = jnp.dot(h, w_dec_ref[...], preferred_element_type=f32) + b_dec
            gi, gh = g[:, :d3], g[:, d3:]
        h = gru_cell(gi, gh, h)
        # PyTorch reverses dec_outputs before stacking -> store h_t at NK-1-t so the
        # batched fc below directly produces the reversed reconstruction.
        hdec_scr[pl.ds(nk - 1 - t, 1), :] = h

    # Batched fc over all decoder hiddens (one [NK,D]@[D,Ep] MXU call).
    h_dec = hdec_scr[...]                                             # [NK, D]
    dec_out = (jnp.dot(h_dec, w_fc_ref[...], preferred_element_type=f32)
               + b_fc_ref[...])                                       # [NK, Ep]
    dec_out_ref[...] = dec_out

    # MSE over the true (unpadded) features: pad lanes of x and dec_out are both 0,
    # so they contribute nothing to the sum; divide by the true NK*E.
    diff = x - dec_out
    loss_ref[...] = (jnp.sum(diff * diff, axis=(0, 1), keepdims=True)
                     * (1.0 / float(nk * e_true)))


# ----------------------------------------------------------------------------
# Wrapper
# ----------------------------------------------------------------------------
def lstm_autoencoder_forward(x, params):
    """Returns (task_emb_vec [1,D], task_emb [NK,D], loss_rec scalar)."""
    nk, e = x.shape
    d = params["w_hh_enc"].shape[0]
    e_pad = ((e + 127) // 128) * 128                      # lane-dense feature dim

    # Zero-pad the feature dimension (numerically a no-op for every matmul).
    x_p = jnp.pad(x, ((0, 0), (0, e_pad - e)))
    w_ih_enc_p = jnp.pad(params["w_ih_enc"], ((0, e_pad - e), (0, 0)))
    w_fc_p = jnp.pad(params["w_fc"], ((0, 0), (0, e_pad - e)))
    b_fc_p = jnp.pad(params["b_fc"], ((0, 0), (0, e_pad - e)))

    # Fuse the decoder's fc -> GRUCell input projection into one matmul.
    w_dec = jnp.concatenate(
        [params["w_fc"] @ params["w_ih_dec"], params["w_hh_dec"]], axis=1)      # [D, 6D]
    b_dec = jnp.concatenate(
        [params["b_fc"] @ params["w_ih_dec"] + params["b_ih_dec"],
         params["b_hh_dec"]], axis=1)                                           # [1, 6D]

    kernel = functools.partial(_gru_autoencoder_kernel, nk=nk, d=d, e_true=e)
    vmem = pl.BlockSpec(memory_space=pltpu.MemorySpace.VMEM)

    args = (
        x_p, w_ih_enc_p, params["b_ih_enc"], params["w_hh_enc"], params["b_hh_enc"],
        w_dec, b_dec, params["b_ih_dec"], w_fc_p, b_fc_p,
    )
    out_shapes = (
        jax.ShapeDtypeStruct((nk, d), jnp.float32),       # task_emb
        jax.ShapeDtypeStruct((nk, e_pad), jnp.float32),   # dec_outputs (padded, debug)
        jax.ShapeDtypeStruct((1, d), jnp.float32),        # task_emb_vec
        jax.ShapeDtypeStruct((1, 1), jnp.float32),        # loss_rec
    )

    flops = 2 * nk * (e_pad * 3 * d + d * 3 * d + 6 * d * d + d * e_pad)
    transcendentals = 2 * nk * 3 * d
    bytes_accessed = 4 * (sum(int(a.size) for a in args)
                          + nk * d + nk * e_pad + d + 1)

    task_emb, _dec_out, task_vec, loss = pl.pallas_call(
        kernel,
        out_shape=out_shapes,
        in_specs=[vmem] * len(args),
        out_specs=(vmem, vmem, vmem, vmem),
        scratch_shapes=[pltpu.VMEM((nk, d), jnp.float32)],
        cost_estimate=pl.CostEstimate(
            flops=flops, transcendentals=transcendentals,
            bytes_accessed=bytes_accessed),
    )(*args)
    return task_vec, task_emb, loss[0, 0]


# ----------------------------------------------------------------------------
# Deterministic parameter init (mirrors the PyTorch weight_init shapes/spirit)
# ----------------------------------------------------------------------------
def init_params(key, e, d):
    ks = jax.random.split(key, 5)

    def xavier_uniform(k, shape):  # shape given in torch (out, in) convention
        fan_out, fan_in = shape
        bound = (6.0 / (fan_in + fan_out)) ** 0.5
        return jax.random.uniform(k, shape, jnp.float32, -bound, bound)

    # Encoder GRU (nn.GRU)
    w_ih_enc = xavier_uniform(ks[0], (3 * d, e))
    w_hh_enc = xavier_uniform(ks[1], (3 * d, d))
    # Decoder GRUCell
    w_ih_dec = xavier_uniform(ks[2], (3 * d, e))
    w_hh_dec = xavier_uniform(ks[3], (3 * d, d))

    b_ih = jnp.zeros((3 * d,), jnp.float32)
    b_hh = jnp.ones((3 * d,), jnp.float32).at[2 * d:].set(0.0)  # last third zeroed

    # fc: truncated_normal_(std=1.0), bias 0.1
    w_fc = jax.random.truncated_normal(ks[4], -2.0, 2.0, (e, d), jnp.float32)
    b_fc = jnp.full((e,), 0.1, jnp.float32)

    return {
        "w_ih_enc": w_ih_enc.T, "w_hh_enc": w_hh_enc.T,
        "b_ih_enc": b_ih[None, :], "b_hh_enc": b_hh[None, :],
        "w_ih_dec": w_ih_dec.T, "w_hh_dec": w_hh_dec.T,
        "b_ih_dec": b_ih[None, :], "b_hh_dec": b_hh[None, :],
        "w_fc": w_fc.T, "b_fc": b_fc[None, :],
    }


# ----------------------------------------------------------------------------
# Pure-JAX reference (unfused, unpadded) for correctness checking
# ----------------------------------------------------------------------------
def reference_forward(x, params):
    nk, e = x.shape
    d = params["w_hh_enc"].shape[0]

    def cell(x_t, h, w_ih, w_hh, b_ih, b_hh):
        gi = x_t @ w_ih + b_ih
        gh = h @ w_hh + b_hh
        r = jax.nn.sigmoid(gi[:, :d] + gh[:, :d])
        z = jax.nn.sigmoid(gi[:, d:2 * d] + gh[:, d:2 * d])
        n = jnp.tanh(gi[:, 2 * d:] + r * gh[:, 2 * d:])
        return (1.0 - z) * n + z * h

    h = jnp.zeros((1, d), jnp.float32)
    task_emb = []
    for t in range(nk):
        h = cell(x[t:t + 1], h, params["w_ih_enc"], params["w_hh_enc"],
                 params["b_ih_enc"], params["b_hh_enc"])
        task_emb.append(h)
    task_emb = jnp.concatenate(task_emb, axis=0)

    inp = jnp.zeros((1, e), jnp.float32)
    dec = []
    for t in range(nk):
        h = cell(inp, h, params["w_ih_dec"], params["w_hh_dec"],
                 params["b_ih_dec"], params["b_hh_dec"])
        inp = h @ params["w_fc"] + params["b_fc"]
        dec.append(inp)
    dec = jnp.concatenate(dec[::-1], axis=0)

    loss = jnp.mean((x - dec) ** 2)
    task_vec = jnp.mean(task_emb, axis=0, keepdims=True)
    return task_vec, task_emb, loss


# ----------------------------------------------------------------------------
if __name__ == "__main__":
    # Small shapes consistent with the module: N-way = 5 -> elem_num E = 64+5 = 69,
    # task_emb_dim D = 128 ("typically 128"), NK = 8 support images.
    NK, N_WAY, D = 8, 5, 128
    E = 64 + N_WAY

    key = jax.random.PRNGKey(0)
    k_x, k_p = jax.random.split(key)
    x = jax.random.normal(k_x, (NK, E), jnp.float32)
    params = init_params(k_p, E, D)

    fwd = jax.jit(lstm_autoencoder_forward)
    task_vec, task_emb, loss = fwd(x, params)
    jax.block_until_ready((task_vec, task_emb, loss))

    # sanity check against pure-JAX reference
    ref_vec, ref_emb, ref_loss = reference_forward(x, params)
    assert task_vec.shape == (1, D) and task_emb.shape == (NK, D)
    assert jnp.allclose(task_vec, ref_vec, atol=1e-2, rtol=1e-2)
    assert jnp.allclose(task_emb, ref_emb, atol=1e-2, rtol=1e-2)
    assert jnp.allclose(loss, ref_loss, atol=1e-2, rtol=1e-2)

    print("KERNEL_OK")
</pallas_src>

<mosaic_0001>
module attributes {stable_mosaic.version = 11 : i64} {
  func.func @_gru_autoencoder_kernel(%arg0: memref<8x128xf32, #tpu.memory_space<vmem>>, %arg1: memref<128x384xf32, #tpu.memory_space<vmem>>, %arg2: memref<1x384xf32, #tpu.memory_space<vmem>>, %arg3: memref<128x384xf32, #tpu.memory_space<vmem>>, %arg4: memref<1x384xf32, #tpu.memory_space<vmem>>, %arg5: memref<128x768xf32, #tpu.memory_space<vmem>>, %arg6: memref<1x768xf32, #tpu.memory_space<vmem>>, %arg7: memref<1x384xf32, #tpu.memory_space<vmem>>, %arg8: memref<128x128xf32, #tpu.memory_space<vmem>>, %arg9: memref<1x128xf32, #tpu.memory_space<vmem>>, %arg10: memref<8x128xf32, #tpu.memory_space<vmem>>, %arg11: memref<8x128xf32, #tpu.memory_space<vmem>>, %arg12: memref<1x128xf32, #tpu.memory_space<vmem>>, %arg13: memref<1x1xf32, #tpu.memory_space<vmem>>, %arg14: memref<8x128xf32, #tpu.memory_space<vmem>>) attributes {dimension_semantics = [], scalar_prefetch = 0 : i64, scratch_operands = 1 : i64, tpu.core_type = #tpu.core_type<tc>} {
    %c0 = arith.constant 0 : index
    %c0_0 = arith.constant 0 : index
    %0 = vector.load %arg0[%c0, %c0_0] : memref<8x128xf32, #tpu.memory_space<vmem>>, vector<8x128xf32>
    %c0_1 = arith.constant 0 : index
    %c0_2 = arith.constant 0 : index
    %1 = vector.load %arg1[%c0_1, %c0_2] : memref<128x384xf32, #tpu.memory_space<vmem>>, vector<128x384xf32>
    %cst = arith.constant dense<0.000000e+00> : vector<8x384xf32>
    %2 = tpu.matmul %0, %1, %cst {dimension_numbers = #tpu.dot_dimension_numbers<[1], [0], [0], [1], [0, 0, 1, 1], [], []>} : vector<8x128xf32>, vector<128x384xf32>, vector<8x384xf32> -> vector<8x384xf32>
    %c0_3 = arith.constant 0 : index
    %c0_4 = arith.constant 0 : index
    %3 = vector.load %arg2[%c0_3, %c0_4] : memref<1x384xf32, #tpu.memory_space<vmem>>, vector<1x384xf32>
    %4 = vector.broadcast %3 : vector<1x384xf32> to vector<8x384xf32>
    %5 = arith.addf %2, %4 : vector<8x384xf32>
    %c0_5 = arith.constant 0 : index
    %c0_6 = arith.constant 0 : index
    %6 = vector.load %arg4[%c0_5, %c0_6] : memref<1x384xf32, #tpu.memory_space<vmem>>, vector<1x384xf32>
    %cst_7 = arith.constant 0.000000e+00 : f32
    %7 = vector.broadcast %cst_7 : f32 to vector<1x128xf32>
    %cst_8 = arith.constant 0.000000e+00 : f32
    %8 = vector.broadcast %cst_8 : f32 to vector<1x128xf32>
    %c0_9 = arith.constant 0 : index
    %c0_10 = arith.constant 0 : index
    %9 = vector.load %arg3[%c0_9, %c0_10] : memref<128x384xf32, #tpu.memory_space<vmem>>, vector<128x384xf32>
    %cst_11 = arith.constant dense<0.000000e+00> : vector<1x384xf32>
    %10 = tpu.matmul %7, %9, %cst_11 {dimension_numbers = #tpu.dot_dimension_numbers<[1], [0], [0], [1], [0, 0, 1, 1], [], []>} : vector<1x128xf32>, vector<128x384xf32>, vector<1x384xf32> -> vector<1x384xf32>
    %11 = arith.addf %10, %6 : vector<1x384xf32>
    %12 = vector.extract_strided_slice %5 {offsets = [0, 0], sizes = [1, 384], strides = [1, 1]} : vector<8x384xf32> to vector<1x384xf32>
    %13 = vector.extract_strided_slice %12 {offsets = [0, 0], sizes = [1, 128], strides = [1, 1]} : vector<1x384xf32> to vector<1x128xf32>
    %14 = vector.extract_strided_slice %11 {offsets = [0, 0], sizes = [1, 128], strides = [1, 1]} : vector<1x384xf32> to vector<1x128xf32>
    %15 = arith.addf %13, %14 : vector<1x128xf32>
    %16 = arith.negf %15 : vector<1x128xf32>
    %17 = math.exp %16 : vector<1x128xf32>
    %cst_12 = arith.constant 1.000000e+00 : f32
    %18 = vector.broadcast %cst_12 : f32 to vector<1x128xf32>
    %19 = arith.addf %18, %17 : vector<1x128xf32>
    %20 = arith.divf %18, %19 : vector<1x128xf32>
    %21 = vector.extract_strided_slice %12 {offsets = [0, 128], sizes = [1, 128], strides = [1, 1]} : vector<1x384xf32> to vector<1x128xf32>
    %22 = vector.extract_strided_slice %11 {offsets = [0, 128], sizes = [1, 128], strides = [1, 1]} : vector<1x384xf32> to vector<1x128xf32>
    %23 = arith.addf %21, %22 : vector<1x128xf32>
    %24 = arith.negf %23 : vector<1x128xf32>
    %25 = math.exp %24 : vector<1x128xf32>
    %cst_13 = arith.constant 1.000000e+00 : f32
    %26 = vector.broadcast %cst_13 : f32 to vector<1x128xf32>
    %27 = arith.addf %26, %25 : vector<1x128xf32>
    %28 = arith.divf %26, %27 : vector<1x128xf32>
    %29 = vector.extract_strided_slice %12 {offsets = [0, 256], sizes = [1, 128], strides = [1, 1]} : vector<1x384xf32> to vector<1x128xf32>
    %30 = vector.extract_strided_slice %11 {offsets = [0, 256], sizes = [1, 128], strides = [1, 1]} : vector<1x384xf32> to vector<1x128xf32>
    %31 = arith.mulf %20, %30 : vector<1x128xf32>
    %32 = arith.addf %29, %31 : vector<1x128xf32>
    %33 = math.tanh %32 : vector<1x128xf32>
    %cst_14 = arith.constant 1.000000e+00 : f32
    %34 = vector.broadcast %cst_14 : f32 to vector<1x128xf32>
    %35 = arith.subf %34, %28 : vector<1x128xf32>
    %36 = arith.mulf %35, %33 : vector<1x128xf32>
    %37 = arith.mulf %28, %7 : vector<1x128xf32>
    %38 = arith.addf %36, %37 : vector<1x128xf32>
    %c0_15 = arith.constant 0 : index
    %c0_16 = arith.constant 0 : index
    %39 = vector.load %arg10[%c0_15, %c0_16] : memref<8x128xf32, #tpu.memory_space<vmem>>, vector<1x128xf32>
    tpu.vector_store %arg10[%c0_15, %c0_16], %38 {strides = array<i32>} : memref<8x128xf32, #tpu.memory_space<vmem>>, vector<1x128xf32>,
    %40 = arith.addf %8, %38 : vector<1x128xf32>
    %c0_17 = arith.constant 0 : index
    %c0_18 = arith.constant 0 : index
    %41 = vector.load %arg3[%c0_17, %c0_18] : memref<128x384xf32, #tpu.memory_space<vmem>>, vector<128x384xf32>
    %cst_19 = arith.constant dense<0.000000e+00> : vector<1x384xf32>
    %42 = tpu.matmul %38, %41, %cst_19 {dimension_numbers = #tpu.dot_dimension_numbers<[1], [0], [0], [1], [0, 0, 1, 1], [], []>} : vector<1x128xf32>, vector<128x384xf32>, vector<1x384xf32> -> vector<1x384xf32>
    %43 = arith.addf %42, %6 : vector<1x384xf32>
    %44 = vector.extract_strided_slice %5 {offsets = [1, 0], sizes = [1, 384], strides = [1, 1]} : vector<8x384xf32> to vector<1x384xf32>
    %45 = vector.extract_strided_slice %44 {offsets = [0, 0], sizes = [1, 128], strides = [1, 1]} : vector<1x384xf32> to vector<1x128xf32>
    %46 = vector.extract_strided_slice %43 {offsets = [0, 0], sizes = [1, 128], strides = [1, 1]} : vector<1x384xf32> to vector<1x128xf32>
    %47 = arith.addf %45, %46 : vector<1x128xf32>
    %48 = arith.negf %47 : vector<1x128xf32>
    %49 = math.exp %48 : vector<1x128xf32>
    %cst_20 = arith.constant 1.000000e+00 : f32
    %50 = vector.broadcast %cst_20 : f32 to vector<1x128xf32>
    %51 = arith.addf %50, %49 : vector<1x128xf32>
    %52 = arith.divf %50, %51 : vector<1x128xf32>
    %53 = vector.extract_strided_slice %44 {offsets = [0, 128], sizes = [1, 128], strides = [1, 1]} : vector<1x384xf32> to vector<1x128xf32>
    %54 = vector.extract_strided_slice %43 {offsets = [0, 128], sizes = [1, 128], strides = [1, 1]} : vector<1x384xf32> to vector<1x128xf32>
    %55 = arith.addf %53, %54 : vector<1x128xf32>
    %56 = arith.negf %55 : vector<1x128xf32>
    %57 = math.exp %56 : vector<1x128xf32>
    %cst_21 = arith.constant 1.000000e+00 : f32
    %58 = vector.broadcast %cst_21 : f32 to vector<1x128xf32>
    %59 = arith.addf %58, %57 : vector<1x128xf32>
    %60 = arith.divf %58, %59 : vector<1x128xf32>
    %61 = vector.extract_strided_slice %44 {offsets = [0, 256], sizes = [1, 128], strides = [1, 1]} : vector<1x384xf32> to vector<1x128xf32>
    %62 = vector.extract_strided_slice %43 {offsets = [0, 256], sizes = [1, 128], strides = [1, 1]} : vector<1x384xf32> to vector<1x128xf32>
    %63 = arith.mulf %52, %62 : vector<1x128xf32>
    %64 = arith.addf %61, %63 : vector<1x128xf32>
    %65 = math.tanh %64 : vector<1x128xf32>
    %cst_22 = arith.constant 1.000000e+00 : f32
    %66 = vector.broadcast %cst_22 : f32 to vector<1x128xf32>
    %67 = arith.subf %66, %60 : vector<1x128xf32>
    %68 = arith.mulf %67, %65 : vector<1x128xf32>
    %69 = arith.mulf %60, %38 : vector<1x128xf32>
    %70 = arith.addf %68, %69 : vector<1x128xf32>
    %c1 = arith.constant 1 : index
    %c0_23 = arith.constant 0 : index
    %71 = vector.load %arg10[%c1, %c0_23] : memref<8x128xf32, #tpu.memory_space<vmem>>, vector<1x128xf32>
    tpu.vector_store %arg10[%c1, %c0_23], %70 {strides = array<i32>} : memref<8x128xf32, #tpu.memory_space<vmem>>, vector<1x128xf32>,
    %72 = arith.addf %40, %70 : vector<1x128xf32>
    %c0_24 = arith.constant 0 : index
    %c0_25 = arith.constant 0 : index
    %73 = vector.load %arg3[%c0_24, %c0_25] : memref<128x384xf32, #tpu.memory_space<vmem>>, vector<128x384xf32>
    %cst_26 = arith.constant dense<0.000000e+00> : vector<1x384xf32>
    %74 = tpu.matmul %70, %73, %cst_26 {dimension_numbers = #tpu.dot_dimension_numbers<[1], [0], [0], [1], [0, 0, 1, 1], [], []>} : vector<1x128xf32>, vector<128x384xf32>, vector<1x384xf32> -> vector<1x384xf32>
    %75 = arith.addf %74, %6 : vector<1x384xf32>
    %76 = vector.extract_strided_slice %5 {offsets = [2, 0], sizes = [1, 384], strides = [1, 1]} : vector<8x384xf32> to vector<1x384xf32>
    %77 = vector.extract_strided_slice %76 {offsets = [0, 0], sizes = [1, 128], strides = [1, 1]} : vector<1x384xf32> to vector<1x128xf32>
    %78 = vector.extract_strided_slice %75 {offsets = [0, 0], sizes = [1, 128], strides = [1, 1]} : vector<1x384xf32> to vector<1x128xf32>
    %79 = arith.addf %77, %78 : vector<1x128xf32>
    %80 = arith.negf %79 : vector<1x128xf32>
    %81 = math.exp %80 : vector<1x128xf32>
    %cst_27 = arith.constant 1.000000e+00 : f32
    %82 = vector.broadcast %cst_27 : f32 to vector<1x128xf32>
    %83 = arith.addf %82, %81 : vector<1x128xf32>
    %84 = arith.divf %82, %83 : vector<1x128xf32>
    %85 = vector.extract_strided_slice %76 {offsets = [0, 128], sizes = [1, 128], strides = [1, 1]} : vector<1x384xf32> to vector<1x128xf32>
    %86 = vector.extract_strided_slice %75 {offsets = [0, 128], sizes = [1, 128], strides = [1, 1]} : vector<1x384xf32> to vector<1x128xf32>
    %87 = arith.addf %85, %86 : vector<1x128xf32>
    %88 = arith.negf %87 : vector<1x128xf32>
    %89 = math.exp %88 : vector<1x128xf32>
    %cst_28 = arith.constant 1.000000e+00 : f32
    %90 = vector.broadcast %cst_28 : f32 to vector<1x128xf32>
    %91 = arith.addf %90, %89 : vector<1x128xf32>
    %92 = arith.divf %90, %91 : vector<1x128xf32>
    %93 = vector.extract_strided_slice %76 {offsets = [0, 256], sizes = [1, 128], strides = [1, 1]} : vector<1x384xf32> to vector<1x128xf32>
    %94 = vector.extract_strided_slice %75 {offsets = [0, 256], sizes = [1, 128], strides = [1, 1]} : vector<1x384xf32> to vector<1x128xf32>
    %95 = arith.mulf %84, %94 : vector<1x128xf32>
    %96 = arith.addf %93, %95 : vector<1x128xf32>
    %97 = math.tanh %96 : vector<1x128xf32>
    %cst_29 = arith.constant 1.000000e+00 : f32
    %98 = vector.broadcast %cst_29 : f32 to vector<1x128xf32>
    %99 = arith.subf %98, %92 : vector<1x128xf32>
    %100 = arith.mulf %99, %97 : vector<1x128xf32>
    %101 = arith.mulf %92, %70 : vector<1x128xf32>
    %102 = arith.addf %100, %101 : vector<1x128xf32>
    %c2 = arith.constant 2 : index
    %c0_30 = arith.constant 0 : index
    %103 = vector.load %arg10[%c2, %c0_30] : memref<8x128xf32, #tpu.memory_space<vmem>>, vector<1x128xf32>
    tpu.vector_store %arg10[%c2, %c0_30], %102 {strides = array<i32>} : memref<8x128xf32, #tpu.memory_space<vmem>>, vector<1x128xf32>,
    %104 = arith.addf %72, %102 : vector<1x128xf32>
    %c0_31 = arith.constant 0 : index
    %c0_32 = arith.constant 0 : index
    %105 = vector.load %arg3[%c0_31, %c0_32] : memref<128x384xf32, #tpu.memory_space<vmem>>, vector<128x384xf32>
    %cst_33 = arith.constant dense<0.000000e+00> : vector<1x384xf32>
    %106 = tpu.matmul %102, %105, %cst_33 {dimension_numbers = #tpu.dot_dimension_numbers<[1], [0], [0], [1], [0, 0, 1, 1], [], []>} : vector<1x128xf32>, vector<128x384xf32>, vector<1x384xf32> -> vector<1x384xf32>
    %107 = arith.addf %106, %6 : vector<1x384xf32>
    %108 = vector.extract_strided_slice %5 {offsets = [3, 0], sizes = [1, 384], strides = [1, 1]} : vector<8x384xf32> to vector<1x384xf32>
    %109 = vector.extract_strided_slice %108 {offsets = [0, 0], sizes = [1, 128], strides = [1, 1]} : vector<1x384xf32> to vector<1x128xf32>
    %110 = vector.extract_strided_slice %107 {offsets = [0, 0], sizes = [1, 128], strides = [1, 1]} : vector<1x384xf32> to vector<1x128xf32>
    %111 = arith.addf %109, %110 : vector<1x128xf32>
    %112 = arith.negf %111 : vector<1x128xf32>
    %113 = math.exp %112 : vector<1x128xf32>
    %cst_34 = arith.constant 1.000000e+00 : f32
    %114 = vector.broadcast %cst_34 : f32 to vector<1x128xf32>
    %115 = arith.addf %114, %113 : vector<1x128xf32>
    %116 = arith.divf %114, %115 : vector<1x128xf32>
    %117 = vector.extract_strided_slice %108 {offsets = [0, 128], sizes = [1, 128], strides = [1, 1]} : vector<1x384xf32> to vector<1x128xf32>
    %118 = vector.extract_strided_slice %107 {offsets = [0, 128], sizes = [1, 128], strides = [1, 1]} : vector<1x384xf32> to vector<1x128xf32>
    %119 = arith.addf %117, %118 : vector<1x128xf32>
    %120 = arith.negf %119 : vector<1x128xf32>
    %121 = math.exp %120 : vector<1x128xf32>
    %cst_35 = arith.constant 1.000000e+00 : f32
    %122 = vector.broadcast %cst_35 : f32 to vector<1x128xf32>
    %123 = arith.addf %122, %121 : vector<1x128xf32>
    %124 = arith.divf %122, %123 : vector<1x128xf32>
    %125 = vector.extract_strided_slice %108 {offsets = [0, 256], sizes = [1, 128], strides = [1, 1]} : vector<1x384xf32> to vector<1x128xf32>
    %126 = vector.extract_strided_slice %107 {offsets = [0, 256], sizes = [1, 128], strides = [1, 1]} : vector<1x384xf32> to vector<1x128xf32>
    %127 = arith.mulf %116, %126 : vector<1x128xf32>
    %128 = arith.addf %125, %127 : vector<1x128xf32>
    %129 = math.tanh %128 : vector<1x128xf32>
    %cst_36 = arith.constant 1.000000e+00 : f32
    %130 = vector.broadcast %cst_36 : f32 to vector<1x128xf32>
    %131 = arith.subf %130, %124 : vector<1x128xf32>
    %132 = arith.mulf %131, %129 : vector<1x128xf32>
    %133 = arith.mulf %124, %102 : vector<1x128xf32>
    %134 = arith.addf %132, %133 : vector<1x128xf32>
    %c3 = arith.constant 3 : index
    %c0_37 = arith.constant 0 : index
    %135 = vector.load %arg10[%c3, %c0_37] : memref<8x128xf32, #tpu.memory_space<vmem>>, vector<1x128xf32>
    tpu.vector_store %arg10[%c3, %c0_37], %134 {strides = array<i32>} : memref<8x128xf32, #tpu.memory_space<vmem>>, vector<1x128xf32>,
    %136 = arith.addf %104, %134 : vector<1x128xf32>
    %c0_38 = arith.constant 0 : index
    %c0_39 = arith.constant 0 : index
    %137 = vector.load %arg3[%c0_38, %c0_39] : memref<128x384xf32, #tpu.memory_space<vmem>>, vector<128x384xf32>
    %cst_40 = arith.constant dense<0.000000e+00> : vector<1x384xf32>
    %138 = tpu.matmul %134, %137, %cst_40 {dimension_numbers = #tpu.dot_dimension_numbers<[1], [0], [0], [1], [0, 0, 1, 1], [], []>} : vector<1x128xf32>, vector<128x384xf32>, vector<1x384xf32> -> vector<1x384xf32>
    %139 = arith.addf %138, %6 : vector<1x384xf32>
    %140 = vector.extract_strided_slice %5 {offsets = [4, 0], sizes = [1, 384], strides = [1, 1]} : vector<8x384xf32> to vector<1x384xf32>
    %141 = vector.extract_strided_slice %140 {offsets = [0, 0], sizes = [1, 128], strides = [1, 1]} : vector<1x384xf32> to vector<1x128xf32>
    %142 = vector.extract_strided_slice %139 {offsets = [0, 0], sizes = [1, 128], strides = [1, 1]} : vector<1x384xf32> to vector<1x128xf32>
    %143 = arith.addf %141, %142 : vector<1x128xf32>
    %144 = arith.negf %143 : vector<1x128xf32>
    %145 = math.exp %144 : vector<1x128xf32>
    %cst_41 = arith.constant 1.000000e+00 : f32
    %146 = vector.broadcast %cst_41 : f32 to vector<1x128xf32>
    %147 = arith.addf %146, %145 : vector<1x128xf32>
    %148 = arith.divf %146, %147 : vector<1x128xf32>
    %149 = vector.extract_strided_slice %140 {offsets = [0, 128], sizes = [1, 128], strides = [1, 1]} : vector<1x384xf32> to vector<1x128xf32>
    %150 = vector.extract_strided_slice %139 {offsets = [0, 128], sizes = [1, 128], strides = [1, 1]} : vector<1x384xf32> to vector<1x128xf32>
    %151 = arith.addf %149, %150 : vector<1x128xf32>
    %152 = arith.negf %151 : vector<1x128xf32>
    %153 = math.exp %152 : vector<1x128xf32>
    %cst_42 = arith.constant 1.000000e+00 : f32
    %154 = vector.broadcast %cst_42 : f32 to vector<1x128xf32>
    %155 = arith.addf %154, %153 : vector<1x128xf32>
    %156 = arith.divf %154, %155 : vector<1x128xf32>
    %157 = vector.extract_strided_slice %140 {offsets = [0, 256], sizes = [1, 128], strides = [1, 1]} : vector<1x384xf32> to vector<1x128xf32>
    %158 = vector.extract_strided_slice %139 {offsets = [0, 256], sizes = [1, 128], strides = [1, 1]} : vector<1x384xf32> to vector<1x128xf32>
    %159 = arith.mulf %148, %158 : vector<1x128xf32>
    %160 = arith.addf %157, %159 : vector<1x128xf32>
    %161 = math.tanh %160 : vector<1x128xf32>
    %cst_43 = arith.constant 1.000000e+00 : f32
    %162 = vector.broadcast %cst_43 : f32 to vector<1x128xf32>
    %163 = arith.subf %162, %156 : vector<1x128xf32>
    %164 = arith.mulf %163, %161 : vector<1x128xf32>
    %165 = arith.mulf %156, %134 : vector<1x128xf32>
    %166 = arith.addf %164, %165 : vector<1x128xf32>
    %c4 = arith.constant 4 : index
    %c0_44 = arith.constant 0 : index
    %167 = vector.load %arg10[%c4, %c0_44] : memref<8x128xf32, #tpu.memory_space<vmem>>, vector<1x128xf32>
    tpu.vector_store %arg10[%c4, %c0_44], %166 {strides = array<i32>} : memref<8x128xf32, #tpu.memory_space<vmem>>, vector<1x128xf32>,
    %168 = arith.addf %136, %166 : vector<1x128xf32>
    %c0_45 = arith.constant 0 : index
    %c0_46 = arith.constant 0 : index
    %169 = vector.load %arg3[%c0_45, %c0_46] : memref<128x384xf32, #tpu.memory_space<vmem>>, vector<128x384xf32>
    %cst_47 = arith.constant dense<0.000000e+00> : vector<1x384xf32>
    %170 = tpu.matmul %166, %169, %cst_47 {dimension_numbers = #tpu.dot_dimension_numbers<[1], [0], [0], [1], [0, 0, 1, 1], [], []>} : vector<1x128xf32>, vector<128x384xf32>, vector<1x384xf32> -> vector<1x384xf32>
    %171 = arith.addf %170, %6 : vector<1x384xf32>
    %172 = vector.extract_strided_slice %5 {offsets = [5, 0], sizes = [1, 384], strides = [1, 1]} : vector<8x384xf32> to vector<1x384xf32>
    %173 = vector.extract_strided_slice %172 {offsets = [0, 0], sizes = [1, 128], strides = [1, 1]} : vector<1x384xf32> to vector<1x128xf32>
    %174 = vector.extract_strided_slice %171 {offsets = [0, 0], sizes = [1, 128], strides = [1, 1]} : vector<1x384xf32> to vector<1x128xf32>
    %175 = arith.addf %173, %174 : vector<1x128xf32>
    %176 = arith.negf %175 : vector<1x128xf32>
    %177 = math.exp %176 : vector<1x128xf32>
    %cst_48 = arith.constant 1.000000e+00 : f32
    %178 = vector.broadcast %cst_48 : f32 to vector<1x128xf32>
    %179 = arith.addf %178, %177 : vector<1x128xf32>
    %180 = arith.divf %178, %179 : vector<1x128xf32>
    %181 = vector.extract_strided_slice %172 {offsets = [0, 128], sizes = [1, 128], strides = [1, 1]} : vector<1x384xf32> to vector<1x128xf32>
    %182 = vector.extract_strided_slice %171 {offsets = [0, 128], sizes = [1, 128], strides = [1, 1]} : vector<1x384xf32> to vector<1x128xf32>
    %183 = arith.addf %181, %182 : vector<1x128xf32>
    %184 = arith.negf %183 : vector<1x128xf32>
    %185 = math.exp %184 : vector<1x128xf32>
    %cst_49 = arith.constant 1.000000e+00 : f32
    %186 = vector.broadcast %cst_49 : f32 to vector<1x128xf32>
    %187 = arith.addf %186, %185 : vector<1x128xf32>
    %188 = arith.divf %186, %187 : vector<1x128xf32>
    %189 = vector.extract_strided_slice %172 {offsets = [0, 256], sizes = [1, 128], strides = [1, 1]} : vector<1x384xf32> to vector<1x128xf32>
    %190 = vector.extract_strided_slice %171 {offsets = [0, 256], sizes = [1, 128], strides = [1, 1]} : vector<1x384xf32> to vector<1x128xf32>
    %191 = arith.mulf %180, %190 : vector<1x128xf32>
    %192 = arith.addf %189, %191 : vector<1x128xf32>
    %193 = math.tanh %192 : vector<1x128xf32>
    %cst_50 = arith.constant 1.000000e+00 : f32
    %194 = vector.broadcast %cst_50 : f32 to vector<1x128xf32>
    %195 = arith.subf %194, %188 : vector<1x128xf32>
    %196 = arith.mulf %195, %193 : vector<1x128xf32>
    %197 = arith.mulf %188, %166 : vector<1x128xf32>
    %198 = arith.addf %196, %197 : vector<1x128xf32>
    %c5 = arith.constant 5 : index
    %c0_51 = arith.constant 0 : index
    %199 = vector.load %arg10[%c5, %c0_51] : memref<8x128xf32, #tpu.memory_space<vmem>>, vector<1x128xf32>
    tpu.vector_store %arg10[%c5, %c0_51], %198 {strides = array<i32>} : memref<8x128xf32, #tpu.memory_space<vmem>>, vector<1x128xf32>,
    %200 = arith.addf %168, %198 : vector<1x128xf32>
    %c0_52 = arith.constant 0 : index
    %c0_53 = arith.constant 0 : index
    %201 = vector.load %arg3[%c0_52, %c0_53] : memref<128x384xf32, #tpu.memory_space<vmem>>, vector<128x384xf32>
    %cst_54 = arith.constant dense<0.000000e+00> : vector<1x384xf32>
    %202 = tpu.matmul %198, %201, %cst_54 {dimension_numbers = #tpu.dot_dimension_numbers<[1], [0], [0], [1], [0, 0, 1, 1], [], []>} : vector<1x128xf32>, vector<128x384xf32>, vector<1x384xf32> -> vector<1x384xf32>
    %203 = arith.addf %202, %6 : vector<1x384xf32>
    %204 = vector.extract_strided_slice %5 {offsets = [6, 0], sizes = [1, 384], strides = [1, 1]} : vector<8x384xf32> to vector<1x384xf32>
    %205 = vector.extract_strided_slice %204 {offsets = [0, 0], sizes = [1, 128], strides = [1, 1]} : vector<1x384xf32> to vector<1x128xf32>
    %206 = vector.extract_strided_slice %203 {offsets = [0, 0], sizes = [1, 128], strides = [1, 1]} : vector<1x384xf32> to vector<1x128xf32>
    %207 = arith.addf %205, %206 : vector<1x128xf32>
    %208 = arith.negf %207 : vector<1x128xf32>
    %209 = math.exp %208 : vector<1x128xf32>
    %cst_55 = arith.constant 1.000000e+00 : f32
    %210 = vector.broadcast %cst_55 : f32 to vector<1x128xf32>
    %211 = arith.addf %210, %209 : vector<1x128xf32>
    %212 = arith.divf %210, %211 : vector<1x128xf32>
    %213 = vector.extract_strided_slice %204 {offsets = [0, 128], sizes = [1, 128], strides = [1, 1]} : vector<1x384xf32> to vector<1x128xf32>
    %214 = vector.extract_strided_slice %203 {offsets = [0, 128], sizes = [1, 128], strides = [1, 1]} : vector<1x384xf32> to vector<1x128xf32>
    %215 = arith.addf %213, %214 : vector<1x128xf32>
    %216 = arith.negf %215 : vector<1x128xf32>
    %217 = math.exp %216 : vector<1x128xf32>
    %cst_56 = arith.constant 1.000000e+00 : f32
    %218 = vector.broadcast %cst_56 : f32 to vector<1x128xf32>
    %219 = arith.addf %218, %217 : vector<1x128xf32>
    %220 = arith.divf %218, %219 : vector<1x128xf32>
    %221 = vector.extract_strided_slice %204 {offsets = [0, 256], sizes = [1, 128], strides = [1, 1]} : vector<1x384xf32> to vector<1x128xf32>
    %222 = vector.extract_strided_slice %203 {offsets = [0, 256], sizes = [1, 128], strides = [1, 1]} : vector<1x384xf32> to vector<1x128xf32>
    %223 = arith.mulf %212, %222 : vector<1x128xf32>
    %224 = arith.addf %221, %223 : vector<1x128xf32>
    %225 = math.tanh %224 : vector<1x128xf32>
    %cst_57 = arith.constant 1.000000e+00 : f32
    %226 = vector.broadcast %cst_57 : f32 to vector<1x128xf32>
    %227 = arith.subf %226, %220 : vector<1x128xf32>
    %228 = arith.mulf %227, %225 : vector<1x128xf32>
    %229 = arith.mulf %220, %198 : vector<1x128xf32>
    %230 = arith.addf %228, %229 : vector<1x128xf32>
    %c6 = arith.constant 6 : index
    %c0_58 = arith.constant 0 : index
    %231 = vector.load %arg10[%c6, %c0_58] : memref<8x128xf32, #tpu.memory_space<vmem>>, vector<1x128xf32>
    tpu.vector_store %arg10[%c6, %c0_58], %230 {strides = array<i32>} : memref<8x128xf32, #tpu.memory_space<vmem>>, vector<1x128xf32>,
    %232 = arith.addf %200, %230 : vector<1x128xf32>
    %c0_59 = arith.constant 0 : index
    %c0_60 = arith.constant 0 : index
    %233 = vector.load %arg3[%c0_59, %c0_60] : memref<128x384xf32, #tpu.memory_space<vmem>>, vector<128x384xf32>
    %cst_61 = arith.constant dense<0.000000e+00> : vector<1x384xf32>
    %234 = tpu.matmul %230, %233, %cst_61 {dimension_numbers = #tpu.dot_dimension_numbers<[1], [0], [0], [1], [0, 0, 1, 1], [], []>} : vector<1x128xf32>, vector<128x384xf32>, vector<1x384xf32> -> vector<1x384xf32>
    %235 = arith.addf %234, %6 : vector<1x384xf32>
    %236 = vector.extract_strided_slice %5 {offsets = [7, 0], sizes = [1, 384], strides = [1, 1]} : vector<8x384xf32> to vector<1x384xf32>
    %237 = vector.extract_strided_slice %236 {offsets = [0, 0], sizes = [1, 128], strides = [1, 1]} : vector<1x384xf32> to vector<1x128xf32>
    %238 = vector.extract_strided_slice %235 {offsets = [0, 0], sizes = [1, 128], strides = [1, 1]} : vector<1x384xf32> to vector<1x128xf32>
    %239 = arith.addf %237, %238 : vector<1x128xf32>
    %240 = arith.negf %239 : vector<1x128xf32>
    %241 = math.exp %240 : vector<1x128xf32>
    %cst_62 = arith.constant 1.000000e+00 : f32
    %242 = vector.broadcast %cst_62 : f32 to vector<1x128xf32>
    %243 = arith.addf %242, %241 : vector<1x128xf32>
    %244 = arith.divf %242, %243 : vector<1x128xf32>
    %245 = vector.extract_strided_slice %236 {offsets = [0, 128], sizes = [1, 128], strides = [1, 1]} : vector<1x384xf32> to vector<1x128xf32>
    %246 = vector.extract_strided_slice %235 {offsets = [0, 128], sizes = [1, 128], strides = [1, 1]} : vector<1x384xf32> to vector<1x128xf32>
    %247 = arith.addf %245, %246 : vector<1x128xf32>
    %248 = arith.negf %247 : vector<1x128xf32>
    %249 = math.exp %248 : vector<1x128xf32>
    %cst_63 = arith.constant 1.000000e+00 : f32
    %250 = vector.broadcast %cst_63 : f32 to vector<1x128xf32>
    %251 = arith.addf %250, %249 : vector<1x128xf32>
    %252 = arith.divf %250, %251 : vector<1x128xf32>
    %253 = vector.extract_strided_slice %236 {offsets = [0, 256], sizes = [1, 128], strides = [1, 1]} : vector<1x384xf32> to vector<1x128xf32>
    %254 = vector.extract_strided_slice %235 {offsets = [0, 256], sizes = [1, 128], strides = [1, 1]} : vector<1x384xf32> to vector<1x128xf32>
    %255 = arith.mulf %244, %254 : vector<1x128xf32>
    %256 = arith.addf %253, %255 : vector<1x128xf32>
    %257 = math.tanh %256 : vector<1x128xf32>
    %cst_64 = arith.constant 1.000000e+00 : f32
    %258 = vector.broadcast %cst_64 : f32 to vector<1x128xf32>
    %259 = arith.subf %258, %252 : vector<1x128xf32>
    %260 = arith.mulf %259, %257 : vector<1x128xf32>
    %261 = arith.mulf %252, %230 : vector<1x128xf32>
    %262 = arith.addf %260, %261 : vector<1x128xf32>
    %c7 = arith.constant 7 : index
    %c0_65 = arith.constant 0 : index
    %263 = vector.load %arg10[%c7, %c0_65] : memref<8x128xf32, #tpu.memory_space<vmem>>, vector<1x128xf32>
    tpu.vector_store %arg10[%c7, %c0_65], %262 {strides = array<i32>} : memref<8x128xf32, #tpu.memory_space<vmem>>, vector<1x128xf32>,
    %264 = arith.addf %232, %262 : vector<1x128xf32>
    %cst_66 = arith.constant 1.250000e-01 : f32
    %265 = vector.broadcast %cst_66 : f32 to vector<1x128xf32>
    %266 = arith.mulf %264, %265 : vector<1x128xf32>
    %c0_67 = arith.constant 0 : index
    %c0_68 = arith.constant 0 : index
    %267 = vector.load %arg12[%c0_67, %c0_68] : memref<1x128xf32, #tpu.memory_space<vmem>>, vector<1x128xf32>
    tpu.vector_store %arg12[%c0_67, %c0_68], %266 {strides = array<i32>} : memref<1x128xf32, #tpu.memory_space<vmem>>, vector<1x128xf32>,
    %c0_69 = arith.constant 0 : index
    %c0_70 = arith.constant 0 : index
    %268 = vector.load %arg6[%c0_69, %c0_70] : memref<1x768xf32, #tpu.memory_space<vmem>>, vector<1x768xf32>
    %c0_71 = arith.constant 0 : index
    %c0_72 = arith.constant 0 : index
    %269 = vector.load %arg7[%c0_71, %c0_72] : memref<1x384xf32, #tpu.memory_space<vmem>>, vector<1x384xf32>
    %c0_73 = arith.constant 0 : index
    %c384 = arith.constant 384 : index
    %270 = vector.load %arg5[%c0_73, %c384] : memref<128x768xf32, #tpu.memory_space<vmem>>, vector<128x384xf32>
    %cst_74 = arith.constant dense<0.000000e+00> : vector<1x384xf32>
    %271 = tpu.matmul %262, %270, %cst_74 {dimension_numbers = #tpu.dot_dimension_numbers<[1], [0], [0], [1], [0, 0, 1, 1], [], []>} : vector<1x128xf32>, vector<128x384xf32>, vector<1x384xf32> -> vector<1x384xf32>
    %272 = vector.extract_strided_slice %268 {offsets = [0, 384], sizes = [1, 384], strides = [1, 1]} : vector<1x768xf32> to vector<1x384xf32>
    %273 = arith.addf %271, %272 : vector<1x384xf32>
    %274 = vector.extract_strided_slice %269 {offsets = [0, 0], sizes = [1, 128], strides = [1, 1]} : vector<1x384xf32> to vector<1x128xf32>
    %275 = vector.extract_strided_slice %273 {offsets = [0, 0], sizes = [1, 128], strides = [1, 1]} : vector<1x384xf32> to vector<1x128xf32>
    %276 = arith.addf %274, %275 : vector<1x128xf32>
    %277 = arith.negf %276 : vector<1x128xf32>
    %278 = math.exp %277 : vector<1x128xf32>
    %cst_75 = arith.constant 1.000000e+00 : f32
    %279 = vector.broadcast %cst_75 : f32 to vector<1x128xf32>
    %280 = arith.addf %279, %278 : vector<1x128xf32>
    %281 = arith.divf %279, %280 : vector<1x128xf32>
    %282 = vector.extract_strided_slice %269 {offsets = [0, 128], sizes = [1, 128], strides = [1, 1]} : vector<1x384xf32> to vector<1x128xf32>
    %283 = vector.extract_strided_slice %273 {offsets = [0, 128], sizes = [1, 128], strides = [1, 1]} : vector<1x384xf32> to vector<1x128xf32>
    %284 = arith.addf %282, %283 : vector<1x128xf32>
    %285 = arith.negf %284 : vector<1x128xf32>
    %286 = math.exp %285 : vector<1x128xf32>
    %cst_76 = arith.constant 1.000000e+00 : f32
    %287 = vector.broadcast %cst_76 : f32 to vector<1x128xf32>
    %288 = arith.addf %287, %286 : vector<1x128xf32>
    %289 = arith.divf %287, %288 : vector<1x128xf32>
    %290 = vector.extract_strided_slice %269 {offsets = [0, 256], sizes = [1, 128], strides = [1, 1]} : vector<1x384xf32> to vector<1x128xf32>
    %291 = vector.extract_strided_slice %273 {offsets = [0, 256], sizes = [1, 128], strides = [1, 1]} : vector<1x384xf32> to vector<1x128xf32>
    %292 = arith.mulf %281, %291 : vector<1x128xf32>
    %293 = arith.addf %290, %292 : vector<1x128xf32>
    %294 = math.tanh %293 : vector<1x128xf32>
    %cst_77 = arith.constant 1.000000e+00 : f32
    %295 = vector.broadcast %cst_77 : f32 to vector<1x128xf32>
    %296 = arith.subf %295, %289 : vector<1x128xf32>
    %297 = arith.mulf %296, %294 : vector<1x128xf32>
    %298 = arith.mulf %289, %262 : vector<1x128xf32>
    %299 = arith.addf %297, %298 : vector<1x128xf32>
    %c7_78 = arith.constant 7 : index
    %c0_79 = arith.constant 0 : index
    %300 = vector.load %arg14[%c7_78, %c0_79] : memref<8x128xf32, #tpu.memory_space<vmem>>, vector<1x128xf32>
    tpu.vector_store %arg14[%c7_78, %c0_79], %299 {strides = array<i32>} : memref<8x128xf32, #tpu.memory_space<vmem>>, vector<1x128xf32>,
    %c0_80 = arith.constant 0 : index
    %c0_81 = arith.constant 0 : index
    %301 = vector.load %arg5[%c0_80, %c0_81] : memref<128x768xf32, #tpu.memory_space<vmem>>, vector<128x768xf32>
    %cst_82 = arith.constant dense<0.000000e+00> : vector<1x768xf32>
    %302 = tpu.matmul %299, %301, %cst_82 {dimension_numbers = #tpu.dot_dimension_numbers<[1], [0], [0], [1], [0, 0, 1, 1], [], []>} : vector<1x128xf32>, vector<128x768xf32>, vector<1x768xf32> -> vector<1x768xf32>
    %303 = arith.addf %302, %268 : vector<1x768xf32>
    %304 = vector.extract_strided_slice %303 {offsets = [0, 0], sizes = [1, 384], strides = [1, 1]} : vector<1x768xf32> to vector<1x384xf32>
    %305 = vector.extract_strided_slice %303 {offsets = [0, 384], sizes = [1, 384], strides = [1, 1]} : vector<1x768xf32> to vector<1x384xf32>
    %306 = vector.extract_strided_slice %304 {offsets = [0, 0], sizes = [1, 128], strides = [1, 1]} : vector<1x384xf32> to vector<1x128xf32>
    %307 = vector.extract_strided_slice %305 {offsets = [0, 0], sizes = [1, 128], strides = [1, 1]} : vector<1x384xf32> to vector<1x128xf32>
    %308 = arith.addf %306, %307 : vector<1x128xf32>
    %309 = arith.negf %308 : vector<1x128xf32>
    %310 = math.exp %309 : vector<1x128xf32>
    %cst_83 = arith.constant 1.000000e+00 : f32
    %311 = vector.broadcast %cst_83 : f32 to vector<1x128xf32>
    %312 = arith.addf %311, %310 : vector<1x128xf32>
    %313 = arith.divf %311, %312 : vector<1x128xf32>
    %314 = vector.extract_strided_slice %304 {offsets = [0, 128], sizes = [1, 128], strides = [1, 1]} : vector<1x384xf32> to vector<1x128xf32>
    %315 = vector.extract_strided_slice %305 {offsets = [0, 128], sizes = [1, 128], strides = [1, 1]} : vector<1x384xf32> to vector<1x128xf32>
    %316 = arith.addf %314, %315 : vector<1x128xf32>
    %317 = arith.negf %316 : vector<1x128xf32>
    %318 = math.exp %317 : vector<1x128xf32>
    %cst_84 = arith.constant 1.000000e+00 : f32
    %319 = vector.broadcast %cst_84 : f32 to vector<1x128xf32>
    %320 = arith.addf %319, %318 : vector<1x128xf32>
    %321 = arith.divf %319, %320 : vector<1x128xf32>
    %322 = vector.extract_strided_slice %304 {offsets = [0, 256], sizes = [1, 128], strides = [1, 1]} : vector<1x384xf32> to vector<1x128xf32>
    %323 = vector.extract_strided_slice %305 {offsets = [0, 256], sizes = [1, 128], strides = [1, 1]} : vector<1x384xf32> to vector<1x128xf32>
    %324 = arith.mulf %313, %323 : vector<1x128xf32>
    %325 = arith.addf %322, %324 : vector<1x128xf32>
    %326 = math.tanh %325 : vector<1x128xf32>
    %cst_85 = arith.constant 1.000000e+00 : f32
    %327 = vector.broadcast %cst_85 : f32 to vector<1x128xf32>
    %328 = arith.subf %327, %321 : vector<1x128xf32>
    %329 = arith.mulf %328, %326 : vector<1x128xf32>
    %330 = arith.mulf %321, %299 : vector<1x128xf32>
    %331 = arith.addf %329, %330 : vector<1x128xf32>
    %c6_86 = arith.constant 6 : index
    %c0_87 = arith.constant 0 : index
    %332 = vector.load %arg14[%c6_86, %c0_87] : memref<8x128xf32, #tpu.memory_space<vmem>>, vector<1x128xf32>
    tpu.vector_store %arg14[%c6_86, %c0_87], %331 {strides = array<i32>} : memref<8x128xf32, #tpu.memory_space<vmem>>, vector<1x128xf32>,
    %c0_88 = arith.constant 0 : index
    %c0_89 = arith.constant 0 : index
    %333 = vector.load %arg5[%c0_88, %c0_89] : memref<128x768xf32, #tpu.memory_space<vmem>>, vector<128x768xf32>
    %cst_90 = arith.constant dense<0.000000e+00> : vector<1x768xf32>
    %334 = tpu.matmul %331, %333, %cst_90 {dimension_numbers = #tpu.dot_dimension_numbers<[1], [0], [0], [1], [0, 0, 1, 1], [], []>} : vector<1x128xf32>, vector<128x768xf32>, vector<1x768xf32> -> vector<1x768xf32>
    %335 = arith.addf %334, %268 : vector<1x768xf32>
    %336 = vector.extract_strided_slice %335 {offsets = [0, 0], sizes = [1, 384], strides = [1, 1]} : vector<1x768xf32> to vector<1x384xf32>
    %337 = vector.extract_strided_slice %335 {offsets = [0, 384], sizes = [1, 384], strides = [1, 1]} : vector<1x768xf32> to vector<1x384xf32>
    %338 = vector.extract_strided_slice %336 {offsets = [0, 0], sizes = [1, 128], strides = [1, 1]} : vector<1x384xf32> to vector<1x128xf32>
    %339 = vector.extract_strided_slice %337 {offsets = [0, 0], sizes = [1, 128], strides = [1, 1]} : vector<1x384xf32> to vector<1x128xf32>
    %340 = arith.addf %338, %339 : vector<1x128xf32>
    %341 = arith.negf %340 : vector<1x128xf32>
    %342 = math.exp %341 : vector<1x128xf32>
    %cst_91 = arith.constant 1.000000e+00 : f32
    %343 = vector.broadcast %cst_91 : f32 to vector<1x128xf32>
    %344 = arith.addf %343, %342 : vector<1x128xf32>
    %345 = arith.divf %343, %344 : vector<1x128xf32>
    %346 = vector.extract_strided_slice %336 {offsets = [0, 128], sizes = [1, 128], strides = [1, 1]} : vector<1x384xf32> to vector<1x128xf32>
    %347 = vector.extract_strided_slice %337 {offsets = [0, 128], sizes = [1, 128], strides = [1, 1]} : vector<1x384xf32> to vector<1x128xf32>
    %348 = arith.addf %346, %347 : vector<1x128xf32>
    %349 = arith.negf %348 : vector<1x128xf32>
    %350 = math.exp %349 : vector<1x128xf32>
    %cst_92 = arith.constant 1.000000e+00 : f32
    %351 = vector.broadcast %cst_92 : f32 to vector<1x128xf32>
    %352 = arith.addf %351, %350 : vector<1x128xf32>
    %353 = arith.divf %351, %352 : vector<1x128xf32>
    %354 = vector.extract_strided_slice %336 {offsets = [0, 256], sizes = [1, 128], strides = [1, 1]} : vector<1x384xf32> to vector<1x128xf32>
    %355 = vector.extract_strided_slice %337 {offsets = [0, 256], sizes = [1, 128], strides = [1, 1]} : vector<1x384xf32> to vector<1x128xf32>
    %356 = arith.mulf %345, %355 : vector<1x128xf32>
    %357 = arith.addf %354, %356 : vector<1x128xf32>
    %358 = math.tanh %357 : vector<1x128xf32>
    %cst_93 = arith.constant 1.000000e+00 : f32
    %359 = vector.broadcast %cst_93 : f32 to vector<1x128xf32>
    %360 = arith.subf %359, %353 : vector<1x128xf32>
    %361 = arith.mulf %360, %358 : vector<1x128xf32>
    %362 = arith.mulf %353, %331 : vector<1x128xf32>
    %363 = arith.addf %361, %362 : vector<1x128xf32>
    %c5_94 = arith.constant 5 : index
    %c0_95 = arith.constant 0 : index
    %364 = vector.load %arg14[%c5_94, %c0_95] : memref<8x128xf32, #tpu.memory_space<vmem>>, vector<1x128xf32>
    tpu.vector_store %arg14[%c5_94, %c0_95], %363 {strides = array<i32>} : memref<8x128xf32, #tpu.memory_space<vmem>>, vector<1x128xf32>,
    %c0_96 = arith.constant 0 : index
    %c0_97 = arith.constant 0 : index
    %365 = vector.load %arg5[%c0_96, %c0_97] : memref<128x768xf32, #tpu.memory_space<vmem>>, vector<128x768xf32>
    %cst_98 = arith.constant dense<0.000000e+00> : vector<1x768xf32>
    %366 = tpu.matmul %363, %365, %cst_98 {dimension_numbers = #tpu.dot_dimension_numbers<[1], [0], [0], [1], [0, 0, 1, 1], [], []>} : vector<1x128xf32>, vector<128x768xf32>, vector<1x768xf32> -> vector<1x768xf32>
    %367 = arith.addf %366, %268 : vector<1x768xf32>
    %368 = vector.extract_strided_slice %367 {offsets = [0, 0], sizes = [1, 384], strides = [1, 1]} : vector<1x768xf32> to vector<1x384xf32>
    %369 = vector.extract_strided_slice %367 {offsets = [0, 384], sizes = [1, 384], strides = [1, 1]} : vector<1x768xf32> to vector<1x384xf32>
    %370 = vector.extract_strided_slice %368 {offsets = [0, 0], sizes = [1, 128], strides = [1, 1]} : vector<1x384xf32> to vector<1x128xf32>
    %371 = vector.extract_strided_slice %369 {offsets = [0, 0], sizes = [1, 128], strides = [1, 1]} : vector<1x384xf32> to vector<1x128xf32>
    %372 = arith.addf %370, %371 : vector<1x128xf32>
    %373 = arith.negf %372 : vector<1x128xf32>
    %374 = math.exp %373 : vector<1x128xf32>
    %cst_99 = arith.constant 1.000000e+00 : f32
    %375 = vector.broadcast %cst_99 : f32 to vector<1x128xf32>
    %376 = arith.addf %375, %374 : vector<1x128xf32>
    %377 = arith.divf %375, %376 : vector<1x128xf32>
    %378 = vector.extract_strided_slice %368 {offsets = [0, 128], sizes = [1, 128], strides = [1, 1]} : vector<1x384xf32> to vector<1x128xf32>
    %379 = vector.extract_strided_slice %369 {offsets = [0, 128], sizes = [1, 128], strides = [1, 1]} : vector<1x384xf32> to vector<1x128xf32>
    %380 = arith.addf %378, %379 : vector<1x128xf32>
    %381 = arith.negf %380 : vector<1x128xf32>
    %382 = math.exp %381 : vector<1x128xf32>
    %cst_100 = arith.constant 1.000000e+00 : f32
    %383 = vector.broadcast %cst_100 : f32 to vector<1x128xf32>
    %384 = arith.addf %383, %382 : vector<1x128xf32>
    %385 = arith.divf %383, %384 : vector<1x128xf32>
    %386 = vector.extract_strided_slice %368 {offsets = [0, 256], sizes = [1, 128], strides = [1, 1]} : vector<1x384xf32> to vector<1x128xf32>
    %387 = vector.extract_strided_slice %369 {offsets = [0, 256], sizes = [1, 128], strides = [1, 1]} : vector<1x384xf32> to vector<1x128xf32>
    %388 = arith.mulf %377, %387 : vector<1x128xf32>
    %389 = arith.addf %386, %388 : vector<1x128xf32>
    %390 = math.tanh %389 : vector<1x128xf32>
    %cst_101 = arith.constant 1.000000e+00 : f32
    %391 = vector.broadcast %cst_101 : f32 to vector<1x128xf32>
    %392 = arith.subf %391, %385 : vector<1x128xf32>
    %393 = arith.mulf %392, %390 : vector<1x128xf32>
    %394 = arith.mulf %385, %363 : vector<1x128xf32>
    %395 = arith.addf %393, %394 : vector<1x128xf32>
    %c4_102 = arith.constant 4 : index
    %c0_103 = arith.constant 0 : index
    %396 = vector.load %arg14[%c4_102, %c0_103] : memref<8x128xf32, #tpu.memory_space<vmem>>, vector<1x128xf32>
    tpu.vector_store %arg14[%c4_102, %c0_103], %395 {strides = array<i32>} : memref<8x128xf32, #tpu.memory_space<vmem>>, vector<1x128xf32>,
    %c0_104 = arith.constant 0 : index
    %c0_105 = arith.constant 0 : index
    %397 = vector.load %arg5[%c0_104, %c0_105] : memref<128x768xf32, #tpu.memory_space<vmem>>, vector<128x768xf32>
    %cst_106 = arith.constant dense<0.000000e+00> : vector<1x768xf32>
    %398 = tpu.matmul %395, %397, %cst_106 {dimension_numbers = #tpu.dot_dimension_numbers<[1], [0], [0], [1], [0, 0, 1, 1], [], []>} : vector<1x128xf32>, vector<128x768xf32>, vector<1x768xf32> -> vector<1x768xf32>
    %399 = arith.addf %398, %268 : vector<1x768xf32>
    %400 = vector.extract_strided_slice %399 {offsets = [0, 0], sizes = [1, 384], strides = [1, 1]} : vector<1x768xf32> to vector<1x384xf32>
    %401 = vector.extract_strided_slice %399 {offsets = [0, 384], sizes = [1, 384], strides = [1, 1]} : vector<1x768xf32> to vector<1x384xf32>
    %402 = vector.extract_strided_slice %400 {offsets = [0, 0], sizes = [1, 128], strides = [1, 1]} : vector<1x384xf32> to vector<1x128xf32>
    %403 = vector.extract_strided_slice %401 {offsets = [0, 0], sizes = [1, 128], strides = [1, 1]} : vector<1x384xf32> to vector<1x128xf32>
    %404 = arith.addf %402, %403 : vector<1x128xf32>
    %405 = arith.negf %404 : vector<1x128xf32>
    %406 = math.exp %405 : vector<1x128xf32>
    %cst_107 = arith.constant 1.000000e+00 : f32
    %407 = vector.broadcast %cst_107 : f32 to vector<1x128xf32>
    %408 = arith.addf %407, %406 : vector<1x128xf32>
    %409 = arith.divf %407, %408 : vector<1x128xf32>
    %410 = vector.extract_strided_slice %400 {offsets = [0, 128], sizes = [1, 128], strides = [1, 1]} : vector<1x384xf32> to vector<1x128xf32>
    %411 = vector.extract_strided_slice %401 {offsets = [0, 128], sizes = [1, 128], strides = [1, 1]} : vector<1x384xf32> to vector<1x128xf32>
    %412 = arith.addf %410, %411 : vector<1x128xf32>
    %413 = arith.negf %412 : vector<1x128xf32>
    %414 = math.exp %413 : vector<1x128xf32>
    %cst_108 = arith.constant 1.000000e+00 : f32
    %415 = vector.broadcast %cst_108 : f32 to vector<1x128xf32>
    %416 = arith.addf %415, %414 : vector<1x128xf32>
    %417 = arith.divf %415, %416 : vector<1x128xf32>
    %418 = vector.extract_strided_slice %400 {offsets = [0, 256], sizes = [1, 128], strides = [1, 1]} : vector<1x384xf32> to vector<1x128xf32>
    %419 = vector.extract_strided_slice %401 {offsets = [0, 256], sizes = [1, 128], strides = [1, 1]} : vector<1x384xf32> to vector<1x128xf32>
    %420 = arith.mulf %409, %419 : vector<1x128xf32>
    %421 = arith.addf %418, %420 : vector<1x128xf32>
    %422 = math.tanh %421 : vector<1x128xf32>
    %cst_109 = arith.constant 1.000000e+00 : f32
    %423 = vector.broadcast %cst_109 : f32 to vector<1x128xf32>
    %424 = arith.subf %423, %417 : vector<1x128xf32>
    %425 = arith.mulf %424, %422 : vector<1x128xf32>
    %426 = arith.mulf %417, %395 : vector<1x128xf32>
    %427 = arith.addf %425, %426 : vector<1x128xf32>
    %c3_110 = arith.constant 3 : index
    %c0_111 = arith.constant 0 : index
    %428 = vector.load %arg14[%c3_110, %c0_111] : memref<8x128xf32, #tpu.memory_space<vmem>>, vector<1x128xf32>
    tpu.vector_store %arg14[%c3_110, %c0_111], %427 {strides = array<i32>} : memref<8x128xf32, #tpu.memory_space<vmem>>, vector<1x128xf32>,
    %c0_112 = arith.constant 0 : index
    %c0_113 = arith.constant 0 : index
    %429 = vector.load %arg5[%c0_112, %c0_113] : memref<128x768xf32, #tpu.memory_space<vmem>>, vector<128x768xf32>
    %cst_114 = arith.constant dense<0.000000e+00> : vector<1x768xf32>
    %430 = tpu.matmul %427, %429, %cst_114 {dimension_numbers = #tpu.dot_dimension_numbers<[1], [0], [0], [1], [0, 0, 1, 1], [], []>} : vector<1x128xf32>, vector<128x768xf32>, vector<1x768xf32> -> vector<1x768xf32>
    %431 = arith.addf %430, %268 : vector<1x768xf32>
    %432 = vector.extract_strided_slice %431 {offsets = [0, 0], sizes = [1, 384], strides = [1, 1]} : vector<1x768xf32> to vector<1x384xf32>
    %433 = vector.extract_strided_slice %431 {offsets = [0, 384], sizes = [1, 384], strides = [1, 1]} : vector<1x768xf32> to vector<1x384xf32>
    %434 = vector.extract_strided_slice %432 {offsets = [0, 0], sizes = [1, 128], strides = [1, 1]} : vector<1x384xf32> to vector<1x128xf32>
    %435 = vector.extract_strided_slice %433 {offsets = [0, 0], sizes = [1, 128], strides = [1, 1]} : vector<1x384xf32> to vector<1x128xf32>
    %436 = arith.addf %434, %435 : vector<1x128xf32>
    %437 = arith.negf %436 : vector<1x128xf32>
    %438 = math.exp %437 : vector<1x128xf32>
    %cst_115 = arith.constant 1.000000e+00 : f32
    %439 = vector.broadcast %cst_115 : f32 to vector<1x128xf32>
    %440 = arith.addf %439, %438 : vector<1x128xf32>
    %441 = arith.divf %439, %440 : vector<1x128xf32>
    %442 = vector.extract_strided_slice %432 {offsets = [0, 128], sizes = [1, 128], strides = [1, 1]} : vector<1x384xf32> to vector<1x128xf32>
    %443 = vector.extract_strided_slice %433 {offsets = [0, 128], sizes = [1, 128], strides = [1, 1]} : vector<1x384xf32> to vector<1x128xf32>
    %444 = arith.addf %442, %443 : vector<1x128xf32>
    %445 = arith.negf %444 : vector<1x128xf32>
    %446 = math.exp %445 : vector<1x128xf32>
    %cst_116 = arith.constant 1.000000e+00 : f32
    %447 = vector.broadcast %cst_116 : f32 to vector<1x128xf32>
    %448 = arith.addf %447, %446 : vector<1x128xf32>
    %449 = arith.divf %447, %448 : vector<1x128xf32>
    %450 = vector.extract_strided_slice %432 {offsets = [0, 256], sizes = [1, 128], strides = [1, 1]} : vector<1x384xf32> to vector<1x128xf32>
    %451 = vector.extract_strided_slice %433 {offsets = [0, 256], sizes = [1, 128], strides = [1, 1]} : vector<1x384xf32> to vector<1x128xf32>
    %452 = arith.mulf %441, %451 : vector<1x128xf32>
    %453 = arith.addf %450, %452 : vector<1x128xf32>
    %454 = math.tanh %453 : vector<1x128xf32>
    %cst_117 = arith.constant 1.000000e+00 : f32
    %455 = vector.broadcast %cst_117 : f32 to vector<1x128xf32>
    %456 = arith.subf %455, %449 : vector<1x128xf32>
    %457 = arith.mulf %456, %454 : vector<1x128xf32>
    %458 = arith.mulf %449, %427 : vector<1x128xf32>
    %459 = arith.addf %457, %458 : vector<1x128xf32>
    %c2_118 = arith.constant 2 : index
    %c0_119 = arith.constant 0 : index
    %460 = vector.load %arg14[%c2_118, %c0_119] : memref<8x128xf32, #tpu.memory_space<vmem>>, vector<1x128xf32>
    tpu.vector_store %arg14[%c2_118, %c0_119], %459 {strides = array<i32>} : memref<8x128xf32, #tpu.memory_space<vmem>>, vector<1x128xf32>,
    %c0_120 = arith.constant 0 : index
    %c0_121 = arith.constant 0 : index
    %461 = vector.load %arg5[%c0_120, %c0_121] : memref<128x768xf32, #tpu.memory_space<vmem>>, vector<128x768xf32>
    %cst_122 = arith.constant dense<0.000000e+00> : vector<1x768xf32>
    %462 = tpu.matmul %459, %461, %cst_122 {dimension_numbers = #tpu.dot_dimension_numbers<[1], [0], [0], [1], [0, 0, 1, 1], [], []>} : vector<1x128xf32>, vector<128x768xf32>, vector<1x768xf32> -> vector<1x768xf32>
    %463 = arith.addf %462, %268 : vector<1x768xf32>
    %464 = vector.extract_strided_slice %463 {offsets = [0, 0], sizes = [1, 384], strides = [1, 1]} : vector<1x768xf32> to vector<1x384xf32>
    %465 = vector.extract_strided_slice %463 {offsets = [0, 384], sizes = [1, 384], strides = [1, 1]} : vector<1x768xf32> to vector<1x384xf32>
    %466 = vector.extract_strided_slice %464 {offsets = [0, 0], sizes = [1, 128], strides = [1, 1]} : vector<1x384xf32> to vector<1x128xf32>
    %467 = vector.extract_strided_slice %465 {offsets = [0, 0], sizes = [1, 128], strides = [1, 1]} : vector<1x384xf32> to vector<1x128xf32>
    %468 = arith.addf %466, %467 : vector<1x128xf32>
    %469 = arith.negf %468 : vector<1x128xf32>
    %470 = math.exp %469 : vector<1x128xf32>
    %cst_123 = arith.constant 1.000000e+00 : f32
    %471 = vector.broadcast %cst_123 : f32 to vector<1x128xf32>
    %472 = arith.addf %471, %470 : vector<1x128xf32>
    %473 = arith.divf %471, %472 : vector<1x128xf32>
    %474 = vector.extract_strided_slice %464 {offsets = [0, 128], sizes = [1, 128], strides = [1, 1]} : vector<1x384xf32> to vector<1x128xf32>
    %475 = vector.extract_strided_slice %465 {offsets = [0, 128], sizes = [1, 128], strides = [1, 1]} : vector<1x384xf32> to vector<1x128xf32>
    %476 = arith.addf %474, %475 : vector<1x128xf32>
    %477 = arith.negf %476 : vector<1x128xf32>
    %478 = math.exp %477 : vector<1x128xf32>
    %cst_124 = arith.constant 1.000000e+00 : f32
    %479 = vector.broadcast %cst_124 : f32 to vector<1x128xf32>
    %480 = arith.addf %479, %478 : vector<1x128xf32>
    %481 = arith.divf %479, %480 : vector<1x128xf32>
    %482 = vector.extract_strided_slice %464 {offsets = [0, 256], sizes = [1, 128], strides = [1, 1]} : vector<1x384xf32> to vector<1x128xf32>
    %483 = vector.extract_strided_slice %465 {offsets = [0, 256], sizes = [1, 128], strides = [1, 1]} : vector<1x384xf32> to vector<1x128xf32>
    %484 = arith.mulf %473, %483 : vector<1x128xf32>
    %485 = arith.addf %482, %484 : vector<1x128xf32>
    %486 = math.tanh %485 : vector<1x128xf32>
    %cst_125 = arith.constant 1.000000e+00 : f32
    %487 = vector.broadcast %cst_125 : f32 to vector<1x128xf32>
    %488 = arith.subf %487, %481 : vector<1x128xf32>
    %489 = arith.mulf %488, %486 : vector<1x128xf32>
    %490 = arith.mulf %481, %459 : vector<1x128xf32>
    %491 = arith.addf %489, %490 : vector<1x128xf32>
    %c1_126 = arith.constant 1 : index
    %c0_127 = arith.constant 0 : index
    %492 = vector.load %arg14[%c1_126, %c0_127] : memref<8x128xf32, #tpu.memory_space<vmem>>, vector<1x128xf32>
    tpu.vector_store %arg14[%c1_126, %c0_127], %491 {strides = array<i32>} : memref<8x128xf32, #tpu.memory_space<vmem>>, vector<1x128xf32>,
    %c0_128 = arith.constant 0 : index
    %c0_129 = arith.constant 0 : index
    %493 = vector.load %arg5[%c0_128, %c0_129] : memref<128x768xf32, #tpu.memory_space<vmem>>, vector<128x768xf32>
    %cst_130 = arith.constant dense<0.000000e+00> : vector<1x768xf32>
    %494 = tpu.matmul %491, %493, %cst_130 {dimension_numbers = #tpu.dot_dimension_numbers<[1], [0], [0], [1], [0, 0, 1, 1], [], []>} : vector<1x128xf32>, vector<128x768xf32>, vector<1x768xf32> -> vector<1x768xf32>
    %495 = arith.addf %494, %268 : vector<1x768xf32>
    %496 = vector.extract_strided_slice %495 {offsets = [0, 0], sizes = [1, 384], strides = [1, 1]} : vector<1x768xf32> to vector<1x384xf32>
    %497 = vector.extract_strided_slice %495 {offsets = [0, 384], sizes = [1, 384], strides = [1, 1]} : vector<1x768xf32> to vector<1x384xf32>
    %498 = vector.extract_strided_slice %496 {offsets = [0, 0], sizes = [1, 128], strides = [1, 1]} : vector<1x384xf32> to vector<1x128xf32>
    %499 = vector.extract_strided_slice %497 {offsets = [0, 0], sizes = [1, 128], strides = [1, 1]} : vector<1x384xf32> to vector<1x128xf32>
    %500 = arith.addf %498, %499 : vector<1x128xf32>
    %501 = arith.negf %500 : vector<1x128xf32>
    %502 = math.exp %501 : vector<1x128xf32>
    %cst_131 = arith.constant 1.000000e+00 : f32
    %503 = vector.broadcast %cst_131 : f32 to vector<1x128xf32>
    %504 = arith.addf %503, %502 : vector<1x128xf32>
    %505 = arith.divf %503, %504 : vector<1x128xf32>
    %506 = vector.extract_strided_slice %496 {offsets = [0, 128], sizes = [1, 128], strides = [1, 1]} : vector<1x384xf32> to vector<1x128xf32>
    %507 = vector.extract_strided_slice %497 {offsets = [0, 128], sizes = [1, 128], strides = [1, 1]} : vector<1x384xf32> to vector<1x128xf32>
    %508 = arith.addf %506, %507 : vector<1x128xf32>
    %509 = arith.negf %508 : vector<1x128xf32>
    %510 = math.exp %509 : vector<1x128xf32>
    %cst_132 = arith.constant 1.000000e+00 : f32
    %511 = vector.broadcast %cst_132 : f32 to vector<1x128xf32>
    %512 = arith.addf %511, %510 : vector<1x128xf32>
    %513 = arith.divf %511, %512 : vector<1x128xf32>
    %514 = vector.extract_strided_slice %496 {offsets = [0, 256], sizes = [1, 128], strides = [1, 1]} : vector<1x384xf32> to vector<1x128xf32>
    %515 = vector.extract_strided_slice %497 {offsets = [0, 256], sizes = [1, 128], strides = [1, 1]} : vector<1x384xf32> to vector<1x128xf32>
    %516 = arith.mulf %505, %515 : vector<1x128xf32>
    %517 = arith.addf %514, %516 : vector<1x128xf32>
    %518 = math.tanh %517 : vector<1x128xf32>
    %cst_133 = arith.constant 1.000000e+00 : f32
    %519 = vector.broadcast %cst_133 : f32 to vector<1x128xf32>
    %520 = arith.subf %519, %513 : vector<1x128xf32>
    %521 = arith.mulf %520, %518 : vector<1x128xf32>
    %522 = arith.mulf %513, %491 : vector<1x128xf32>
    %523 = arith.addf %521, %522 : vector<1x128xf32>
    %c0_134 = arith.constant 0 : index
    %c0_135 = arith.constant 0 : index
    %524 = vector.load %arg14[%c0_134, %c0_135] : memref<8x128xf32, #tpu.memory_space<vmem>>, vector<1x128xf32>
    tpu.vector_store %arg14[%c0_134, %c0_135], %523 {strides = array<i32>} : memref<8x128xf32, #tpu.memory_space<vmem>>, vector<1x128xf32>,
    %c0_136 = arith.constant 0 : index
    %c0_137 = arith.constant 0 : index
    %525 = vector.load %arg14[%c0_136, %c0_137] : memref<8x128xf32, #tpu.memory_space<vmem>>, vector<8x128xf32>
    %c0_138 = arith.constant 0 : index
    %c0_139 = arith.constant 0 : index
    %526 = vector.load %arg8[%c0_138, %c0_139] : memref<128x128xf32, #tpu.memory_space<vmem>>, vector<128x128xf32>
    %cst_140 = arith.constant dense<0.000000e+00> : vector<8x128xf32>
    %527 = tpu.matmul %525, %526, %cst_140 {dimension_numbers = #tpu.dot_dimension_numbers<[1], [0], [0], [1], [0, 0, 1, 1], [], []>} : vector<8x128xf32>, vector<128x128xf32>, vector<8x128xf32> -> vector<8x128xf32>
    %c0_141 = arith.constant 0 : index
    %c0_142 = arith.constant 0 : index
    %528 = vector.load %arg9[%c0_141, %c0_142] : memref<1x128xf32, #tpu.memory_space<vmem>>, vector<1x128xf32>
    %529 = vector.broadcast %528 : vector<1x128xf32> to vector<8x128xf32>
    %530 = arith.addf %527, %529 : vector<8x128xf32>
    %c0_143 = arith.constant 0 : index
    %c0_144 = arith.constant 0 : index
    %531 = vector.load %arg11[%c0_143, %c0_144] : memref<8x128xf32, #tpu.memory_space<vmem>>, vector<8x128xf32>
    tpu.vector_store %arg11[%c0_143, %c0_144], %530 {strides = array<i32>} : memref<8x128xf32, #tpu.memory_space<vmem>>, vector<8x128xf32>,
    %532 = arith.subf %0, %530 : vector<8x128xf32>
    %533 = arith.mulf %532, %532 : vector<8x128xf32>
    %534 = vector.shape_cast %533 : vector<8x128xf32> to vector<1x8x128xf32>
    %cst_145 = arith.constant dense<0.000000e+00> : vector<1xf32>
    %535 = vector.multi_reduction <add>, %534, %cst_145 [1, 2] : vector<1x8x128xf32> to vector<1xf32>
    %536 = vector.shape_cast %535 : vector<1xf32> to vector<1x1x1xf32>
    %537 = vector.extract %536[0, 0, 0] : f32 from vector<1x1x1xf32>
    %538 = vector.broadcast %537 : f32 to vector<1x1xf32>
    %cst_146 = arith.constant 0.00181159424 : f32
    %539 = vector.broadcast %cst_146 : f32 to vector<1x1xf32>
    %540 = arith.mulf %538, %539 : vector<1x1xf32>
    %c0_147 = arith.constant 0 : index
    %c0_148 = arith.constant 0 : index
    %541 = vector.load %arg13[%c0_147, %c0_148] : memref<1x1xf32, #tpu.memory_space<vmem>>, vector<1x1xf32>
    tpu.vector_store %arg13[%c0_147, %c0_148], %540 {strides = array<i32>} : memref<1x1xf32, #tpu.memory_space<vmem>>, vector<1x1xf32>,
    return
  }
}

</mosaic_0001>

<bundles_post_ra>
// kernel: lstm_autoencoder_forward.1
= control target key start
LH: loop header
LB: loop body
LE: loop exit
PB: predicated region body
PF: predicated region fallthrough
CT: control target
= control target key end

     0   :  { %19 = vsyncpa [#allocation4], 0  ;;  %s9339_s0 = inlined_call_operand.vmem [shape: f32[8,128], index: 0, kind: input, shape index: {}]   ;;  %s9340_s1 = inlined_call_operand.vmem [shape: f32[128,384], index: 1, kind: input, shape index: {}]   ;;  %s9341_s2 = inlined_call_operand.vmem [shape: f32[1,384], index: 2, kind: input, shape index: {}]   ;;  %s9342_s3 = inlined_call_operand.vmem [shape: f32[128,384], index: 3, kind: input, shape index: {}]   ;;  %s9343_s4 = inlined_call_operand.vmem [shape: f32[1,384], index: 4, kind: input, shape index: {}]   ;;  %s9344_s5 = inlined_call_operand.vmem [shape: f32[128,768], index: 5, kind: input, shape index: {}]   ;;  %s9345_s6 = inlined_call_operand.vmem [shape: f32[1,768], index: 6, kind: input, shape index: {}]   ;;  %s9346_s7 = inlined_call_operand.vmem [shape: f32[1,384], index: 7, kind: input, shape index: {}]   ;;  %s9347_s8 = inlined_call_operand.vmem [shape: f32[128,128], index: 8, kind: input, shape index: {}]   ;;  %s9348_s9 = inlined_call_operand.vmem [shape: f32[1,128], index: 9, kind: input, shape index: {}]   ;;  %s9349_s10 = inlined_call_operand.hbm [shape: f32[8,128], index: 10, kind: output, shape index: {0}]   ;;  %s9350_s11 = inlined_call_operand.hbm [shape: f32[8,128], index: 11, kind: output, shape index: {1}]   ;;  %s9351_s12 = inlined_call_operand.hbm [shape: f32[1,128], index: 12, kind: output, shape index: {2}]   ;;  %s9352_s13 = inlined_call_operand.hbm [shape: f32[1,1], index: 13, kind: output, shape index: {3}]  }
   0x1   :  { %20 = vsyncpa [#allocation6], 0  ;;  %v89_v0 = vld [vmem:[%s9340_s1 + $0x170] sm:$0xff]  ;;  %v88_v1 = vld [vmem:[%s9340_s1 + $0x168] sm:$0xff]  ;;  %v9353_v4 = vmov 0.0   ;;  %vm5675_vm0 = vmmov 0  }
   0x2   :  { %v86_v2 = vld [vmem:[%s9340_s1 + $0x158] sm:$0xff]  ;;  %108 = vmatprep.subr.mxu0 %v89_v0  ;;  %v85_v3 = vld [vmem:[%s9340_s1 + $0x150] sm:$0xff]  ;;  %172 = vmatprep.mubr.f32.mxu0 %v9353_v4  ;;  %v83_v5 = vld [vmem:[%s9340_s1 + $0x140] sm:$0xff] }
   0x3   :  { %109 = vmatpush1.msra.mxu0 %v88_v1  ;;  %5032 = vmatprep.subr.mxu1 %v9353_v4  ;;  %v82_v6 = vld [vmem:[%s9340_s1 + $0x138] sm:$0xff]  ;;  %v80_v7 = vld [vmem:[%s9340_s1 + $0x128] sm:$0xff]  ;;  %v79_v8 = vld [vmem:[%s9340_s1 + $0x120] sm:$0xff] }
   0x4   :  { %110 = vmatprep.subr.mxu0 %v86_v2  ;;  %5064 = vmatprep.mubr.msk.f32.mxu1 %vm5675_vm0, %v9353_v4  ;;  %v77_v9 = vld [vmem:[%s9340_s1 + $0x110] sm:$0xff]  ;;  %v76_v10 = vld [vmem:[%s9340_s1 + $0x108] sm:$0xff]  ;;  %v74_v11 = vld [vmem:[%s9340_s1 + $0xf8] sm:$0xff] }
   0x5   :  { %111 = vmatpush1.msra.mxu0 %v85_v3  ;;  %v73_v12 = vld [vmem:[%s9340_s1 + $0xf0] sm:$0xff]  ;;  %v71_v13 = vld [vmem:[%s9340_s1 + $0xe0] sm:$0xff]  ;;  %v70_v14 = vld [vmem:[%s9340_s1 + $0xd8] sm:$0xff] }
   0x6   :  { %112 = vmatprep.subr.mxu0 %v83_v5  ;;  %v90_v15 = vld [vmem:[%s9340_s1 + $0x178] sm:$0xff]  ;;  %v68_v16 = vld [vmem:[%s9340_s1 + $0xc8] sm:$0xff]  ;;  %v87_v17 = vld [vmem:[%s9340_s1 + $0x160] sm:$0xff] }
   0x7   :  { %113 = vmatpush1.msra.mxu0 %v82_v6  ;;  %5033 = vmatpush3.msra.mxu1 %v90_v15  ;;  %v67_v18 = vld [vmem:[%s9340_s1 + $0xc0] sm:$0xff]  ;;  %v84_v19 = vld [vmem:[%s9340_s1 + $0x148] sm:$0xff]  ;;  %v65_v20 = vld [vmem:[%s9340_s1 + $0xb0] sm:$0xff] }
   0x8   :  { %114 = vmatprep.subr.mxu0 %v80_v7  ;;  %5034 = vmatprep.subr.mxu1 %v9353_v4  ;;  %v64_v21 = vld [vmem:[%s9340_s1 + $0xa8] sm:$0xff]  ;;  %v81_v22 = vld [vmem:[%s9340_s1 + $0x130] sm:$0xff]  ;;  %v62_v23 = vld [vmem:[%s9340_s1 + $0x98] sm:$0xff] }
   0x9   :  { %115 = vmatpush1.msra.mxu0 %v79_v8  ;;  %5035 = vmatpush3.msra.mxu1 %v87_v17  ;;  %v61_v24 = vld [vmem:[%s9340_s1 + $0x90] sm:$0xff]  ;;  %v78_v25 = vld [vmem:[%s9340_s1 + $0x118] sm:$0xff]  ;;  %v59_v26 = vld [vmem:[%s9340_s1 + $0x80] sm:$0xff] }
   0xa   :  { %116 = vmatprep.subr.mxu0 %v77_v9  ;;  %5036 = vmatprep.subr.mxu1 %v9353_v4  ;;  %v58_v27 = vld [vmem:[%s9340_s1 + $0x78] sm:$0xff]  ;;  %v75_v28 = vld [vmem:[%s9340_s1 + $0x100] sm:$0xff]  ;;  %v56_v29 = vld [vmem:[%s9340_s1 + $0x68] sm:$0xff] }
   0xb   :  { %117 = vmatpush1.msra.mxu0 %v76_v10  ;;  %5037 = vmatpush3.msra.mxu1 %v84_v19  ;;  %v55_v30 = vld [vmem:[%s9340_s1 + $0x60] sm:$0xff]  ;;  %v72_v31 = vld [vmem:[%s9340_s1 + $0xe8] sm:$0xff]  ;;  %v53_v32 = vld [vmem:[%s9340_s1 + $0x50] sm:$0xff] }
   0xc   :  { %118 = vmatprep.subr.mxu0 %v74_v11  ;;  %5038 = vmatprep.subr.mxu1 %v9353_v4  ;;  %v52_v33 = vld [vmem:[%s9340_s1 + $0x48] sm:$0xff]  ;;  %v69_v34 = vld [vmem:[%s9340_s1 + $0xd0] sm:$0xff]  ;;  %v50_v35 = vld [vmem:[%s9340_s1 + $0x38] sm:$0xff] }
   0xd   :  { %119 = vmatpush1.msra.mxu0 %v73_v12  ;;  %5039 = vmatpush3.msra.mxu1 %v81_v22  ;;  %v49_v36 = vld [vmem:[%s9340_s1 + $0x30] sm:$0xff]  ;;  %v66_v37 = vld [vmem:[%s9340_s1 + $0xb8] sm:$0xff]  ;;  %v47_v38 = vld [vmem:[%s9340_s1 + $0x20] sm:$0xff] }
   0xe   :  { %120 = vmatprep.subr.mxu0 %v71_v13  ;;  %5040 = vmatprep.subr.mxu1 %v9353_v4  ;;  %v46_v39 = vld [vmem:[%s9340_s1 + $0x18] sm:$0xff]  ;;  %v63_v40 = vld [vmem:[%s9340_s1 + $0xa0] sm:$0xff]  ;;  %v44_v41 = vld [vmem:[%s9340_s1 + $0x8] sm:$0xff] }
   0xf   :  { %121 = vmatpush1.msra.mxu0 %v70_v14  ;;  %5041 = vmatpush3.msra.mxu1 %v78_v25  ;;  %v43_v42 = vld [vmem:[%s9340_s1] sm:$0xff]  ;;  %v60_v43 = vld [vmem:[%s9340_s1 + $0x88] sm:$0xff]  ;;  %v5899_v45 = vld [vmem:[%s9342_s3 + $0x170] sm:$0xff] }
  0x10   :  { %122 = vmatprep.subr.mxu0 %v68_v16  ;;  %5042 = vmatprep.subr.mxu1 %v9353_v4  ;;  %v42_v44 = vld [vmem:[%s9339_s0] sm:$0xff]  ;;  %9590 = vst [vmem:[#allocation13_spill] sm:$0xff] %v5899_v45  ;;  %v5904_v46 = vld [vmem:[%s9342_s3 + $0x168] sm:$0xff]  ;;  %v5910_v47 = vld [vmem:[%s9342_s3 + $0x158] sm:$0xff] }
  0x11   :  { %123 = vmatpush1.msra.mxu0 %v67_v18  ;;  %5043 = vmatpush3.msra.mxu1 %v75_v28  ;;  %v57_v48 = vld [vmem:[%s9340_s1 + $0x70] sm:$0xff] }
  0x12   :  { %124 = vmatprep.subr.mxu0 %v65_v20  ;;  %5044 = vmatprep.subr.mxu1 %v9353_v4 }
  0x13   :  { %125 = vmatpush1.msra.mxu0 %v64_v21  ;;  %5045 = vmatpush3.msra.mxu1 %v72_v31 }
  0x14   :  { %126 = vmatprep.subr.mxu0 %v62_v23  ;;  %5046 = vmatprep.subr.mxu1 %v9353_v4 }
  0x15   :  { %127 = vmatpush1.msra.mxu0 %v61_v24  ;;  %5047 = vmatpush3.msra.mxu1 %v69_v34 }
  0x16   :  { %128 = vmatprep.subr.mxu0 %v59_v26  ;;  %5048 = vmatprep.subr.mxu1 %v9353_v4 }
  0x17   :  { %129 = vmatpush1.msra.mxu0 %v58_v27  ;;  %5049 = vmatpush3.msra.mxu1 %v66_v37 }
  0x18   :  { %130 = vmatprep.subr.mxu0 %v56_v29  ;;  %5050 = vmatprep.subr.mxu1 %v9353_v4 }
  0x19   :  { %131 = vmatpush1.msra.mxu0 %v55_v30  ;;  %5051 = vmatpush3.msra.mxu1 %v63_v40 }
  0x1a   :  { %132 = vmatprep.subr.mxu0 %v53_v32  ;;  %5052 = vmatprep.subr.mxu1 %v9353_v4 }
  0x1b   :  { %133 = vmatpush1.msra.mxu0 %v52_v33  ;;  %5053 = vmatpush3.msra.mxu1 %v60_v43 }
  0x1c   :  { %134 = vmatprep.subr.mxu0 %v50_v35 }
  0x1d   :  { %135 = vmatpush1.msra.mxu0 %v49_v36 }
  0x1e   :  { %136 = vmatprep.subr.mxu0 %v47_v38 }
  0x1f   :  { %137 = vmatpush1.msra.mxu0 %v46_v39 }
  0x20   :  { %138 = vmatprep.subr.mxu0 %v44_v41 }
  0x21   :  { %139 = vmatpush1.msra.mxu0 %v43_v42 }
  0x22   :  { %21 = vsyncpa [#allocation9], 0  ;;  %173 = vmatmul.mubr.f32.vlgmr.msra.gmra.mxu0 %v42_v44  ;;  %314 = vmatprep.subr.mxu0 %v5899_v45  ;;  %v5919_v49 = vld [vmem:[%s9342_s3 + $0x150] sm:$0xff]  ;;  %v5925_v50 = vld [vmem:[%s9342_s3 + $0x140] sm:$0xff]  ;;  %v93_v35 = vlaneseq  ;;  %s5677_s17 = smov [#allocation5]   ;;  %s5678_s19 = smov [#allocation3]  }
  0x23   :  { %315 = vmatpush1.msra.mxu0 %v5904_v46  ;;  %5054 = vmatprep.subr.mxu1 %v9353_v4  ;;  %v54_v51 = vld [vmem:[%s9340_s1 + $0x58] sm:$0xff]  ;;  %v5941_v53 = vld [vmem:[%s9342_s3 + $0x128] sm:$0xff]  ;;  %v51_v54 = vld [vmem:[%s9340_s1 + $0x40] sm:$0xff]  ;;  %s4773_s18 = sshll.u32 %s5677_s17, 4  ;;  %s4763_s20 = sshll.u32 %s5678_s19, 4  ;;  %s4774_s18 = int_to_ptr.vmem [resolvable:$true] %s4773_s18  ;;  %s4764_s20 = int_to_ptr.vmem [resolvable:$true] %s4763_s20 }
  0x24   :  { %316 = vmatprep.subr.mxu0 %v5910_v47  ;;  %v5935_v52 = vld [vmem:[%s9342_s3 + $0x138] sm:$0xff]  ;;  %5055 = vmatpush3.msra.mxu1 %v57_v48  ;;  %v5951_v55 = vld [vmem:[%s9342_s3 + $0x120] sm:$0xff]  ;;  %v5957_v56 = vld [vmem:[%s9342_s3 + $0x110] sm:$0xff]  ;;  %v6268_v36 = vshrl.u32 %v93_v35, 7  ;;  %s5588_s21 = scalar_lea.vmem %s4774_s18, 128  ;;  %p5593_p1 = scmp.lt.s32.totalorder %s4774_s18, %s4774_s18 }
  0x25   :  { %317 = vmatpush1.msra.mxu0 %v5919_v49  ;;  %5056 = vmatprep.subr.mxu1 %v9353_v4  ;;  %v48_v57 = vld [vmem:[%s9340_s1 + $0x28] sm:$0xff]  ;;  %v5973_v59 = vld [vmem:[%s9342_s3 + $0xf8] sm:$0xff]  ;;  %v45_v60 = vld [vmem:[%s9340_s1 + $0x10] sm:$0xff]  ;;  %p5589_p0 = scmp.ne.s32.totalorder %s4774_s18, %s5588_s21  ;;  %p5594_p2 = scmp.lt.s32.totalorder %s5588_s21, %s5588_s21 }
  0x26   :  { %318 = vmatprep.subr.mxu0 %v5925_v50  ;;  %5057 = vmatpush3.msra.mxu1 %v54_v51  ;;  %v5967_v58 = vld [vmem:[%s9342_s3 + $0x108] sm:$0xff]  ;;  %v5983_v61 = vld [vmem:[%s9342_s3 + $0xf0] sm:$0xff]  ;;  %v5989_v62 = vld [vmem:[%s9342_s3 + $0xe0] sm:$0xff]  ;;  %9598 = vst [vmem:[#allocation21_spill] sm:$0xff] %v6268_v36  ;;  %v99_v37 = vsub.s32 1, %v6268_v36  ;;  %v103_v40 = vsub.s32 2, %v6268_v36 }
  0x27   :  { %319 = vmatpush1.msra.mxu0 %v5935_v52  ;;  %5058 = vmatprep.subr.mxu1 %v9353_v4  ;;  %v5996_v63 = vld [vmem:[%s9342_s3 + $0xd8] sm:$0xff]  ;;  %v6002_v0 = vld [vmem:[%s9342_s3 + $0xc8] sm:$0xff]  ;;  %v6014_v2 = vld [vmem:[%s9342_s3 + $0xc0] sm:$0xff]  ;;  %p5595_p3 = por %p5594_p2, %p5593_p1 }
  0x28   :  { %320 = vmatprep.subr.mxu0 %v5941_v53  ;;  %5059 = vmatpush3.msra.mxu1 %v51_v54  ;;  %v6008_v1 = vld [vmem:[%s9342_s3 + $0x178] sm:$0xff]  ;;  %v6021_v3 = vld [vmem:[%s9342_s3 + $0xb0] sm:$0xff]  ;;  %v6026_v5 = vld [vmem:[%s9342_s3 + $0x160] sm:$0xff] }
  0x29   :  { %321 = vmatpush1.msra.mxu0 %v5951_v55  ;;  %5060 = vmatprep.subr.mxu1 %v9353_v4  ;;  %v6032_v6 = vld [vmem:[%s9342_s3 + $0xa8] sm:$0xff]  ;;  %v6039_v7 = vld [vmem:[%s9342_s3 + $0x98] sm:$0xff]  ;;  %v6051_v9 = vld [vmem:[%s9342_s3 + $0x90] sm:$0xff]  ;;  %p5596_p4 = pnand %p5595_p3, %p5589_p0 }
  0x2a   :  { %322 = vmatprep.subr.mxu0 %v5957_v56  ;;  %5061 = vmatpush3.msra.mxu1 %v48_v57  ;;  %v6045_v8 = vld [vmem:[%s9342_s3 + $0x148] sm:$0xff]  ;;  %v6058_v10 = vld [vmem:[%s9342_s3 + $0x80] sm:$0xff]  ;;  %v6064_v11 = vld [vmem:[%s9342_s3 + $0x130] sm:$0xff] }
  0x2b   :  { %323 = vmatpush1.msra.mxu0 %v5967_v58  ;;  %5062 = vmatprep.subr.mxu1 %v9353_v4  ;;  %v6070_v12 = vld [vmem:[%s9342_s3 + $0x78] sm:$0xff]  ;;  %v6077_v13 = vld [vmem:[%s9342_s3 + $0x68] sm:$0xff]  ;;  %v6089_v15 = vld [vmem:[%s9342_s3 + $0x60] sm:$0xff] }
  0x2c   :  { %324 = vmatprep.subr.mxu0 %v5973_v59  ;;  %5063 = vmatpush3.msra.mxu1 %v45_v60  ;;  %v6083_v14 = vld [vmem:[%s9342_s3 + $0x118] sm:$0xff]  ;;  %v6096_v16 = vld [vmem:[%s9342_s3 + $0x50] sm:$0xff]  ;;  %v6102_v17 = vld [vmem:[%s9342_s3 + $0x100] sm:$0xff] }
  0x2d   :  { %325 = vmatpush1.msra.mxu0 %v5983_v61  ;;  %378 = vmatprep.mubr.f32.mxu0 %v9353_v4  ;;  %v6108_v18 = vld [vmem:[%s9342_s3 + $0x48] sm:$0xff]  ;;  %v6115_v19 = vld [vmem:[%s9342_s3 + $0x38] sm:$0xff]  ;;  %v6127_v21 = vld [vmem:[%s9342_s3 + $0x30] sm:$0xff] }
  0x2e   :  { %326 = vmatprep.subr.mxu0 %v5989_v62  ;;  %5067 = vmatprep.subr.mxu1 %v9353_v4  ;;  %v6121_v20 = vld [vmem:[%s9342_s3 + $0xe8] sm:$0xff]  ;;  %v6134_v22 = vld [vmem:[%s9342_s3 + $0x20] sm:$0xff]  ;;  %v6140_v23 = vld [vmem:[%s9342_s3 + $0xd0] sm:$0xff] }
  0x2f   :  { %327 = vmatpush1.msra.mxu0 %v5996_v63  ;;  %5065 = vmatmul.mubr.f32.vlgmr.msra.gmra.mxu1 %v42_v44  ;;  %9591 = vst [vmem:[#allocation14_spill] sm:$0xff] %v6134_v22  ;;  %v6146_v24 = vld [vmem:[%s9342_s3 + $0x18] sm:$0xff]  ;;  %v6153_v25 = vld [vmem:[%s9342_s3 + $0x8] sm:$0xff]  ;;  %v6165_v27 = vld [vmem:[%s9342_s3] sm:$0xff]  ;;  %v6307_v44 = vsub.s32 0, %v6268_v36 }
  0x30   :  { %328 = vmatprep.subr.mxu0 %v6002_v0  ;;  %5068 = vmatpush3.msra.mxu1 %v6008_v1  ;;  %9592 = vst [vmem:[#allocation15_spill] sm:$0xff] %v6146_v24  ;;  %9593 = vst [vmem:[#allocation16_spill] sm:$0xff] %v6153_v25  ;;  %v6159_v26 = vld [vmem:[%s9342_s3 + $0xb8] sm:$0xff]  ;;  %v6173_v28 = vld [vmem:[%s9342_s3 + $0xa0] sm:$0xff] }
  0x31   :  { %329 = vmatpush1.msra.mxu0 %v6014_v2  ;;  %5069 = vmatprep.subr.mxu1 %v9353_v4  ;;  %9594 = vst [vmem:[#allocation17_spill] sm:$0xff] %v6165_v27  ;;  %v6182_v29 = vld [vmem:[%s9342_s3 + $0x88] sm:$0xff]  ;;  %v6190_v30 = vld [vmem:[%s9342_s3 + $0x70] sm:$0xff]  ;;  %v6200_v31 = vld [vmem:[%s9342_s3 + $0x58] sm:$0xff] }
  0x32   :  { %330 = vmatprep.subr.mxu0 %v6021_v3  ;;  %5070 = vmatpush3.msra.mxu1 %v6026_v5  ;;  %v6209_v32 = vld [vmem:[%s9342_s3 + $0x40] sm:$0xff]  ;;  %v6218_v33 = vld [vmem:[%s9342_s3 + $0x28] sm:$0xff]  ;;  %v6227_v34 = vld [vmem:[%s9342_s3 + $0x10] sm:$0xff]  ;;  %9601 = vst [vmem:[#allocation24_spill] sm:$0xff] %v6307_v44 }
  0x33   :  { %331 = vmatpush1.msra.mxu0 %v6032_v6  ;;  %5071 = vmatprep.subr.mxu1 %v9353_v4  ;;  %9595 = vst [vmem:[#allocation18_spill] sm:$0xff] %v6209_v32  ;;  %9596 = vst [vmem:[#allocation19_spill] sm:$0xff] %v6218_v33  ;;  %v2063_v38 = vld [vmem:[%s9345_s6] sm:$0x3f] }
  0x34   :  { %332 = vmatprep.subr.mxu0 %v6039_v7  ;;  %5072 = vmatpush3.msra.mxu1 %v6045_v8  ;;  %9597 = vst [vmem:[#allocation20_spill] sm:$0xff] %v6227_v34  ;;  %v6286_v39 = vrot.slane %v2063_v38, %v99_v37  ;;  %v6304_v41 = vrot.slane %v2063_v38, %v103_v40  ;;  %v91_v48 = vld [vmem:[%s9341_s2] sm:$0x7] }
  0x35   :  { %333 = vmatpush1.msra.mxu0 %v6051_v9  ;;  %5073 = vmatprep.subr.mxu1 %v9353_v4  ;;  %v249_v54 = vld [vmem:[%s9343_s4] sm:$0x7]  ;;  %v96_v57 = vrot.slane %v91_v48, %v6307_v44  ;;  %v100_v36 = vrot.slane %v91_v48, %v99_v37 }
  0x36   :  { %334 = vmatprep.subr.mxu0 %v6058_v10  ;;  %5074 = vmatpush3.msra.mxu1 %v6064_v11  ;;  %9599 = vst [vmem:[#allocation22_spill] sm:$0xff] %v6286_v39  ;;  %9600 = vst [vmem:[#allocation23_spill] sm:$0xff] %v6304_v41  ;;  %v6317_v60 = vrot.slane %v249_v54, %v6307_v44 }
  0x37   :  { %335 = vmatpush1.msra.mxu0 %v6070_v12  ;;  %5075 = vmatprep.subr.mxu1 %v9353_v4 }
  0x38   :  { %336 = vmatprep.subr.mxu0 %v6077_v13  ;;  %5076 = vmatpush3.msra.mxu1 %v6083_v14  ;;  %9602 = vst [vmem:[#allocation25_spill] sm:$0xff] %v6317_v60 }
  0x39   :  { %337 = vmatpush1.msra.mxu0 %v6089_v15  ;;  %5077 = vmatprep.subr.mxu1 %v9353_v4 }
  0x3a   :  { %338 = vmatprep.subr.mxu0 %v6096_v16  ;;  %5078 = vmatpush3.msra.mxu1 %v6102_v17 }
  0x3b   :  { %339 = vmatpush1.msra.mxu0 %v6108_v18  ;;  %5079 = vmatprep.subr.mxu1 %v9353_v4 }
  0x3c   :  { %340 = vmatprep.subr.mxu0 %v6115_v19  ;;  %5080 = vmatpush3.msra.mxu1 %v6121_v20 }
  0x3d   :  { %341 = vmatpush1.msra.mxu0 %v6127_v21  ;;  %5081 = vmatprep.subr.mxu1 %v9353_v4 }
  0x3e   :  { %342 = vmatprep.subr.mxu0 %v6134_v22  ;;  %5082 = vmatpush3.msra.mxu1 %v6140_v23 }
  0x3f   :  { %343 = vmatpush1.msra.mxu0 %v6146_v24  ;;  %5083 = vmatprep.subr.mxu1 %v9353_v4 }
  0x40   :  { %344 = vmatprep.subr.mxu0 %v6153_v25  ;;  %5084 = vmatpush3.msra.mxu1 %v6159_v26 }
  0x41   :  { %345 = vmatpush1.msra.mxu0 %v6165_v27  ;;  %5085 = vmatprep.subr.mxu1 %v9353_v4 }
  0x42   :  { %379 = vmatmul.mubr.f32.vlgmr.msra.gmra.mxu0 %v9353_v4  ;;  %5086 = vmatpush3.msra.mxu1 %v6173_v28 }
  0x43   :  { %5087 = vmatprep.subr.mxu1 %v9353_v4  ;;  %5099 = vmatprep.mubr.msk.f32.mxu1 %vm5675_vm0, %v9353_v4 }
  0x44   :  { %5088 = vmatpush3.msra.mxu1 %v6182_v29  ;;  %526 = vmatprep.subr.mxu0 %v5899_v45 }
  0x45   :  { %5089 = vmatprep.subr.mxu1 %v9353_v4  ;;  %527 = vmatpush1.msra.mxu0 %v5904_v46 }
  0x46   :  { %5090 = vmatpush3.msra.mxu1 %v6190_v30  ;;  %528 = vmatprep.subr.mxu0 %v5910_v47 }
  0x47   :  { %5091 = vmatprep.subr.mxu1 %v9353_v4  ;;  %529 = vmatpush1.msra.mxu0 %v5919_v49 }
  0x48   :  { %5092 = vmatpush3.msra.mxu1 %v6200_v31  ;;  %530 = vmatprep.subr.mxu0 %v5925_v50 }
  0x49   :  { %5093 = vmatprep.subr.mxu1 %v9353_v4  ;;  %531 = vmatpush1.msra.mxu0 %v5935_v52 }
  0x4a   :  { %5094 = vmatpush3.msra.mxu1 %v6209_v32  ;;  %532 = vmatprep.subr.mxu0 %v5941_v53 }
  0x4b   :  { %5095 = vmatprep.subr.mxu1 %v9353_v4  ;;  %533 = vmatpush1.msra.mxu0 %v5951_v55 }
  0x4c   :  { %5096 = vmatpush3.msra.mxu1 %v6218_v33  ;;  %534 = vmatprep.subr.mxu0 %v5957_v56 }
  0x4d   :  { %5097 = vmatprep.subr.mxu1 %v9353_v4  ;;  %535 = vmatpush1.msra.mxu0 %v5967_v58 }
  0x4e   :  { %5098 = vmatpush3.msra.mxu1 %v6227_v34  ;;  %536 = vmatprep.subr.mxu0 %v5973_v59 }
  0x4f   :  { %5100 = vmatmul.mubr.f32.vlgmr.msra.gmra.mxu1 %v9353_v4  ;;  %5102 = vmatprep.subr.mxu1 %v9353_v4 }
  0x50   :  { %5103 = vmatpush3.msra.mxu1 %v6008_v1  ;;  %537 = vmatpush1.msra.mxu0 %v5983_v61 }
  0x51   :  { %5104 = vmatprep.subr.mxu1 %v9353_v4  ;;  %538 = vmatprep.subr.mxu0 %v5989_v62 }
  0x52   :  { %5105 = vmatpush3.msra.mxu1 %v6026_v5  ;;  %539 = vmatpush1.msra.mxu0 %v5996_v63 }
  0x53   :  { %5106 = vmatprep.subr.mxu1 %v9353_v4  ;;  %540 = vmatprep.subr.mxu0 %v6002_v0 }
  0x54   :  { %5107 = vmatpush3.msra.mxu1 %v6045_v8  ;;  %541 = vmatpush1.msra.mxu0 %v6014_v2 }
  0x55   :  { %5108 = vmatprep.subr.mxu1 %v9353_v4  ;;  %542 = vmatprep.subr.mxu0 %v6021_v3 }
  0x56   :  { %5109 = vmatpush3.msra.mxu1 %v6064_v11  ;;  %543 = vmatpush1.msra.mxu0 %v6032_v6 }
  0x57   :  { %5110 = vmatprep.subr.mxu1 %v9353_v4  ;;  %544 = vmatprep.subr.mxu0 %v6039_v7 }
  0x58   :  { %5111 = vmatpush3.msra.mxu1 %v6083_v14  ;;  %545 = vmatpush1.msra.mxu0 %v6051_v9 }
  0x59   :  { %5112 = vmatprep.subr.mxu1 %v9353_v4  ;;  %546 = vmatprep.subr.mxu0 %v6058_v10 }
  0x5a   :  { %5113 = vmatpush3.msra.mxu1 %v6102_v17  ;;  %547 = vmatpush1.msra.mxu0 %v6070_v12 }
  0x5b   :  { %5114 = vmatprep.subr.mxu1 %v9353_v4  ;;  %548 = vmatprep.subr.mxu0 %v6077_v13 }
  0x5c   :  { %5115 = vmatpush3.msra.mxu1 %v6121_v20  ;;  %549 = vmatpush1.msra.mxu0 %v6089_v15 }
  0x5d   :  { %5116 = vmatprep.subr.mxu1 %v9353_v4  ;;  %550 = vmatprep.subr.mxu0 %v6096_v16 }
  0x5e   :  { %5117 = vmatpush3.msra.mxu1 %v6140_v23  ;;  %551 = vmatpush1.msra.mxu0 %v6108_v18 }
  0x5f   :  { %5118 = vmatprep.subr.mxu1 %v9353_v4  ;;  %552 = vmatprep.subr.mxu0 %v6115_v19 }
  0x60   :  { %5119 = vmatpush3.msra.mxu1 %v6159_v26  ;;  %553 = vmatpush1.msra.mxu0 %v6127_v21 }
  0x61   :  { %5120 = vmatprep.subr.mxu1 %v9353_v4  ;;  %554 = vmatprep.subr.mxu0 %v6134_v22 }
  0x62   :  { %5121 = vmatpush3.msra.mxu1 %v6173_v28  ;;  %555 = vmatpush1.msra.mxu0 %v6146_v24 }
  0x63   :  { %5122 = vmatprep.subr.mxu1 %v9353_v4  ;;  %556 = vmatprep.subr.mxu0 %v6153_v25 }
  0x64   :  { %5123 = vmatpush3.msra.mxu1 %v6182_v29  ;;  %557 = vmatpush1.msra.mxu0 %v6165_v27 }
  0x65   :  { %5124 = vmatprep.subr.mxu1 %v9353_v4  ;;  %590 = vmatprep.mubr.f32.mxu0 %v9353_v4 }
  0x66   :  { %5125 = vmatpush3.msra.mxu1 %v6190_v30  ;;  %5134 = vmatprep.mubr.msk.f32.mxu1 %vm5675_vm0, %v9353_v4 }
  0x67   :  { %5126 = vmatprep.subr.mxu1 %v9353_v4  ;;  %753 = vmatprep.subr.mxu0 %v5899_v45 }
  0x68   :  { %5127 = vmatpush3.msra.mxu1 %v6200_v31 }
  0x69   :  { %5128 = vmatprep.subr.mxu1 %v9353_v4 }
  0x6a   :  { %5129 = vmatpush3.msra.mxu1 %v6209_v32 }
  0x6b   :  { %5130 = vmatprep.subr.mxu1 %v9353_v4 }
  0x6c   :  { %5131 = vmatpush3.msra.mxu1 %v6218_v33 }
  0x6d   :  { %5132 = vmatprep.subr.mxu1 %v9353_v4 }
  0x6e   :  { %5133 = vmatpush3.msra.mxu1 %v6227_v34 }
  0x6f   :  { %5137 = vmatprep.subr.mxu1 %v9353_v4  ;;  %v6321_v4 = vrot.slane %v249_v54, %v99_v37 }
  0xe2   :  { %v174_v51 = vpop.f32.mrf.mxu0 }
  0xe4   :  { %v176_v35 = vpop.f32.mrf.mxu0 }
  0xe5   :  { %v6326_v25 = vadd.f32 %v176_v35, %v100_v36 }
  0xef   :  { %v245_v42 = vpop.f32.mrf.mxu1 }
  0xf1   :  { %v5066_v43 = vpop.f32.mrf.mxu1 }
  0xf2   :  { %v6319_v43 = vadd.f32 %v174_v51, %v96_v57 }
 0x102   :  { %v380_v38 = vpop.f32.mrf.mxu0 }
 0x103   :  { %v381_v41 = vadd.f32 %v380_v38, %v6317_v60  ;;  %v6329_v38 = vrot.slane %v249_v54, %v103_v40  ;;  %v104_v60 = vrot.slane %v91_v48, %v103_v40  ;;  %v9604_v40 = vld [vmem:[#allocation14_spill] sm:$0xff]  ;;  %v9606_v48 = vld [vmem:[#allocation19_spill] sm:$0xff] }
 0x104   :  { %v382_v39 = vpop.f32.mrf.mxu0 }
 0x105   :  { %v455_v45 = vadd.f32 %v381_v41, %v6319_v43  ;;  %v383_v27 = vadd.f32 %v382_v39, %v6321_v4  ;;  %v6332_v36 = vadd.f32 %v245_v42, %v104_v60  ;;  %v9605_v42 = vld [vmem:[#allocation15_spill] sm:$0xff]  ;;  %v9607_v60 = vld [vmem:[#allocation16_spill] sm:$0xff] }
 0x107   :  { %v4812_v34 = vmul.f32 -1.442695, %v455_v45  ;;  %v462_v44 = vadd.f32 %v383_v27, %v6326_v25 }
 0x109   :  { %5426 = vpow2.f32 %v4812_v34  ;;  %v4813_v33 = vmul.f32 -1.442695, %v462_v44 }
 0x10b   :  { %5428 = vpow2.f32 %v4813_v33 }
 0x10f   :  { %v451_v24 = vpop.f32.mrf.mxu1 }
 0x110   :  { %v452_v45 = vadd.f32 %v451_v24, %v6329_v38  ;;  %v9603_v24 = vmov 0.0  }
 0x111   :  { %v5101_v51 = vpop.f32.mrf.mxu1 }
 0x116   :  { %v5427_v57 = vpop.eup %5426 }
 0x117   :  { %v459_v22 = vadd.f32 1.0, %v5427_v57  ;;  %v9608_v57 = vld [vmem:[#allocation17_spill] sm:$0xff] }
 0x118   :  { %v5429_v37 = vpop.eup %5428 }
 0x119   :  { %5430 = vrcp.f32 %v459_v22  ;;  %v466_v41 = vadd.f32 1.0, %v5429_v37  ;;  %v9609_v37 = vld [vmem:[#allocation20_spill] sm:$0xff] }
 0x11b   :  { %5432 = vrcp.f32 %v466_v41  ;;  %v9610_v41 = vld [vmem:[#allocation13_spill] sm:$0xff] }
 0x126   :  { %v5431_v39 = vpop.eup %5430 }
 0x127   :  { %v469_v34 = vmul.f32 %v5431_v39, %v452_v45 }
 0x128   :  { %v5433_v44 = vpop.eup %5432 }
 0x129   :  { %v470_v27 = vadd.f32 %v469_v34, %v6332_v36  ;;  %v472_v33 = vsub.f32 1.0, %v5433_v44  ;;  %v474_v22 = vmul.f32 0.0, %v5433_v44  ;;  %v9611_v34 = vld [vmem:[#allocation25_spill] sm:$0xff] }
 0x12b   :  { %5434 = vtanh.f32 %v470_v27 }
 0x138   :  { %v5435_v35 = vpop.eup %5434 }
 0x139   :  { %v473_v51 = vmul.f32 %v5435_v35, %v472_v33 }
 0x13b   :  { %v6335_v54 = vadd.f32 %v474_v22, %v473_v51 }
 0x13d   :  { %591 = vmatmul.mubr.f32.vlgmr.msra.gmra.mxu0 %v6335_v54  ;;  %476 = vst [vmem:[#allocation3] sm:$0x1] %v6335_v54  ;;  %5135 = vmatmul.mubr.f32.vlgmr.msra.gmra.mxu1 %v6335_v54 }
 0x13e   :  { %754 = vmatpush1.msra.mxu0 %v5904_v46  ;;  %5138 = vmatpush3.msra.mxu1 %v6008_v1 }
 0x13f   :  { %755 = vmatprep.subr.mxu0 %v5910_v47  ;;  %5139 = vmatprep.subr.mxu1 %v9603_v24 }
 0x140   :  { %756 = vmatpush1.msra.mxu0 %v5919_v49  ;;  %5140 = vmatpush3.msra.mxu1 %v6026_v5 }
 0x141   :  { %757 = vmatprep.subr.mxu0 %v5925_v50  ;;  %5141 = vmatprep.subr.mxu1 %v9603_v24 }
 0x142   :  { %758 = vmatpush1.msra.mxu0 %v5935_v52  ;;  %5142 = vmatpush3.msra.mxu1 %v6045_v8 }
 0x143   :  { %759 = vmatprep.subr.mxu0 %v5941_v53  ;;  %5143 = vmatprep.subr.mxu1 %v9603_v24 }
 0x144   :  { %760 = vmatpush1.msra.mxu0 %v5951_v55  ;;  %5144 = vmatpush3.msra.mxu1 %v6064_v11 }
 0x145   :  { %761 = vmatprep.subr.mxu0 %v5957_v56  ;;  %5145 = vmatprep.subr.mxu1 %v9603_v24 }
 0x146   :  { %762 = vmatpush1.msra.mxu0 %v5967_v58  ;;  %5146 = vmatpush3.msra.mxu1 %v6083_v14 }
 0x147   :  { %763 = vmatprep.subr.mxu0 %v5973_v59  ;;  %5147 = vmatprep.subr.mxu1 %v9603_v24 }
 0x148   :  { %764 = vmatpush1.msra.mxu0 %v5983_v61  ;;  %5148 = vmatpush3.msra.mxu1 %v6102_v17 }
 0x149   :  { %765 = vmatprep.subr.mxu0 %v5989_v62  ;;  %5149 = vmatprep.subr.mxu1 %v9603_v24 }
 0x14a   :  { %766 = vmatpush1.msra.mxu0 %v5996_v63  ;;  %5150 = vmatpush3.msra.mxu1 %v6121_v20 }
 0x14b   :  { %767 = vmatprep.subr.mxu0 %v6002_v0  ;;  %5151 = vmatprep.subr.mxu1 %v9603_v24 }
 0x14c   :  { %768 = vmatpush1.msra.mxu0 %v6014_v2  ;;  %5152 = vmatpush3.msra.mxu1 %v6140_v23 }
 0x14d   :  { %769 = vmatprep.subr.mxu0 %v6021_v3  ;;  %5153 = vmatprep.subr.mxu1 %v9603_v24 }
 0x14e   :  { %770 = vmatpush1.msra.mxu0 %v6032_v6  ;;  %5154 = vmatpush3.msra.mxu1 %v6159_v26 }
 0x14f   :  { %771 = vmatprep.subr.mxu0 %v6039_v7  ;;  %5155 = vmatprep.subr.mxu1 %v9603_v24 }
 0x150   :  { %772 = vmatpush1.msra.mxu0 %v6051_v9  ;;  %5156 = vmatpush3.msra.mxu1 %v6173_v28 }
 0x151   :  { %773 = vmatprep.subr.mxu0 %v6058_v10  ;;  %5157 = vmatprep.subr.mxu1 %v9603_v24 }
 0x152   :  { %774 = vmatpush1.msra.mxu0 %v6070_v12  ;;  %5158 = vmatpush3.msra.mxu1 %v6182_v29 }
 0x153   :  { %775 = vmatprep.subr.mxu0 %v6077_v13  ;;  %5159 = vmatprep.subr.mxu1 %v9603_v24 }
 0x154   :  { %776 = vmatpush1.msra.mxu0 %v6089_v15  ;;  %5160 = vmatpush3.msra.mxu1 %v6190_v30 }
 0x155   :  { %777 = vmatprep.subr.mxu0 %v6096_v16  ;;  %5161 = vmatprep.subr.mxu1 %v9603_v24 }
 0x156   :  { %778 = vmatpush1.msra.mxu0 %v6108_v18  ;;  %5162 = vmatpush3.msra.mxu1 %v6200_v31 }
 0x157   :  { %779 = vmatprep.subr.mxu0 %v6115_v19  ;;  %5163 = vmatprep.subr.mxu1 %v9603_v24 }
 0x158   :  { %780 = vmatpush1.msra.mxu0 %v6127_v21  ;;  %5164 = vmatpush3.msra.mxu1 %v6209_v32 }
 0x159   :  { %781 = vmatprep.subr.mxu0 %v9604_v40  ;;  %5165 = vmatprep.subr.mxu1 %v9603_v24 }
 0x15a   :  { %782 = vmatpush1.msra.mxu0 %v9605_v42  ;;  %5166 = vmatpush3.msra.mxu1 %v9606_v48 }
 0x15b   :  { %783 = vmatprep.subr.mxu0 %v9607_v60  ;;  %5167 = vmatprep.subr.mxu1 %v9603_v24 }
 0x15c   :  { %784 = vmatpush1.msra.mxu0 %v9608_v57  ;;  %817 = vmatprep.mubr.f32.mxu0 %v9603_v24 }
 0x15d   :  { %5168 = vmatpush3.msra.mxu1 %v9609_v37  ;;  %5169 = vmatprep.mubr.msk.f32.mxu1 %vm5675_vm0, %v9603_v24 }
 0x15e   :  { %979 = vmatprep.subr.mxu0 %v9610_v41  ;;  %5172 = vmatprep.subr.mxu1 %v9603_v24 }
 0x1fd   :  { %v592_v45 = vpop.f32.mrf.mxu0  ;;  %v663_v39 = vpop.f32.mrf.mxu1 }
 0x1fe   :  { %v593_v27 = vadd.f32 %v592_v45, %v9611_v34  ;;  %v664_v45 = vadd.f32 %v663_v39, %v6329_v38  ;;  %v6534_v39 = vld [vmem:[%s9342_s3 + $0x150] sm:$0xff] }
 0x1ff   :  { %v594_v44 = vpop.f32.mrf.mxu0  ;;  %v5136_v33 = vpop.f32.mrf.mxu1 }
 0x200   :  { %v668_v35 = vrot.slane %v593_v27, 7  ;;  %v595_v51 = vadd.f32 %v594_v44, %v6321_v4  ;;  %v688_v33 = vrot.slane %v664_v45, 7  ;;  %v6553_v45 = vld [vmem:[%s9342_s3 + $0x138] sm:$0xff] }
 0x202   :  { %v670_v22 = vadd.f32 %v668_v35, %v6319_v43  ;;  %v678_v37 = vrot.slane %v595_v51, 7 }
 0x204   :  { %v4814_v57 = vmul.f32 -1.442695, %v670_v22  ;;  %v680_v60 = vadd.f32 %v678_v37, %v6326_v25  ;;  %v696_v37 = vrot.slane %v6335_v54, 7 }
 0x206   :  { %5436 = vpow2.f32 %v4814_v57  ;;  %v4815_v48 = vmul.f32 -1.442695, %v680_v60 }
 0x208   :  { %5438 = vpow2.f32 %v4815_v48 }
 0x213   :  { %v5437_v41 = vpop.eup %5436 }
 0x214   :  { %v674_v42 = vadd.f32 1.0, %v5437_v41  ;;  %v6546_v41 = vld [vmem:[%s9342_s3 + $0x140] sm:$0xff] }
 0x215   :  { %v5439_v40 = vpop.eup %5438 }
 0x216   :  { %5440 = vrcp.f32 %v674_v42  ;;  %v684_v34 = vadd.f32 1.0, %v5439_v40  ;;  %v6527_v42 = vld [vmem:[%s9342_s3 + $0x158] sm:$0xff] }
 0x218   :  { %5442 = vrcp.f32 %v684_v34  ;;  %v6539_v34 = vld [vmem:[%s9342_s3 + $0x160] sm:$0xff] }
 0x223   :  { %v5441_v27 = vpop.eup %5440 }
 0x224   :  { %v690_v32 = vmul.f32 %v5441_v27, %v688_v33  ;;  %v6558_v33 = vld [vmem:[%s9342_s3 + $0x148] sm:$0xff] }
 0x225   :  { %v5443_v35 = vpop.eup %5442  ;;  %v6565_v27 = vld [vmem:[%s9342_s3 + $0x128] sm:$0xff] }
 0x226   :  { %v691_v44 = vadd.f32 %v690_v32, %v6332_v36  ;;  %v693_v57 = vsub.f32 1.0, %v5443_v35  ;;  %v698_v51 = vmul.f32 %v5443_v35, %v696_v37  ;;  %v6515_v32 = vld [vmem:[%s9342_s3 + $0x168] sm:$0xff]  ;;  %v6577_v35 = vld [vmem:[%s9342_s3 + $0x130] sm:$0xff] }
 0x227   :  { %v6591_v37 = vld [vmem:[%s9342_s3 + $0x108] sm:$0xff] }
 0x228   :  { %5444 = vtanh.f32 %v691_v44  ;;  %v6572_v44 = vld [vmem:[%s9342_s3 + $0x120] sm:$0xff] }
 0x235   :  { %v5445_v60 = vpop.eup %5444 }
 0x236   :  { %v694_v48 = vmul.f32 %v5445_v60, %v693_v57  ;;  %v6584_v57 = vld [vmem:[%s9342_s3 + $0x110] sm:$0xff]  ;;  %v6596_v60 = vld [vmem:[%s9342_s3 + $0x118] sm:$0xff] }
 0x238   :  { %v6414_v22 = vadd.f32 %v698_v51, %v694_v48  ;;  %v6603_v48 = vld [vmem:[%s9342_s3 + $0xf8] sm:$0xff]  ;;  %v6610_v51 = vld [vmem:[%s9342_s3 + $0xf0] sm:$0xff] }
 0x23a   :  { %700 = vst [vmem:[#allocation3] sm:$0x2] %v6414_v22  ;;  %v6418_v40 = vrot.slane %v6414_v22, 1 }
 0x23c   :  { %818 = vmatmul.mubr.f32.vlgmr.msra.gmra.mxu0 %v6418_v40  ;;  %5170 = vmatmul.mubr.f32.vlgmr.msra.gmra.mxu1 %v6418_v40 }
 0x23d   :  { %980 = vmatpush1.msra.mxu0 %v5904_v46  ;;  %5173 = vmatpush3.msra.mxu1 %v6008_v1  ;;  %v9612_v46 = vld [vmem:[#allocation18_spill] sm:$0xff] }
 0x23e   :  { %981 = vmatprep.subr.mxu0 %v5910_v47  ;;  %5174 = vmatprep.subr.mxu1 %v9603_v24  ;;  %v9613_v47 = vld [vmem:[#allocation14_spill] sm:$0xff] }
 0x23f   :  { %982 = vmatpush1.msra.mxu0 %v5919_v49  ;;  %5175 = vmatpush3.msra.mxu1 %v6026_v5  ;;  %v9614_v49 = vld [vmem:[#allocation15_spill] sm:$0xff] }
 0x240   :  { %983 = vmatprep.subr.mxu0 %v5925_v50  ;;  %5176 = vmatprep.subr.mxu1 %v9603_v24  ;;  %v9615_v50 = vld [vmem:[#allocation19_spill] sm:$0xff] }
 0x241   :  { %984 = vmatpush1.msra.mxu0 %v5935_v52  ;;  %5177 = vmatpush3.msra.mxu1 %v6045_v8  ;;  %v9616_v52 = vld [vmem:[#allocation16_spill] sm:$0xff] }
 0x242   :  { %985 = vmatprep.subr.mxu0 %v5941_v53  ;;  %5178 = vmatprep.subr.mxu1 %v9603_v24  ;;  %v9617_v53 = vld [vmem:[#allocation17_spill] sm:$0xff] }
 0x243   :  { %986 = vmatpush1.msra.mxu0 %v5951_v55  ;;  %5179 = vmatpush3.msra.mxu1 %v6064_v11  ;;  %v9618_v55 = vld [vmem:[#allocation20_spill] sm:$0xff] }
 0x244   :  { %987 = vmatprep.subr.mxu0 %v5957_v56  ;;  %5180 = vmatprep.subr.mxu1 %v9603_v24 }
 0x245   :  { %988 = vmatpush1.msra.mxu0 %v5967_v58  ;;  %5181 = vmatpush3.msra.mxu1 %v6083_v14 }
 0x246   :  { %989 = vmatprep.subr.mxu0 %v5973_v59  ;;  %5182 = vmatprep.subr.mxu1 %v9603_v24  ;;  %v9619_v59 = vld [vmem:[#allocation25_spill] sm:$0xff] }
 0x247   :  { %990 = vmatpush1.msra.mxu0 %v5983_v61  ;;  %5183 = vmatpush3.msra.mxu1 %v6102_v17 }
 0x248   :  { %991 = vmatprep.subr.mxu0 %v5989_v62  ;;  %5184 = vmatprep.subr.mxu1 %v9603_v24 }
 0x249   :  { %992 = vmatpush1.msra.mxu0 %v5996_v63  ;;  %5185 = vmatpush3.msra.mxu1 %v6121_v20 }
 0x24a   :  { %993 = vmatprep.subr.mxu0 %v6002_v0  ;;  %5186 = vmatprep.subr.mxu1 %v9603_v24 }
 0x24b   :  { %994 = vmatpush1.msra.mxu0 %v6014_v2  ;;  %5187 = vmatpush3.msra.mxu1 %v6140_v23 }
 0x24c   :  { %995 = vmatprep.subr.mxu0 %v6021_v3  ;;  %5188 = vmatprep.subr.mxu1 %v9603_v24 }
 0x24d   :  { %996 = vmatpush1.msra.mxu0 %v6032_v6  ;;  %5189 = vmatpush3.msra.mxu1 %v6159_v26 }
 0x24e   :  { %997 = vmatprep.subr.mxu0 %v6039_v7  ;;  %5190 = vmatprep.subr.mxu1 %v9603_v24 }
 0x24f   :  { %998 = vmatpush1.msra.mxu0 %v6051_v9  ;;  %5191 = vmatpush3.msra.mxu1 %v6173_v28  ;;  %v704_v28 = vadd.f32 %v6418_v40, %v6335_v54  ;;  %v6520_v54 = vld [vmem:[%s9342_s3 + $0x178] sm:$0xff]  ;;  %v6622_v40 = vld [vmem:[%s9342_s3 + $0xe0] sm:$0xff] }
 0x250   :  { %999 = vmatprep.subr.mxu0 %v6058_v10  ;;  %5192 = vmatprep.subr.mxu1 %v9603_v24 }
 0x251   :  { %1000 = vmatpush1.msra.mxu0 %v6070_v12  ;;  %5193 = vmatpush3.msra.mxu1 %v6182_v29 }
 0x252   :  { %1001 = vmatprep.subr.mxu0 %v6077_v13  ;;  %5194 = vmatprep.subr.mxu1 %v9603_v24 }
 0x253   :  { %1002 = vmatpush1.msra.mxu0 %v6089_v15  ;;  %5195 = vmatpush3.msra.mxu1 %v6190_v30 }
 0x254   :  { %1003 = vmatprep.subr.mxu0 %v6096_v16  ;;  %5196 = vmatprep.subr.mxu1 %v9603_v24 }
 0x255   :  { %1004 = vmatpush1.msra.mxu0 %v6108_v18  ;;  %5197 = vmatpush3.msra.mxu1 %v6200_v31  ;;  %v6509_v31 = vld [vmem:[%s9342_s3 + $0x170] sm:$0xff] }
 0x256   :  { %1005 = vmatprep.subr.mxu0 %v6115_v19  ;;  %5198 = vmatprep.subr.mxu1 %v9603_v24  ;;  %v922_v19 = vrot.slane %v6414_v22, 7  ;;  %9620 = vst [vmem:[#allocation13_spill] sm:$0xff] %v6509_v31  ;;  %v6615_v22 = vld [vmem:[%s9342_s3 + $0x100] sm:$0xff] }
 0x257   :  { %1006 = vmatpush1.msra.mxu0 %v6127_v21  ;;  %5199 = vmatpush3.msra.mxu1 %v9612_v46  ;;  %v6629_v46 = vld [vmem:[%s9342_s3 + $0xd8] sm:$0xff] }
 0x258   :  { %1007 = vmatprep.subr.mxu0 %v9613_v47  ;;  %5200 = vmatprep.subr.mxu1 %v9603_v24  ;;  %v6634_v47 = vld [vmem:[%s9342_s3 + $0xe8] sm:$0xff] }
 0x259   :  { %1008 = vmatpush1.msra.mxu0 %v9614_v49  ;;  %5201 = vmatpush3.msra.mxu1 %v9615_v50  ;;  %v6639_v49 = vld [vmem:[%s9342_s3 + $0xc8] sm:$0xff]  ;;  %v6646_v50 = vld [vmem:[%s9342_s3 + $0xc0] sm:$0xff] }
 0x25a   :  { %1009 = vmatprep.subr.mxu0 %v9616_v52  ;;  %5202 = vmatprep.subr.mxu1 %v9603_v24  ;;  %v6651_v52 = vld [vmem:[%s9342_s3 + $0xd0] sm:$0xff] }
 0x25b   :  { %1010 = vmatpush1.msra.mxu0 %v9617_v53  ;;  %1043 = vmatprep.mubr.f32.mxu0 %v9603_v24  ;;  %v6656_v53 = vld [vmem:[%s9342_s3 + $0xb0] sm:$0xff] }
 0x25c   :  { %5203 = vmatpush3.msra.mxu1 %v9618_v55  ;;  %5204 = vmatprep.mubr.msk.f32.mxu1 %vm5675_vm0, %v9603_v24  ;;  %v6663_v55 = vld [vmem:[%s9342_s3 + $0xa8] sm:$0xff] }
 0x25d   :  { %5207 = vmatprep.subr.mxu1 %v9603_v24  ;;  %1205 = vmatprep.subr.mxu0 %v6509_v31 }
 0x2fc   :  { %v819_v56 = vpop.f32.mrf.mxu0  ;;  %v890_v58 = vpop.f32.mrf.mxu1 }
 0x2fd   :  { %v820_v61 = vadd.f32 %v819_v56, %v9619_v59  ;;  %v891_v11 = vadd.f32 %v890_v58, %v6329_v38  ;;  %v6668_v56 = vld [vmem:[%s9342_s3 + $0xb8] sm:$0xff] }
 0x2fe   :  { %v821_v62 = vpop.f32.mrf.mxu0  ;;  %v5171_v63 = vpop.f32.mrf.mxu1  ;;  %v6675_v58 = vld [vmem:[%s9342_s3 + $0x98] sm:$0xff] }
 0x2ff   :  { %v895_v0 = vrot.slane %v820_v61, 6  ;;  %v822_v1 = vadd.f32 %v821_v62, %v6321_v4  ;;  %v915_v13 = vrot.slane %v891_v11, 6  ;;  %v6682_v61 = vld [vmem:[%s9342_s3 + $0x90] sm:$0xff]  ;;  %v6687_v62 = vld [vmem:[%s9342_s3 + $0xa0] sm:$0xff] }
 0x300   :  { %v6694_v63 = vld [vmem:[%s9342_s3 + $0x80] sm:$0xff] }
 0x301   :  { %v897_v2 = vadd.f32 %v895_v0, %v6319_v43  ;;  %v905_v5 = vrot.slane %v822_v1, 6  ;;  %v6701_v0 = vld [vmem:[%s9342_s3 + $0x78] sm:$0xff]  ;;  %v6706_v1 = vld [vmem:[%s9342_s3 + $0x88] sm:$0xff]  ;;  %v6763_v11 = vld [vmem:[%s9342_s3 + $0x40] sm:$0xff] }
 0x302   :  { %9622 = vst [vmem:[#allocation14_spill] sm:$0xff] %v6763_v11 }
 0x303   :  { %v4816_v3 = vmul.f32 -1.442695, %v897_v2  ;;  %v907_v6 = vadd.f32 %v905_v5, %v6326_v25  ;;  %v6713_v2 = vld [vmem:[%s9342_s3 + $0x68] sm:$0xff]  ;;  %v6725_v5 = vld [vmem:[%s9342_s3 + $0x70] sm:$0xff] }
 0x305   :  { %5446 = vpow2.f32 %v4816_v3  ;;  %v4817_v7 = vmul.f32 -1.442695, %v907_v6  ;;  %v6720_v3 = vld [vmem:[%s9342_s3 + $0x60] sm:$0xff]  ;;  %v6732_v6 = vld [vmem:[%s9342_s3 + $0x50] sm:$0xff] }
 0x307   :  { %5448 = vpow2.f32 %v4817_v7  ;;  %v6739_v7 = vld [vmem:[%s9342_s3 + $0x48] sm:$0xff] }
 0x312   :  { %v5447_v8 = vpop.eup %5446 }
 0x313   :  { %v901_v9 = vadd.f32 1.0, %v5447_v8  ;;  %v6744_v8 = vld [vmem:[%s9342_s3 + $0x58] sm:$0xff] }
 0x314   :  { %v5449_v10 = vpop.eup %5448 }
 0x315   :  { %5450 = vrcp.f32 %v901_v9  ;;  %v911_v12 = vadd.f32 1.0, %v5449_v10  ;;  %v6751_v9 = vld [vmem:[%s9342_s3 + $0x38] sm:$0xff]  ;;  %v6758_v10 = vld [vmem:[%s9342_s3 + $0x30] sm:$0xff] }
 0x316   :  { %9621 = vst [vmem:[#allocation18_spill] sm:$0xff] %v6758_v10 }
 0x317   :  { %5452 = vrcp.f32 %v911_v12  ;;  %v6770_v12 = vld [vmem:[%s9342_s3 + $0x20] sm:$0xff] }
 0x318   :  { %9623 = vst [vmem:[#allocation15_spill] sm:$0xff] %v6770_v12 }
 0x322   :  { %v5451_v14 = vpop.eup %5450 }
 0x323   :  { %v917_v15 = vmul.f32 %v5451_v14, %v915_v13  ;;  %v6777_v13 = vld [vmem:[%s9342_s3 + $0x18] sm:$0xff]  ;;  %v6782_v14 = vld [vmem:[%s9342_s3 + $0x28] sm:$0xff] }
 0x324   :  { %v5453_v17 = vpop.eup %5452  ;;  %9624 = vst [vmem:[#allocation19_spill] sm:$0xff] %v6777_v13  ;;  %9625 = vst [vmem:[#allocation16_spill] sm:$0xff] %v6782_v14 }
 0x325   :  { %v918_v16 = vadd.f32 %v917_v15, %v6332_v36  ;;  %v920_v18 = vsub.f32 1.0, %v5453_v17  ;;  %v924_v23 = vmul.f32 %v5453_v17, %v922_v19  ;;  %v6789_v15 = vld [vmem:[%s9342_s3 + $0x8] sm:$0xff]  ;;  %v6801_v17 = vld [vmem:[%s9342_s3 + $0x10] sm:$0xff] }
 0x326   :  { %9626 = vst [vmem:[#allocation17_spill] sm:$0xff] %v6789_v15  ;;  %9628 = vst [vmem:[#allocation26_spill] sm:$0xff] %v6801_v17 }
 0x327   :  { %5454 = vtanh.f32 %v918_v16  ;;  %v6796_v16 = vld [vmem:[%s9342_s3] sm:$0xff] }
 0x328   :  { %9627 = vst [vmem:[#allocation20_spill] sm:$0xff] %v6796_v16 }
 0x334   :  { %v5455_v20 = vpop.eup %5454 }
 0x335   :  { %v921_v21 = vmul.f32 %v5455_v20, %v920_v18 }
 0x337   :  { %v6495_v26 = vadd.f32 %v924_v23, %v921_v21 }
 0x339   :  { %926 = vst [vmem:[#allocation3] sm:$0x4] %v6495_v26  ;;  %v928_v29 = vrot.slane %v6495_v26, 2 }
 0x33b   :  { %v6501_v30 = vadd.f32 %v928_v29, %v704_v28  ;;  %1044 = vmatmul.mubr.f32.vlgmr.msra.gmra.mxu0 %v928_v29  ;;  %5205 = vmatmul.mubr.f32.vlgmr.msra.gmra.mxu1 %v928_v29 }
 0x33c   :  { %1269 = vmatprep.mubr.f32.mxu0 %v9603_v24  ;;  %5239 = vmatprep.mubr.msk.f32.mxu1 %vm5675_vm0, %v9603_v24 }
 0x33d   :  { %1206 = vmatpush1.msra.mxu0 %v6515_v32  ;;  %5208 = vmatpush3.msra.mxu1 %v6520_v54 }
 0x33e   :  { %1207 = vmatprep.subr.mxu0 %v6527_v42  ;;  %5209 = vmatprep.subr.mxu1 %v9603_v24 }
 0x33f   :  { %1208 = vmatpush1.msra.mxu0 %v6534_v39  ;;  %5210 = vmatpush3.msra.mxu1 %v6539_v34 }
 0x340   :  { %1209 = vmatprep.subr.mxu0 %v6546_v41  ;;  %5211 = vmatprep.subr.mxu1 %v9603_v24 }
 0x341   :  { %1210 = vmatpush1.msra.mxu0 %v6553_v45  ;;  %5212 = vmatpush3.msra.mxu1 %v6558_v33 }
 0x342   :  { %1211 = vmatprep.subr.mxu0 %v6565_v27  ;;  %5213 = vmatprep.subr.mxu1 %v9603_v24 }
 0x343   :  { %1212 = vmatpush1.msra.mxu0 %v6572_v44  ;;  %5214 = vmatpush3.msra.mxu1 %v6577_v35 }
 0x344   :  { %1213 = vmatprep.subr.mxu0 %v6584_v57  ;;  %5215 = vmatprep.subr.mxu1 %v9603_v24 }
 0x345   :  { %1214 = vmatpush1.msra.mxu0 %v6591_v37  ;;  %5216 = vmatpush3.msra.mxu1 %v6596_v60 }
 0x346   :  { %1215 = vmatprep.subr.mxu0 %v6603_v48  ;;  %5217 = vmatprep.subr.mxu1 %v9603_v24 }
 0x347   :  { %1216 = vmatpush1.msra.mxu0 %v6610_v51  ;;  %5218 = vmatpush3.msra.mxu1 %v6615_v22 }
 0x348   :  { %1217 = vmatprep.subr.mxu0 %v6622_v40  ;;  %5219 = vmatprep.subr.mxu1 %v9603_v24 }
 0x349   :  { %1218 = vmatpush1.msra.mxu0 %v6629_v46  ;;  %5220 = vmatpush3.msra.mxu1 %v6634_v47 }
 0x34a   :  { %1219 = vmatprep.subr.mxu0 %v6639_v49  ;;  %5221 = vmatprep.subr.mxu1 %v9603_v24 }
 0x34b   :  { %1220 = vmatpush1.msra.mxu0 %v6646_v50  ;;  %5222 = vmatpush3.msra.mxu1 %v6651_v52 }
 0x34c   :  { %1221 = vmatprep.subr.mxu0 %v6656_v53  ;;  %5223 = vmatprep.subr.mxu1 %v9603_v24 }
 0x34d   :  { %1222 = vmatpush1.msra.mxu0 %v6663_v55  ;;  %5224 = vmatpush3.msra.mxu1 %v6668_v56 }
 0x34e   :  { %1223 = vmatprep.subr.mxu0 %v6675_v58  ;;  %5225 = vmatprep.subr.mxu1 %v9603_v24 }
 0x34f   :  { %1224 = vmatpush1.msra.mxu0 %v6682_v61  ;;  %5226 = vmatpush3.msra.mxu1 %v6687_v62 }
 0x350   :  { %1225 = vmatprep.subr.mxu0 %v6694_v63  ;;  %5227 = vmatprep.subr.mxu1 %v9603_v24 }
 0x351   :  { %1226 = vmatpush1.msra.mxu0 %v6701_v0  ;;  %5228 = vmatpush3.msra.mxu1 %v6706_v1 }
 0x352   :  { %1227 = vmatprep.subr.mxu0 %v6713_v2  ;;  %5229 = vmatprep.subr.mxu1 %v9603_v24 }
 0x353   :  { %1228 = vmatpush1.msra.mxu0 %v6720_v3  ;;  %5230 = vmatpush3.msra.mxu1 %v6725_v5 }
 0x354   :  { %1229 = vmatprep.subr.mxu0 %v6732_v6  ;;  %5231 = vmatprep.subr.mxu1 %v9603_v24 }
 0x355   :  { %1230 = vmatpush1.msra.mxu0 %v6739_v7  ;;  %5232 = vmatpush3.msra.mxu1 %v6744_v8 }
 0x356   :  { %1231 = vmatprep.subr.mxu0 %v6751_v9  ;;  %5233 = vmatprep.subr.mxu1 %v9603_v24 }
 0x357   :  { %1232 = vmatpush1.msra.mxu0 %v6758_v10  ;;  %5234 = vmatpush3.msra.mxu1 %v6763_v11 }
 0x358   :  { %1233 = vmatprep.subr.mxu0 %v6770_v12  ;;  %5235 = vmatprep.subr.mxu1 %v9603_v24 }
 0x359   :  { %1234 = vmatpush1.msra.mxu0 %v6777_v13  ;;  %5236 = vmatpush3.msra.mxu1 %v6782_v14 }
 0x35a   :  { %1235 = vmatprep.subr.mxu0 %v6789_v15  ;;  %5237 = vmatprep.subr.mxu1 %v9603_v24 }
 0x35b   :  { %1236 = vmatpush1.msra.mxu0 %v6796_v16  ;;  %5238 = vmatpush3.msra.mxu1 %v6801_v17 }
 0x35c   :  { %1431 = vmatprep.subr.mxu0 %v6509_v31  ;;  %5242 = vmatprep.subr.mxu1 %v9603_v24 }
 0x3fb   :  { %v1045_v18 = vpop.f32.mrf.mxu0  ;;  %v1116_v19 = vpop.f32.mrf.mxu1 }
 0x3fc   :  { %v1046_v20 = vadd.f32 %v1045_v18, %v9619_v59  ;;  %v1117_v18 = vadd.f32 %v1116_v19, %v6329_v38  ;;  %v9633_v19 = vld [vmem:[#allocation16_spill] sm:$0xff] }
 0x3fd   :  { %v1047_v21 = vpop.f32.mrf.mxu0  ;;  %v5206_v23 = vpop.f32.mrf.mxu1 }
 0x3fe   :  { %v1121_v28 = vrot.slane %v1046_v20, 5  ;;  %v1048_v29 = vadd.f32 %v1047_v21, %v6321_v4  ;;  %v1141_v23 = vrot.slane %v1117_v18, 5  ;;  %v9635_v18 = vld [vmem:[#allocation20_spill] sm:$0xff] }
 0x400   :  { %v1123_v15 = vadd.f32 %v1121_v28, %v6319_v43  ;;  %v1131_v13 = vrot.slane %v1048_v29, 5  ;;  %v9634_v29 = vld [vmem:[#allocation17_spill] sm:$0xff] }
 0x402   :  { %v4818_v14 = vmul.f32 -1.442695, %v1123_v15  ;;  %v1133_v17 = vadd.f32 %v1131_v13, %v6326_v25  ;;  %v1148_v13 = vrot.slane %v6495_v26, 7  ;;  %v9629_v26 = vld [vmem:[#allocation18_spill] sm:$0xff] }
 0x404   :  { %5456 = vpow2.f32 %v4818_v14  ;;  %v4819_v16 = vmul.f32 -1.442695, %v1133_v17 }
 0x406   :  { %5458 = vpow2.f32 %v4819_v16 }
 0x411   :  { %v5457_v31 = vpop.eup %5456 }
 0x412   :  { %v1127_v12 = vadd.f32 1.0, %v5457_v31 }
 0x413   :  { %v5459_v11 = vpop.eup %5458 }
 0x414   :  { %5460 = vrcp.f32 %v1127_v12  ;;  %v1137_v59 = vadd.f32 1.0, %v5459_v11  ;;  %v9632_v12 = vld [vmem:[#allocation19_spill] sm:$0xff] }
 0x416   :  { %5462 = vrcp.f32 %v1137_v59 }
 0x421   :  { %v5461_v20 = vpop.eup %5460 }
 0x422   :  { %v1143_v10 = vmul.f32 %v5461_v20, %v1141_v23  ;;  %v9636_v23 = vld [vmem:[#allocation26_spill] sm:$0xff]  ;;  %v9637_v20 = vld [vmem:[#allocation13_spill] sm:$0xff] }
 0x423   :  { %v5463_v15 = vpop.eup %5462 }
 0x424   :  { %v1144_v21 = vadd.f32 %v1143_v10, %v6332_v36  ;;  %v1146_v14 = vsub.f32 1.0, %v5463_v15  ;;  %v1150_v28 = vmul.f32 %v5463_v15, %v1148_v13  ;;  %v9631_v10 = vld [vmem:[#allocation15_spill] sm:$0xff] }
 0x426   :  { %5464 = vtanh.f32 %v1144_v21 }
 0x433   :  { %v5465_v17 = vpop.eup %5464 }
 0x434   :  { %v1147_v16 = vmul.f32 %v5465_v17, %v1146_v14  ;;  %v9638_v14 = vld [vmem:[#allocation25_spill] sm:$0xff] }
 0x436   :  { %v6818_v31 = vadd.f32 %v1150_v28, %v1147_v16 }
 0x438   :  { %1152 = vst [vmem:[#allocation3] sm:$0x8] %v6818_v31  ;;  %v1154_v11 = vrot.slane %v6818_v31, 3 }
 0x43a   :  { %1270 = vmatmul.mubr.f32.vlgmr.msra.gmra.mxu0 %v1154_v11  ;;  %5240 = vmatmul.mubr.f32.vlgmr.msra.gmra.mxu1 %v1154_v11  ;;  %v6823_v59 = vadd.f32 %v1154_v11, %v6501_v30  ;;  %v9630_v30 = vld [vmem:[#allocation14_spill] sm:$0xff] }
 0x43b   :  { %1432 = vmatpush1.msra.mxu0 %v6515_v32  ;;  %5243 = vmatpush3.msra.mxu1 %v6520_v54 }
 0x43c   :  { %1433 = vmatprep.subr.mxu0 %v6527_v42  ;;  %5244 = vmatprep.subr.mxu1 %v9603_v24 }
 0x43d   :  { %1434 = vmatpush1.msra.mxu0 %v6534_v39  ;;  %5245 = vmatpush3.msra.mxu1 %v6539_v34 }
 0x43e   :  { %1435 = vmatprep.subr.mxu0 %v6546_v41  ;;  %5246 = vmatprep.subr.mxu1 %v9603_v24 }
 0x43f   :  { %1436 = vmatpush1.msra.mxu0 %v6553_v45  ;;  %5247 = vmatpush3.msra.mxu1 %v6558_v33 }
 0x440   :  { %1437 = vmatprep.subr.mxu0 %v6565_v27  ;;  %5248 = vmatprep.subr.mxu1 %v9603_v24 }
 0x441   :  { %1438 = vmatpush1.msra.mxu0 %v6572_v44  ;;  %5249 = vmatpush3.msra.mxu1 %v6577_v35 }
 0x442   :  { %1439 = vmatprep.subr.mxu0 %v6584_v57  ;;  %5250 = vmatprep.subr.mxu1 %v9603_v24 }
 0x443   :  { %1440 = vmatpush1.msra.mxu0 %v6591_v37  ;;  %5251 = vmatpush3.msra.mxu1 %v6596_v60 }
 0x444   :  { %1441 = vmatprep.subr.mxu0 %v6603_v48  ;;  %5252 = vmatprep.subr.mxu1 %v9603_v24 }
 0x445   :  { %1442 = vmatpush1.msra.mxu0 %v6610_v51  ;;  %5253 = vmatpush3.msra.mxu1 %v6615_v22 }
 0x446   :  { %1443 = vmatprep.subr.mxu0 %v6622_v40  ;;  %5254 = vmatprep.subr.mxu1 %v9603_v24 }
 0x447   :  { %1444 = vmatpush1.msra.mxu0 %v6629_v46  ;;  %5255 = vmatpush3.msra.mxu1 %v6634_v47 }
 0x448   :  { %1445 = vmatprep.subr.mxu0 %v6639_v49  ;;  %5256 = vmatprep.subr.mxu1 %v9603_v24 }
 0x449   :  { %1446 = vmatpush1.msra.mxu0 %v6646_v50  ;;  %5257 = vmatpush3.msra.mxu1 %v6651_v52 }
 0x44a   :  { %1447 = vmatprep.subr.mxu0 %v6656_v53  ;;  %5258 = vmatprep.subr.mxu1 %v9603_v24 }
 0x44b   :  { %1448 = vmatpush1.msra.mxu0 %v6663_v55  ;;  %5259 = vmatpush3.msra.mxu1 %v6668_v56 }
 0x44c   :  { %1449 = vmatprep.subr.mxu0 %v6675_v58  ;;  %5260 = vmatprep.subr.mxu1 %v9603_v24 }
 0x44d   :  { %1450 = vmatpush1.msra.mxu0 %v6682_v61  ;;  %5261 = vmatpush3.msra.mxu1 %v6687_v62 }
 0x44e   :  { %1451 = vmatprep.subr.mxu0 %v6694_v63  ;;  %5262 = vmatprep.subr.mxu1 %v9603_v24 }
 0x44f   :  { %1452 = vmatpush1.msra.mxu0 %v6701_v0  ;;  %5263 = vmatpush3.msra.mxu1 %v6706_v1 }
 0x450   :  { %1453 = vmatprep.subr.mxu0 %v6713_v2  ;;  %5264 = vmatprep.subr.mxu1 %v9603_v24 }
 0x451   :  { %1454 = vmatpush1.msra.mxu0 %v6720_v3  ;;  %5265 = vmatpush3.msra.mxu1 %v6725_v5 }
 0x452   :  { %1455 = vmatprep.subr.mxu0 %v6732_v6  ;;  %5266 = vmatprep.subr.mxu1 %v9603_v24 }
 0x453   :  { %1456 = vmatpush1.msra.mxu0 %v6739_v7  ;;  %5267 = vmatpush3.msra.mxu1 %v6744_v8 }
 0x454   :  { %1457 = vmatprep.subr.mxu0 %v6751_v9  ;;  %5268 = vmatprep.subr.mxu1 %v9603_v24 }
 0x455   :  { %1458 = vmatpush1.msra.mxu0 %v9629_v26  ;;  %5269 = vmatpush3.msra.mxu1 %v9630_v30 }
 0x456   :  { %1459 = vmatprep.subr.mxu0 %v9631_v10  ;;  %5270 = vmatprep.subr.mxu1 %v9603_v24 }
 0x457   :  { %1460 = vmatpush1.msra.mxu0 %v9632_v12  ;;  %5271 = vmatpush3.msra.mxu1 %v9633_v19 }
 0x458   :  { %1461 = vmatprep.subr.mxu0 %v9634_v29  ;;  %5272 = vmatprep.subr.mxu1 %v9603_v24 }
 0x459   :  { %1462 = vmatpush1.msra.mxu0 %v9635_v18  ;;  %1495 = vmatprep.mubr.f32.mxu0 %v9603_v24 }
 0x45a   :  { %5273 = vmatpush3.msra.mxu1 %v9636_v23  ;;  %5274 = vmatprep.mubr.msk.f32.mxu1 %vm5675_vm0, %v9603_v24 }
 0x45b   :  { %1657 = vmatprep.subr.mxu0 %v9637_v20  ;;  %5277 = vmatprep.subr.mxu1 %v9603_v24 }
 0x4fa   :  { %v1271_v21 = vpop.f32.mrf.mxu0  ;;  %v1342_v15 = vpop.f32.mrf.mxu1 }
 0x4fb   :  { %v1272_v13 = vadd.f32 %v1271_v21, %v9638_v14  ;;  %v1343_v21 = vadd.f32 %v1342_v15, %v6329_v38  ;;  %v9642_v15 = vld [vmem:[#allocation19_spill] sm:$0xff] }
 0x4fc   :  { %v1273_v17 = vpop.f32.mrf.mxu0  ;;  %v5241_v16 = vpop.f32.mrf.mxu1 }
 0x4fd   :  { %v1347_v28 = vrot.slane %v1272_v13, 4  ;;  %v1274_v11 = vadd.f32 %v1273_v17, %v6321_v4  ;;  %v1367_v16 = vrot.slane %v1343_v21, 4  ;;  %v9645_v21 = vld [vmem:[#allocation20_spill] sm:$0xff] }
 0x4ff   :  { %v1349_v18 = vadd.f32 %v1347_v28, %v6319_v43  ;;  %v1357_v23 = vrot.slane %v1274_v11, 4  ;;  %v9644_v11 = vld [vmem:[#allocation17_spill] sm:$0xff] }
 0x501   :  { %v4820_v29 = vmul.f32 -1.442695, %v1349_v18  ;;  %v1359_v19 = vadd.f32 %v1357_v23, %v6326_v25  ;;  %v1374_v23 = vrot.slane %v6818_v31, 7  ;;  %v9639_v31 = vld [vmem:[#allocation18_spill] sm:$0xff] }
 0x503   :  { %5466 = vpow2.f32 %v4820_v29  ;;  %v4821_v12 = vmul.f32 -1.442695, %v1359_v19 }
 0x505   :  { %5468 = vpow2.f32 %v4821_v12 }
 0x510   :  { %v5467_v20 = vpop.eup %5466 }
 0x511   :  { %v1353_v10 = vadd.f32 1.0, %v5467_v20 }
 0x512   :  { %v5469_v30 = vpop.eup %5468 }
 0x513   :  { %5470 = vrcp.f32 %v1353_v10  ;;  %v1363_v14 = vadd.f32 1.0, %v5469_v30 }
 0x515   :  { %5472 = vrcp.f32 %v1363_v14  ;;  %v9643_v14 = vld [vmem:[#allocation16_spill] sm:$0xff] }
 0x520   :  { %v5471_v13 = vpop.eup %5470 }
 0x521   :  { %v1369_v26 = vmul.f32 %v5471_v13, %v1367_v16  ;;  %v9646_v16 = vld [vmem:[#allocation26_spill] sm:$0xff]  ;;  %v9647_v13 = vld [vmem:[#allocation13_spill] sm:$0xff] }
 0x522   :  { %v5473_v18 = vpop.eup %5472 }
 0x523   :  { %v1370_v17 = vadd.f32 %v1369_v26, %v6332_v36  ;;  %v1372_v29 = vsub.f32 1.0, %v5473_v18  ;;  %v1376_v28 = vmul.f32 %v5473_v18, %v1374_v23  ;;  %v9641_v26 = vld [vmem:[#allocation15_spill] sm:$0xff] }
 0x525   :  { %5474 = vtanh.f32 %v1370_v17 }
 0x532   :  { %v5475_v19 = vpop.eup %5474 }
 0x533   :  { %v1373_v12 = vmul.f32 %v5475_v19, %v1372_v29  ;;  %v9648_v29 = vld [vmem:[#allocation25_spill] sm:$0xff] }
 0x535   :  { %v6899_v20 = vadd.f32 %v1376_v28, %v1373_v12 }
 0x537   :  { %1378 = vst [vmem:[#allocation3] sm:$0x10] %v6899_v20  ;;  %v1380_v30 = vrot.slane %v6899_v20, 4 }
 0x539   :  { %1496 = vmatmul.mubr.f32.vlgmr.msra.gmra.mxu0 %v1380_v30  ;;  %5275 = vmatmul.mubr.f32.vlgmr.msra.gmra.mxu1 %v1380_v30  ;;  %v6904_v10 = vadd.f32 %v1380_v30, %v6823_v59  ;;  %v9640_v59 = vld [vmem:[#allocation14_spill] sm:$0xff] }
 0x53a   :  { %1658 = vmatpush1.msra.mxu0 %v6515_v32  ;;  %5278 = vmatpush3.msra.mxu1 %v6520_v54 }
 0x53b   :  { %1659 = vmatprep.subr.mxu0 %v6527_v42  ;;  %5279 = vmatprep.subr.mxu1 %v9603_v24 }
 0x53c   :  { %1660 = vmatpush1.msra.mxu0 %v6534_v39  ;;  %5280 = vmatpush3.msra.mxu1 %v6539_v34 }
 0x53d   :  { %1661 = vmatprep.subr.mxu0 %v6546_v41  ;;  %5281 = vmatprep.subr.mxu1 %v9603_v24 }
 0x53e   :  { %1662 = vmatpush1.msra.mxu0 %v6553_v45  ;;  %5282 = vmatpush3.msra.mxu1 %v6558_v33 }
 0x53f   :  { %1663 = vmatprep.subr.mxu0 %v6565_v27  ;;  %5283 = vmatprep.subr.mxu1 %v9603_v24 }
 0x540   :  { %1664 = vmatpush1.msra.mxu0 %v6572_v44  ;;  %5284 = vmatpush3.msra.mxu1 %v6577_v35 }
 0x541   :  { %1665 = vmatprep.subr.mxu0 %v6584_v57  ;;  %5285 = vmatprep.subr.mxu1 %v9603_v24 }
 0x542   :  { %1666 = vmatpush1.msra.mxu0 %v6591_v37  ;;  %5286 = vmatpush3.msra.mxu1 %v6596_v60 }
 0x543   :  { %1667 = vmatprep.subr.mxu0 %v6603_v48  ;;  %5287 = vmatprep.subr.mxu1 %v9603_v24 }
 0x544   :  { %1668 = vmatpush1.msra.mxu0 %v6610_v51  ;;  %5288 = vmatpush3.msra.mxu1 %v6615_v22 }
 0x545   :  { %1669 = vmatprep.subr.mxu0 %v6622_v40  ;;  %5289 = vmatprep.subr.mxu1 %v9603_v24 }
 0x546   :  { %1670 = vmatpush1.msra.mxu0 %v6629_v46  ;;  %5290 = vmatpush3.msra.mxu1 %v6634_v47 }
 0x547   :  { %1671 = vmatprep.subr.mxu0 %v6639_v49  ;;  %5291 = vmatprep.subr.mxu1 %v9603_v24 }
 0x548   :  { %1672 = vmatpush1.msra.mxu0 %v6646_v50  ;;  %5292 = vmatpush3.msra.mxu1 %v6651_v52 }
 0x549   :  { %1673 = vmatprep.subr.mxu0 %v6656_v53  ;;  %5293 = vmatprep.subr.mxu1 %v9603_v24 }
 0x54a   :  { %1674 = vmatpush1.msra.mxu0 %v6663_v55  ;;  %5294 = vmatpush3.msra.mxu1 %v6668_v56 }
 0x54b   :  { %1675 = vmatprep.subr.mxu0 %v6675_v58  ;;  %5295 = vmatprep.subr.mxu1 %v9603_v24 }
 0x54c   :  { %1676 = vmatpush1.msra.mxu0 %v6682_v61  ;;  %5296 = vmatpush3.msra.mxu1 %v6687_v62 }
 0x54d   :  { %1677 = vmatprep.subr.mxu0 %v6694_v63  ;;  %5297 = vmatprep.subr.mxu1 %v9603_v24 }
 0x54e   :  { %1678 = vmatpush1.msra.mxu0 %v6701_v0  ;;  %5298 = vmatpush3.msra.mxu1 %v6706_v1 }
 0x54f   :  { %1679 = vmatprep.subr.mxu0 %v6713_v2  ;;  %5299 = vmatprep.subr.mxu1 %v9603_v24 }
 0x550   :  { %1680 = vmatpush1.msra.mxu0 %v6720_v3  ;;  %5300 = vmatpush3.msra.mxu1 %v6725_v5 }
 0x551   :  { %1681 = vmatprep.subr.mxu0 %v6732_v6  ;;  %5301 = vmatprep.subr.mxu1 %v9603_v24 }
 0x552   :  { %1682 = vmatpush1.msra.mxu0 %v6739_v7  ;;  %5302 = vmatpush3.msra.mxu1 %v6744_v8 }
 0x553   :  { %1683 = vmatprep.subr.mxu0 %v6751_v9  ;;  %5303 = vmatprep.subr.mxu1 %v9603_v24 }
 0x554   :  { %1684 = vmatpush1.msra.mxu0 %v9639_v31  ;;  %5304 = vmatpush3.msra.mxu1 %v9640_v59 }
 0x555   :  { %1685 = vmatprep.subr.mxu0 %v9641_v26  ;;  %5305 = vmatprep.subr.mxu1 %v9603_v24 }
 0x556   :  { %1686 = vmatpush1.msra.mxu0 %v9642_v15  ;;  %5306 = vmatpush3.msra.mxu1 %v9643_v14 }
 0x557   :  { %1687 = vmatprep.subr.mxu0 %v9644_v11  ;;  %5307 = vmatprep.subr.mxu1 %v9603_v24 }
 0x558   :  { %1688 = vmatpush1.msra.mxu0 %v9645_v21  ;;  %1721 = vmatprep.mubr.f32.mxu0 %v9603_v24 }
 0x559   :  { %5308 = vmatpush3.msra.mxu1 %v9646_v16  ;;  %5309 = vmatprep.mubr.msk.f32.mxu1 %vm5675_vm0, %v9603_v24 }
 0x55a   :  { %1883 = vmatprep.subr.mxu0 %v9647_v13  ;;  %5312 = vmatprep.subr.mxu1 %v9603_v24 }
 0x5f9   :  { %v1497_v17 = vpop.f32.mrf.mxu0  ;;  %v1568_v18 = vpop.f32.mrf.mxu1 }
 0x5fa   :  { %v1498_v23 = vadd.f32 %v1497_v17, %v9648_v29  ;;  %v1569_v17 = vadd.f32 %v1568_v18, %v6329_v38  ;;  %v7091_v18 = vld [vmem:[%s9344_s5 + $0x2c0] sm:$0xff] }
 0x5fb   :  { %v1499_v19 = vpop.f32.mrf.mxu0  ;;  %v5276_v12 = vpop.f32.mrf.mxu1 }
 0x5fc   :  { %v1573_v28 = vrot.slane %v1498_v23, 3  ;;  %v1500_v30 = vadd.f32 %v1499_v19, %v6321_v4  ;;  %v1593_v12 = vrot.slane %v1569_v17, 3  ;;  %v7110_v17 = vld [vmem:[%s9344_s5 + $0x290] sm:$0xff] }
 0x5fe   :  { %v1575_v21 = vadd.f32 %v1573_v28, %v6319_v43  ;;  %v1583_v16 = vrot.slane %v1500_v30, 3 }
 0x600   :  { %v4822_v11 = vmul.f32 -1.442695, %v1575_v21  ;;  %v1585_v14 = vadd.f32 %v1583_v16, %v6326_v25  ;;  %v1600_v16 = vrot.slane %v6899_v20, 7  ;;  %v7073_v20 = vld [vmem:[%s9344_s5 + $0x2f0] sm:$0xff] }
 0x602   :  { %5476 = vpow2.f32 %v4822_v11  ;;  %v4823_v15 = vmul.f32 -1.442695, %v1585_v14 }
 0x604   :  { %5478 = vpow2.f32 %v4823_v15 }
 0x60f   :  { %v5477_v13 = vpop.eup %5476 }
 0x610   :  { %v1579_v26 = vadd.f32 1.0, %v5477_v13  ;;  %v7103_v13 = vld [vmem:[%s9344_s5 + $0x2c8] sm:$0xff] }
 0x611   :  { %v5479_v59 = vpop.eup %5478 }
 0x612   :  { %5480 = vrcp.f32 %v1579_v26  ;;  %v1589_v29 = vadd.f32 1.0, %v5479_v59 }
 0x614   :  { %5482 = vrcp.f32 %v1589_v29  ;;  %v7098_v29 = vld [vmem:[%s9344_s5 + $0x2b8] sm:$0xff] }
 0x61f   :  { %v5481_v23 = vpop.eup %5480 }
 0x620   :  { %v1595_v31 = vmul.f32 %v5481_v23, %v1593_v12  ;;  %v7117_v12 = vld [vmem:[%s9344_s5 + $0x288] sm:$0xff]  ;;  %v7122_v23 = vld [vmem:[%s9344_s5 + $0x298] sm:$0xff] }
 0x621   :  { %v5483_v21 = vpop.eup %5482 }
 0x622   :  { %v1596_v19 = vadd.f32 %v1595_v31, %v6332_v36  ;;  %v1598_v11 = vsub.f32 1.0, %v5483_v21  ;;  %v1602_v28 = vmul.f32 %v5483_v21, %v1600_v16  ;;  %v7084_v31 = vld [vmem:[%s9344_s5 + $0x2f8] sm:$0xff]  ;;  %v7148_v16 = vld [vmem:[%s9344_s5 + $0x230] sm:$0xff] }
 0x623   :  { %v7136_v21 = vld [vmem:[%s9344_s5 + $0x258] sm:$0xff] }
 0x624   :  { %5484 = vtanh.f32 %v1596_v19  ;;  %v7129_v19 = vld [vmem:[%s9344_s5 + $0x260] sm:$0xff] }
 0x631   :  { %v5485_v14 = vpop.eup %5484 }
 0x632   :  { %v1599_v15 = vmul.f32 %v5485_v14, %v1598_v11  ;;  %v7141_v11 = vld [vmem:[%s9344_s5 + $0x268] sm:$0xff] }
 0x633   :  { %v7155_v14 = vld [vmem:[%s9344_s5 + $0x228] sm:$0xff] }
 0x634   :  { %v6980_v30 = vadd.f32 %v1602_v28, %v1599_v15  ;;  %v7160_v15 = vld [vmem:[%s9344_s5 + $0x238] sm:$0xff]  ;;  %v7167_v28 = vld [vmem:[%s9344_s5 + $0x200] sm:$0xff] }
 0x636   :  { %1604 = vst [vmem:[#allocation3] sm:$0x20] %v6980_v30  ;;  %v1606_v59 = vrot.slane %v6980_v30, 5 }
 0x638   :  { %1722 = vmatmul.mubr.f32.vlgmr.msra.gmra.mxu0 %v1606_v59  ;;  %5310 = vmatmul.mubr.f32.vlgmr.msra.gmra.mxu1 %v1606_v59  ;;  %v6985_v26 = vadd.f32 %v1606_v59, %v6904_v10  ;;  %v7079_v10 = vld [vmem:[%s9344_s5 + $0x2e8] sm:$0xff] }
 0x639   :  { %1884 = vmatpush1.msra.mxu0 %v6515_v32  ;;  %5313 = vmatpush3.msra.mxu1 %v6520_v54  ;;  %v9649_v32 = vld [vmem:[#allocation18_spill] sm:$0xff]  ;;  %9658 = vst [vmem:[#allocation13_spill] sm:$0xff] %v7079_v10 }
 0x63a   :  { %1885 = vmatprep.subr.mxu0 %v6527_v42  ;;  %5314 = vmatprep.subr.mxu1 %v9603_v24  ;;  %v9650_v54 = vld [vmem:[#allocation14_spill] sm:$0xff]  ;;  %v9651_v42 = vld [vmem:[#allocation15_spill] sm:$0xff]  ;;  %9659 = vst [vmem:[#allocation18_spill] sm:$0xff] %v7084_v31 }
 0x63b   :  { %1886 = vmatpush1.msra.mxu0 %v6534_v39  ;;  %5315 = vmatpush3.msra.mxu1 %v6539_v34  ;;  %v9652_v39 = vld [vmem:[#allocation19_spill] sm:$0xff]  ;;  %v9653_v34 = vld [vmem:[#allocation16_spill] sm:$0xff]  ;;  %9660 = vst [vmem:[#allocation14_spill] sm:$0xff] %v7098_v29  ;;  %9661 = vst [vmem:[#allocation15_spill] sm:$0xff] %v7117_v12 }
 0x63c   :  { %1887 = vmatprep.subr.mxu0 %v6546_v41  ;;  %5316 = vmatprep.subr.mxu1 %v9603_v24  ;;  %v9654_v41 = vld [vmem:[#allocation17_spill] sm:$0xff]  ;;  %9662 = vst [vmem:[#allocation19_spill] sm:$0xff] %v7136_v21  ;;  %9663 = vst [vmem:[#allocation16_spill] sm:$0xff] %v7155_v14  ;;  %v7179_v59 = vld [vmem:[%s9344_s5 + $0x208] sm:$0xff] }
 0x63d   :  { %1888 = vmatpush1.msra.mxu0 %v6553_v45  ;;  %5317 = vmatpush3.msra.mxu1 %v6558_v33  ;;  %v9655_v45 = vld [vmem:[#allocation20_spill] sm:$0xff]  ;;  %v9656_v33 = vld [vmem:[#allocation26_spill] sm:$0xff] }
 0x63e   :  { %1889 = vmatprep.subr.mxu0 %v6565_v27  ;;  %5318 = vmatprep.subr.mxu1 %v9603_v24 }
 0x63f   :  { %1890 = vmatpush1.msra.mxu0 %v6572_v44  ;;  %5319 = vmatpush3.msra.mxu1 %v6577_v35  ;;  %v9657_v35 = vld [vmem:[#allocation25_spill] sm:$0xff] }
 0x640   :  { %1891 = vmatprep.subr.mxu0 %v6584_v57  ;;  %5320 = vmatprep.subr.mxu1 %v9603_v24 }
 0x641   :  { %1892 = vmatpush1.msra.mxu0 %v6591_v37  ;;  %5321 = vmatpush3.msra.mxu1 %v6596_v60 }
 0x642   :  { %1893 = vmatprep.subr.mxu0 %v6603_v48  ;;  %5322 = vmatprep.subr.mxu1 %v9603_v24 }
 0x643   :  { %1894 = vmatpush1.msra.mxu0 %v6610_v51  ;;  %5323 = vmatpush3.msra.mxu1 %v6615_v22 }
 0x644   :  { %1895 = vmatprep.subr.mxu0 %v6622_v40  ;;  %5324 = vmatprep.subr.mxu1 %v9603_v24 }
 0x645   :  { %1896 = vmatpush1.msra.mxu0 %v6629_v46  ;;  %5325 = vmatpush3.msra.mxu1 %v6634_v47 }
 0x646   :  { %1897 = vmatprep.subr.mxu0 %v6639_v49  ;;  %5326 = vmatprep.subr.mxu1 %v9603_v24 }
 0x647   :  { %1898 = vmatpush1.msra.mxu0 %v6646_v50  ;;  %5327 = vmatpush3.msra.mxu1 %v6651_v52 }
 0x648   :  { %1899 = vmatprep.subr.mxu0 %v6656_v53  ;;  %5328 = vmatprep.subr.mxu1 %v9603_v24 }
 0x649   :  { %1900 = vmatpush1.msra.mxu0 %v6663_v55  ;;  %5329 = vmatpush3.msra.mxu1 %v6668_v56 }
 0x64a   :  { %1901 = vmatprep.subr.mxu0 %v6675_v58  ;;  %5330 = vmatprep.subr.mxu1 %v9603_v24 }
 0x64b   :  { %1902 = vmatpush1.msra.mxu0 %v6682_v61  ;;  %5331 = vmatpush3.msra.mxu1 %v6687_v62 }
 0x64c   :  { %1903 = vmatprep.subr.mxu0 %v6694_v63  ;;  %5332 = vmatprep.subr.mxu1 %v9603_v24 }
 0x64d   :  { %1904 = vmatpush1.msra.mxu0 %v6701_v0  ;;  %5333 = vmatpush3.msra.mxu1 %v6706_v1 }
 0x64e   :  { %1905 = vmatprep.subr.mxu0 %v6713_v2  ;;  %5334 = vmatprep.subr.mxu1 %v9603_v24  ;;  %v1826_v2 = vrot.slane %v6980_v30, 7  ;;  %v7174_v30 = vld [vmem:[%s9344_s5 + $0x1f8] sm:$0xff] }
 0x64f   :  { %1906 = vmatpush1.msra.mxu0 %v6720_v3  ;;  %5335 = vmatpush3.msra.mxu1 %v6725_v5  ;;  %9664 = vst [vmem:[#allocation17_spill] sm:$0xff] %v7174_v30 }
 0x650   :  { %1907 = vmatprep.subr.mxu0 %v6732_v6  ;;  %5336 = vmatprep.subr.mxu1 %v9603_v24 }
 0x651   :  { %1908 = vmatpush1.msra.mxu0 %v6739_v7  ;;  %5337 = vmatpush3.msra.mxu1 %v6744_v8 }
 0x652   :  { %1909 = vmatprep.subr.mxu0 %v6751_v9  ;;  %5338 = vmatprep.subr.mxu1 %v9603_v24 }
 0x653   :  { %1910 = vmatpush1.msra.mxu0 %v9649_v32  ;;  %5339 = vmatpush3.msra.mxu1 %v9650_v54  ;;  %v7193_v32 = vld [vmem:[%s9344_s5 + $0x1c8] sm:$0xff]  ;;  %v7198_v54 = vld [vmem:[%s9344_s5 + $0x1d8] sm:$0xff] }
 0x654   :  { %1911 = vmatprep.subr.mxu0 %v9651_v42  ;;  %5340 = vmatprep.subr.mxu1 %v9603_v24  ;;  %9665 = vst [vmem:[#allocation20_spill] sm:$0xff] %v7193_v32  ;;  %v7203_v42 = vld [vmem:[%s9344_s5 + $0x1a0] sm:$0xff] }
 0x655   :  { %1912 = vmatpush1.msra.mxu0 %v9652_v39  ;;  %5341 = vmatpush3.msra.mxu1 %v9653_v34  ;;  %v7210_v39 = vld [vmem:[%s9344_s5 + $0x198] sm:$0xff]  ;;  %v7215_v34 = vld [vmem:[%s9344_s5 + $0x1a8] sm:$0xff] }
 0x656   :  { %1913 = vmatprep.subr.mxu0 %v9654_v41  ;;  %5342 = vmatprep.subr.mxu1 %v9603_v24  ;;  %9666 = vst [vmem:[#allocation26_spill] sm:$0xff] %v7210_v39  ;;  %v7220_v41 = vld [vmem:[%s9344_s5 + $0x170] sm:$0xff] }
 0x657   :  { %1914 = vmatpush1.msra.mxu0 %v9655_v45  ;;  %1947 = vmatprep.mubr.f32.mxu0 %v9603_v24  ;;  %v7227_v45 = vld [vmem:[%s9344_s5 + $0x168] sm:$0xff] }
 0x658   :  { %5343 = vmatpush3.msra.mxu1 %v9656_v33  ;;  %5344 = vmatprep.mubr.msk.f32.mxu1 %vm5675_vm0, %v9603_v24  ;;  %9667 = vst [vmem:[#allocation25_spill] sm:$0xff] %v7227_v45  ;;  %v7232_v33 = vld [vmem:[%s9344_s5 + $0x178] sm:$0xff] }
 0x659   :  { %5347 = vmatprep.subr.mxu1 %v9603_v24  ;;  %2129 = vmatprep.subr.mxu0 %v7073_v20 }
 0x6f8   :  { %v1723_v27 = vpop.f32.mrf.mxu0  ;;  %v1794_v44 = vpop.f32.mrf.mxu1 }
 0x6f9   :  { %v1724_v57 = vadd.f32 %v1723_v27, %v9657_v35  ;;  %v1795_v55 = vadd.f32 %v1794_v44, %v6329_v38  ;;  %v7239_v27 = vld [vmem:[%s9344_s5 + $0x140] sm:$0xff]  ;;  %v7246_v44 = vld [vmem:[%s9344_s5 + $0x138] sm:$0xff] }
 0x6fa   :  { %v1725_v37 = vpop.f32.mrf.mxu0  ;;  %v5311_v60 = vpop.f32.mrf.mxu1  ;;  %9668 = vst [vmem:[#allocation27_spill] sm:$0xff] %v7246_v44 }
 0x6fb   :  { %v1799_v48 = vrot.slane %v1724_v57, 2  ;;  %v1726_v51 = vadd.f32 %v1725_v37, %v6321_v4  ;;  %v1819_v58 = vrot.slane %v1795_v55, 2  ;;  %v7251_v57 = vld [vmem:[%s9344_s5 + $0x148] sm:$0xff]  ;;  %v7258_v37 = vld [vmem:[%s9344_s5 + $0x110] sm:$0xff] }
 0x6fc   :  { %v7265_v60 = vld [vmem:[%s9344_s5 + $0x108] sm:$0xff]  ;;  %v7334_v55 = vld [vmem:[%s9344_s5 + $0x50] sm:$0xff] }
 0x6fd   :  { %v1801_v22 = vadd.f32 %v1799_v48, %v6319_v43  ;;  %v1809_v46 = vrot.slane %v1726_v51, 2  ;;  %9669 = vst [vmem:[#allocation28_spill] sm:$0xff] %v7265_v60  ;;  %v7270_v48 = vld [vmem:[%s9344_s5 + $0x118] sm:$0xff]  ;;  %v7277_v51 = vld [vmem:[%s9344_s5 + $0xe0] sm:$0xff]  ;;  %9679 = vst [vmem:[#allocation38_spill] sm:$0xff] %v7334_v55 }
 0x6fe   :  { %9670 = vst [vmem:[#allocation29_spill] sm:$0xff] %v7277_v51 }
 0x6ff   :  { %v4824_v40 = vmul.f32 -1.442695, %v1801_v22  ;;  %v1811_v47 = vadd.f32 %v1809_v46, %v6326_v25  ;;  %v7284_v22 = vld [vmem:[%s9344_s5 + $0xd8] sm:$0xff]  ;;  %v7296_v46 = vld [vmem:[%s9344_s5 + $0xb0] sm:$0xff] }
 0x700   :  { %9671 = vst [vmem:[#allocation30_spill] sm:$0xff] %v7284_v22  ;;  %9673 = vst [vmem:[#allocation32_spill] sm:$0xff] %v7296_v46 }
 0x701   :  { %5486 = vpow2.f32 %v4824_v40  ;;  %v4825_v49 = vmul.f32 -1.442695, %v1811_v47  ;;  %v7289_v40 = vld [vmem:[%s9344_s5 + $0xe8] sm:$0xff] }
 0x702   :  { %9672 = vst [vmem:[#allocation31_spill] sm:$0xff] %v7289_v40  ;;  %v7303_v47 = vld [vmem:[%s9344_s5 + $0xa8] sm:$0xff] }
 0x703   :  { %5488 = vpow2.f32 %v4825_v49  ;;  %9674 = vst [vmem:[#allocation33_spill] sm:$0xff] %v7303_v47  ;;  %v7308_v49 = vld [vmem:[%s9344_s5 + $0xb8] sm:$0xff] }
 0x704   :  { %9675 = vst [vmem:[#allocation34_spill] sm:$0xff] %v7308_v49 }
 0x70e   :  { %v5487_v50 = vpop.eup %5486 }
 0x70f   :  { %v1805_v52 = vadd.f32 1.0, %v5487_v50  ;;  %v7315_v50 = vld [vmem:[%s9344_s5 + $0x80] sm:$0xff] }
 0x710   :  { %v5489_v53 = vpop.eup %5488  ;;  %9676 = vst [vmem:[#allocation35_spill] sm:$0xff] %v7315_v50 }
 0x711   :  { %5490 = vrcp.f32 %v1805_v52  ;;  %v1815_v56 = vadd.f32 1.0, %v5489_v53  ;;  %v7322_v52 = vld [vmem:[%s9344_s5 + $0x78] sm:$0xff]  ;;  %v7327_v53 = vld [vmem:[%s9344_s5 + $0x88] sm:$0xff] }
 0x712   :  { %9677 = vst [vmem:[#allocation36_spill] sm:$0xff] %v7322_v52  ;;  %9678 = vst [vmem:[#allocation37_spill] sm:$0xff] %v7327_v53 }
 0x713   :  { %5492 = vrcp.f32 %v1815_v56  ;;  %v7341_v56 = vld [vmem:[%s9344_s5 + $0x48] sm:$0xff] }
 0x714   :  { %9680 = vst [vmem:[#allocation39_spill] sm:$0xff] %v7341_v56 }
 0x71e   :  { %v5491_v61 = vpop.eup %5490 }
 0x71f   :  { %v1821_v62 = vmul.f32 %v5491_v61, %v1819_v58  ;;  %v7346_v58 = vld [vmem:[%s9344_s5 + $0x58] sm:$0xff]  ;;  %v7353_v61 = vld [vmem:[%s9344_s5 + $0x20] sm:$0xff] }
 0x720   :  { %v5493_v0 = vpop.eup %5492  ;;  %9681 = vst [vmem:[#allocation40_spill] sm:$0xff] %v7346_v58  ;;  %9682 = vst [vmem:[#allocation41_spill] sm:$0xff] %v7353_v61 }
 0x721   :  { %v1822_v63 = vadd.f32 %v1821_v62, %v6332_v36  ;;  %v1824_v1 = vsub.f32 1.0, %v5493_v0  ;;  %v1828_v6 = vmul.f32 %v5493_v0, %v1826_v2  ;;  %v7360_v62 = vld [vmem:[%s9344_s5 + $0x18] sm:$0xff] }
 0x722   :  { %9683 = vst [vmem:[#allocation42_spill] sm:$0xff] %v7360_v62 }
 0x723   :  { %5494 = vtanh.f32 %v1822_v63  ;;  %v7365_v63 = vld [vmem:[%s9344_s5 + $0x28] sm:$0xff] }
 0x724   :  { %9684 = vst [vmem:[#allocation43_spill] sm:$0xff] %v7365_v63 }
 0x730   :  { %v5495_v3 = vpop.eup %5494 }
 0x731   :  { %v1825_v5 = vmul.f32 %v5495_v3, %v1824_v1 }
 0x733   :  { %v7060_v7 = vadd.f32 %v1828_v6, %v1825_v5 }
 0x735   :  { %1830 = vst [vmem:[#allocation3] sm:$0x40] %v7060_v7  ;;  %v1832_v8 = vrot.slane %v7060_v7, 6 }
 0x737   :  { %1948 = vmatmul.mubr.f32.vlgmr.msra.gmra.mxu0 %v1832_v8  ;;  %5345 = vmatmul.mubr.f32.vlgmr.msra.gmra.mxu1 %v1832_v8  ;;  %v7065_v9 = vadd.f32 %v1832_v8, %v6985_v26  ;;  %v7186_v26 = vld [vmem:[%s9344_s5 + $0x1d0] sm:$0xff] }
 0x738   :  { %2193 = vmatprep.mubr.f32.mxu0 %v9603_v24  ;;  %5379 = vmatprep.mubr.msk.f32.mxu1 %vm5675_vm0, %v9603_v24 }
 0x739   :  { %2130 = vmatpush1.msra.mxu0 %v7079_v10  ;;  %5348 = vmatpush3.msra.mxu1 %v7084_v31 }
 0x73a   :  { %2131 = vmatprep.subr.mxu0 %v7091_v18  ;;  %5349 = vmatprep.subr.mxu1 %v9603_v24 }
 0x73b   :  { %2132 = vmatpush1.msra.mxu0 %v7098_v29  ;;  %5350 = vmatpush3.msra.mxu1 %v7103_v13 }
 0x73c   :  { %2133 = vmatprep.subr.mxu0 %v7110_v17  ;;  %5351 = vmatprep.subr.mxu1 %v9603_v24 }
 0x73d   :  { %2134 = vmatpush1.msra.mxu0 %v7117_v12  ;;  %5352 = vmatpush3.msra.mxu1 %v7122_v23 }
 0x73e   :  { %2135 = vmatprep.subr.mxu0 %v7129_v19  ;;  %5353 = vmatprep.subr.mxu1 %v9603_v24 }
 0x73f   :  { %2136 = vmatpush1.msra.mxu0 %v7136_v21  ;;  %5354 = vmatpush3.msra.mxu1 %v7141_v11 }
 0x740   :  { %2137 = vmatprep.subr.mxu0 %v7148_v16  ;;  %5355 = vmatprep.subr.mxu1 %v9603_v24 }
 0x741   :  { %2138 = vmatpush1.msra.mxu0 %v7155_v14  ;;  %5356 = vmatpush3.msra.mxu1 %v7160_v15 }
 0x742   :  { %2139 = vmatprep.subr.mxu0 %v7167_v28  ;;  %5357 = vmatprep.subr.mxu1 %v9603_v24 }
 0x743   :  { %2140 = vmatpush1.msra.mxu0 %v7174_v30  ;;  %5358 = vmatpush3.msra.mxu1 %v7179_v59 }
 0x744   :  { %2141 = vmatprep.subr.mxu0 %v7186_v26  ;;  %5359 = vmatprep.subr.mxu1 %v9603_v24 }
 0x745   :  { %2142 = vmatpush1.msra.mxu0 %v7193_v32  ;;  %5360 = vmatpush3.msra.mxu1 %v7198_v54 }
 0x746   :  { %2143 = vmatprep.subr.mxu0 %v7203_v42  ;;  %5361 = vmatprep.subr.mxu1 %v9603_v24 }
 0x747   :  { %2144 = vmatpush1.msra.mxu0 %v7210_v39  ;;  %5362 = vmatpush3.msra.mxu1 %v7215_v34 }
 0x748   :  { %2145 = vmatprep.subr.mxu0 %v7220_v41  ;;  %5363 = vmatprep.subr.mxu1 %v9603_v24 }
 0x749   :  { %2146 = vmatpush1.msra.mxu0 %v7227_v45  ;;  %5364 = vmatpush3.msra.mxu1 %v7232_v33 }
 0x74a   :  { %2147 = vmatprep.subr.mxu0 %v7239_v27  ;;  %5365 = vmatprep.subr.mxu1 %v9603_v24 }
 0x74b   :  { %2148 = vmatpush1.msra.mxu0 %v7246_v44  ;;  %5366 = vmatpush3.msra.mxu1 %v7251_v57 }
 0x74c   :  { %2149 = vmatprep.subr.mxu0 %v7258_v37  ;;  %5367 = vmatprep.subr.mxu1 %v9603_v24 }
 0x74d   :  { %2150 = vmatpush1.msra.mxu0 %v7265_v60  ;;  %5368 = vmatpush3.msra.mxu1 %v7270_v48 }
 0x74e   :  { %2151 = vmatprep.subr.mxu0 %v7277_v51  ;;  %5369 = vmatprep.subr.mxu1 %v9603_v24 }
 0x74f   :  { %2152 = vmatpush1.msra.mxu0 %v7284_v22  ;;  %5370 = vmatpush3.msra.mxu1 %v7289_v40 }
 0x750   :  { %2153 = vmatprep.subr.mxu0 %v7296_v46  ;;  %5371 = vmatprep.subr.mxu1 %v9603_v24 }
 0x751   :  { %2154 = vmatpush1.msra.mxu0 %v7303_v47  ;;  %5372 = vmatpush3.msra.mxu1 %v7308_v49 }
 0x752   :  { %2155 = vmatprep.subr.mxu0 %v7315_v50  ;;  %5373 = vmatprep.subr.mxu1 %v9603_v24 }
 0x753   :  { %2156 = vmatpush1.msra.mxu0 %v7322_v52  ;;  %5374 = vmatpush3.msra.mxu1 %v7327_v53 }
 0x754   :  { %2157 = vmatprep.subr.mxu0 %v7334_v55  ;;  %5375 = vmatprep.subr.mxu1 %v9603_v24 }
 0x755   :  { %2158 = vmatpush1.msra.mxu0 %v7341_v56  ;;  %5376 = vmatpush3.msra.mxu1 %v7346_v58 }
 0x756   :  { %2159 = vmatprep.subr.mxu0 %v7353_v61  ;;  %5377 = vmatprep.subr.mxu1 %v9603_v24 }
 0x757   :  { %2160 = vmatpush1.msra.mxu0 %v7360_v62  ;;  %5378 = vmatpush3.msra.mxu1 %v7365_v63 }
 0x758   :  { %2497 = vmatprep.subr.mxu1 %v7079_v10 }
 0x7f7   :  { %v1949_v0 = vpop.f32.mrf.mxu0  ;;  %v2020_v1 = vpop.f32.mrf.mxu1 }
 0x7f8   :  { %v1950_v2 = vadd.f32 %v1949_v0, %v9657_v35  ;;  %v2021_v35 = vadd.f32 %v2020_v1, %v6329_v38  ;;  %v7422_v1 = vld [vmem:[%s9344_s5 + $0x278] sm:$0xff] }
 0x7f9   :  { %v1951_v3 = vpop.f32.mrf.mxu0  ;;  %v5346_v5 = vpop.f32.mrf.mxu1 }
 0x7fa   :  { %v2025_v6 = vrot.slane %v1950_v2, 1  ;;  %v1952_v8 = vadd.f32 %v1951_v3, %v6321_v4  ;;  %v2045_v5 = vrot.slane %v2021_v35, 1  ;;  %v7427_v3 = vld [vmem:[%s9344_s5 + $0x2b0] sm:$0xff]  ;;  %v7446_v35 = vld [vmem:[%s9344_s5 + $0x280] sm:$0xff] }
 0x7fb   :  { %9687 = vst [vmem:[#allocation46_spill] sm:$0xff] %v7427_v3  ;;  %9688 = vst [vmem:[#allocation47_spill] sm:$0xff] %v7446_v35 }
 0x7fc   :  { %v2027_v55 = vadd.f32 %v2025_v6, %v6319_v43  ;;  %v2035_v58 = vrot.slane %v1952_v8, 1  ;;  %v7434_v6 = vld [vmem:[%s9344_s5 + $0x270] sm:$0xff]  ;;  %v7441_v8 = vld [vmem:[%s9344_s5 + $0x248] sm:$0xff] }
 0x7fe   :  { %v4826_v61 = vmul.f32 -1.442695, %v2027_v55  ;;  %v2037_v50 = vadd.f32 %v2035_v58, %v6326_v25  ;;  %v2052_v25 = vrot.slane %v7060_v7, 7  ;;  %v7391_v7 = vld [vmem:[%s9344_s5 + $0x2d8] sm:$0xff] }
 0x7ff   :  { %9685 = vst [vmem:[#allocation44_spill] sm:$0xff] %v7391_v7  ;;  %2426 = vmatprep.subr.mxu0 %v7391_v7 }
 0x800   :  { %5496 = vpow2.f32 %v4826_v61  ;;  %v4827_v53 = vmul.f32 -1.442695, %v2037_v50 }
 0x802   :  { %5498 = vpow2.f32 %v4827_v53 }
 0x80d   :  { %v5497_v63 = vpop.eup %5496 }
 0x80e   :  { %v2031_v10 = vadd.f32 1.0, %v5497_v63  ;;  %v7415_v63 = vld [vmem:[%s9344_s5 + $0x2a0] sm:$0xff] }
 0x80f   :  { %v5499_v46 = vpop.eup %5498 }
 0x810   :  { %5500 = vrcp.f32 %v2031_v10  ;;  %v2041_v0 = vadd.f32 1.0, %v5499_v46  ;;  %v7397_v46 = vld [vmem:[%s9344_s5 + $0x2d0] sm:$0xff] }
 0x812   :  { %5502 = vrcp.f32 %v2041_v0  ;;  %v7453_v0 = vld [vmem:[%s9344_s5 + $0x240] sm:$0xff] }
 0x81d   :  { %v5501_v2 = vpop.eup %5500 }
 0x81e   :  { %v2047_v49 = vmul.f32 %v5501_v2, %v2045_v5  ;;  %v7460_v5 = vld [vmem:[%s9344_s5 + $0x218] sm:$0xff]  ;;  %v7465_v2 = vld [vmem:[%s9344_s5 + $0x250] sm:$0xff] }
 0x81f   :  { %v5503_v43 = vpop.eup %5502  ;;  %9689 = vst [vmem:[#allocation48_spill] sm:$0xff] %v7465_v2 }
 0x820   :  { %v2048_v4 = vadd.f32 %v2047_v49, %v6332_v36  ;;  %v2050_v55 = vsub.f32 1.0, %v5503_v43  ;;  %v2054_v58 = vmul.f32 %v5503_v43, %v2052_v25  ;;  %v7408_v49 = vld [vmem:[%s9344_s5 + $0x2e0] sm:$0xff]  ;;  %v7479_v43 = vld [vmem:[%s9344_s5 + $0x1e8] sm:$0xff] }
 0x821   :  { %9686 = vst [vmem:[#allocation45_spill] sm:$0xff] %v7408_v49  ;;  %v7491_v25 = vld [vmem:[%s9344_s5 + $0x1e0] sm:$0xff] }
 0x822   :  { %5504 = vtanh.f32 %v2048_v4  ;;  %v7472_v4 = vld [vmem:[%s9344_s5 + $0x210] sm:$0xff] }
 0x82f   :  { %v5505_v50 = vpop.eup %5504 }
 0x830   :  { %v2051_v53 = vmul.f32 %v5505_v50, %v2050_v55  ;;  %v7484_v55 = vld [vmem:[%s9344_s5 + $0x220] sm:$0xff]  ;;  %v7498_v50 = vld [vmem:[%s9344_s5 + $0x1b8] sm:$0xff] }
 0x831   :  { %9690 = vst [vmem:[#allocation49_spill] sm:$0xff] %v7484_v55 }
 0x832   :  { %v7381_v61 = vadd.f32 %v2054_v58, %v2051_v53  ;;  %v7503_v53 = vld [vmem:[%s9344_s5 + $0x1f0] sm:$0xff] }
 0x833   :  { %9691 = vst [vmem:[#allocation50_spill] sm:$0xff] %v7503_v53  ;;  %v7510_v58 = vld [vmem:[%s9344_s5 + $0x1b0] sm:$0xff] }
 0x834   :  { %2056 = vst [vmem:[#allocation3] sm:$0x80] %v7381_v61  ;;  %v2058_v38 = vrot.slane %v7381_v61, 7 }
 0x836   :  { %2194 = vmatmul.mubr.f32.vlgmr.msra.gmra.mxu0 %v2058_v38  ;;  %5380 = vmatmul.mubr.f32.vlgmr.msra.gmra.mxu1 %v2058_v38  ;;  %v2060_v10 = vadd.f32 %v2058_v38, %v7065_v9  ;;  %v7403_v9 = vld [vmem:[%s9344_s5 + $0x2a8] sm:$0xff] }
 0x837   :  { %2490 = vmatprep.mubr.f32.mxu0 %v9603_v24  ;;  %2561 = vmatprep.mubr.f32.mxu1 %v9603_v24  ;;  %v7517_v38 = vld [vmem:[%s9344_s5 + $0x188] sm:$0xff] }
 0x838   :  { %v2061_v36 = vmul.f32 0.125, %v2060_v10  ;;  %2427 = vmatpush1.msra.mxu0 %v7397_v46  ;;  %2498 = vmatpush1.msra.mxu1 %v7408_v49  ;;  %v7522_v10 = vld [vmem:[%s9344_s5 + $0x1c0] sm:$0xff] }
 0x839   :  { %2428 = vmatprep.subr.mxu0 %v7403_v9  ;;  %2499 = vmatprep.subr.mxu1 %v7098_v29  ;;  %9692 = vst [vmem:[#allocation51_spill] sm:$0xff] %v7522_v10  ;;  %v7670_v29 = vld [vmem:[%s9344_s5 + $0x40] sm:$0xff] }
 0x83a   :  { %2062 = vst [vmem:[#allocation7] sm:$0x1] %v2061_v36  ;;  %2429 = vmatpush1.msra.mxu0 %v7415_v63  ;;  %2500 = vmatpush1.msra.mxu1 %v7427_v3  ;;  %v7529_v36 = vld [vmem:[%s9344_s5 + $0x180] sm:$0xff]  ;;  %v7651_v3 = vld [vmem:[%s9344_s5 + $0x70] sm:$0xff]  ;;  %9711 = vst [vmem:[#allocation70_spill] sm:$0xff] %v7670_v29 }
 0x83b   :  { %2430 = vmatprep.subr.mxu0 %v7422_v1  ;;  %2501 = vmatprep.subr.mxu1 %v7117_v12  ;;  %v7632_v12 = vld [vmem:[%s9344_s5 + $0xa0] sm:$0xff]  ;;  %9708 = vst [vmem:[#allocation67_spill] sm:$0xff] %v7651_v3 }
 0x83c   :  { %2431 = vmatpush1.msra.mxu0 %v7434_v6  ;;  %2502 = vmatpush1.msra.mxu1 %v7446_v35  ;;  %v7613_v35 = vld [vmem:[%s9344_s5 + $0xd0] sm:$0xff]  ;;  %9705 = vst [vmem:[#allocation64_spill] sm:$0xff] %v7632_v12  ;;  %v7697_v49 = vld [vmem:[%s9345_s6] sm:$0x3f] }
 0x83d   :  { %2432 = vmatprep.subr.mxu0 %v7441_v8  ;;  %2503 = vmatprep.subr.mxu1 %v7136_v21  ;;  %v7594_v21 = vld [vmem:[%s9344_s5 + $0x100] sm:$0xff]  ;;  %9702 = vst [vmem:[#allocation61_spill] sm:$0xff] %v7613_v35 }
 0x83e   :  { %2433 = vmatpush1.msra.mxu0 %v7453_v0  ;;  %2504 = vmatpush1.msra.mxu1 %v7465_v2  ;;  %v7582_v2 = vld [vmem:[%s9344_s5 + $0xf0] sm:$0xff]  ;;  %9699 = vst [vmem:[#allocation58_spill] sm:$0xff] %v7594_v21 }
 0x83f   :  { %2434 = vmatprep.subr.mxu0 %v7460_v5  ;;  %2505 = vmatprep.subr.mxu1 %v7155_v14  ;;  %v7575_v14 = vld [vmem:[%s9344_s5 + $0x130] sm:$0xff]  ;;  %9697 = vst [vmem:[#allocation56_spill] sm:$0xff] %v7582_v2 }
 0x840   :  { %2435 = vmatpush1.msra.mxu0 %v7472_v4  ;;  %2506 = vmatpush1.msra.mxu1 %v7484_v55  ;;  %v7563_v55 = vld [vmem:[%s9344_s5 + $0x120] sm:$0xff]  ;;  %9696 = vst [vmem:[#allocation55_spill] sm:$0xff] %v7575_v14 }
 0x841   :  { %2436 = vmatprep.subr.mxu0 %v7479_v43  ;;  %2507 = vmatprep.subr.mxu1 %v7174_v30  ;;  %v7558_v30 = vld [vmem:[%s9344_s5 + $0x160] sm:$0xff] }
 0x842   :  { %2437 = vmatpush1.msra.mxu0 %v7491_v25  ;;  %2508 = vmatpush1.msra.mxu1 %v7503_v53  ;;  %v7541_v53 = vld [vmem:[%s9344_s5 + $0x190] sm:$0xff]  ;;  %9694 = vst [vmem:[#allocation53_spill] sm:$0xff] %v7558_v30 }
 0x843   :  { %2438 = vmatprep.subr.mxu0 %v7498_v50  ;;  %2509 = vmatprep.subr.mxu1 %v7193_v32  ;;  %v7536_v32 = vld [vmem:[%s9344_s5 + $0x158] sm:$0xff]  ;;  %9693 = vst [vmem:[#allocation52_spill] sm:$0xff] %v7541_v53 }
 0x844   :  { %2439 = vmatpush1.msra.mxu0 %v7510_v58  ;;  %2510 = vmatpush1.msra.mxu1 %v7522_v10  ;;  %v7546_v10 = vld [vmem:[%s9344_s5 + $0x150] sm:$0xff] }
 0x845   :  { %2440 = vmatprep.subr.mxu0 %v7517_v38  ;;  %2511 = vmatprep.subr.mxu1 %v7210_v39  ;;  %v7553_v39 = vld [vmem:[%s9344_s5 + $0x128] sm:$0xff] }
 0x846   :  { %2441 = vmatpush1.msra.mxu0 %v7529_v36  ;;  %2512 = vmatpush1.msra.mxu1 %v7541_v53  ;;  %v7570_v53 = vld [vmem:[%s9344_s5 + $0xf8] sm:$0xff] }
 0x847   :  { %2442 = vmatprep.subr.mxu0 %v7536_v32  ;;  %2513 = vmatprep.subr.mxu1 %v7227_v45  ;;  %9695 = vst [vmem:[#allocation54_spill] sm:$0xff] %v7570_v53  ;;  %v7589_v45 = vld [vmem:[%s9344_s5 + $0xc8] sm:$0xff] }
 0x848   :  { %2443 = vmatpush1.msra.mxu0 %v7546_v10  ;;  %2514 = vmatpush1.msra.mxu1 %v7558_v30  ;;  %9698 = vst [vmem:[#allocation57_spill] sm:$0xff] %v7589_v45  ;;  %v7601_v30 = vld [vmem:[%s9344_s5 + $0xc0] sm:$0xff] }
 0x849   :  { %2444 = vmatprep.subr.mxu0 %v7553_v39  ;;  %2515 = vmatprep.subr.mxu1 %v7246_v44  ;;  %9700 = vst [vmem:[#allocation59_spill] sm:$0xff] %v7601_v30  ;;  %v7608_v44 = vld [vmem:[%s9344_s5 + $0x98] sm:$0xff] }
 0x84a   :  { %2445 = vmatpush1.msra.mxu0 %v7563_v55  ;;  %2516 = vmatpush1.msra.mxu1 %v7575_v14  ;;  %9701 = vst [vmem:[#allocation60_spill] sm:$0xff] %v7608_v44  ;;  %v7620_v14 = vld [vmem:[%s9344_s5 + $0x90] sm:$0xff] }
 0x84b   :  { %2446 = vmatprep.subr.mxu0 %v7570_v53  ;;  %2517 = vmatprep.subr.mxu1 %v7265_v60  ;;  %9703 = vst [vmem:[#allocation62_spill] sm:$0xff] %v7620_v14  ;;  %v7627_v60 = vld [vmem:[%s9344_s5 + $0x68] sm:$0xff] }
 0x84c   :  { %2447 = vmatpush1.msra.mxu0 %v7582_v2  ;;  %2518 = vmatpush1.msra.mxu1 %v7594_v21  ;;  %9704 = vst [vmem:[#allocation63_spill] sm:$0xff] %v7627_v60  ;;  %v7639_v21 = vld [vmem:[%s9344_s5 + $0x60] sm:$0xff] }
 0x84d   :  { %2448 = vmatprep.subr.mxu0 %v7589_v45  ;;  %2519 = vmatprep.subr.mxu1 %v7284_v22  ;;  %9706 = vst [vmem:[#allocation65_spill] sm:$0xff] %v7639_v21  ;;  %v7646_v22 = vld [vmem:[%s9344_s5 + $0x38] sm:$0xff] }
 0x84e   :  { %2449 = vmatpush1.msra.mxu0 %v7601_v30  ;;  %2520 = vmatpush1.msra.mxu1 %v7613_v35  ;;  %9707 = vst [vmem:[#allocation66_spill] sm:$0xff] %v7646_v22  ;;  %v7658_v35 = vld [vmem:[%s9344_s5 + $0x30] sm:$0xff] }
 0x84f   :  { %2450 = vmatprep.subr.mxu0 %v7608_v44  ;;  %2521 = vmatprep.subr.mxu1 %v7303_v47  ;;  %9709 = vst [vmem:[#allocation68_spill] sm:$0xff] %v7658_v35  ;;  %v7665_v47 = vld [vmem:[%s9344_s5 + $0x8] sm:$0xff] }
 0x850   :  { %2451 = vmatpush1.msra.mxu0 %v7620_v14  ;;  %2522 = vmatpush1.msra.mxu1 %v7632_v12  ;;  %9710 = vst [vmem:[#allocation69_spill] sm:$0xff] %v7665_v47  ;;  %v7677_v12 = vld [vmem:[%s9344_s5] sm:$0xff] }
 0x851   :  { %2452 = vmatprep.subr.mxu0 %v7627_v60  ;;  %2523 = vmatprep.subr.mxu1 %v7322_v52  ;;  %9712 = vst [vmem:[#allocation71_spill] sm:$0xff] %v7677_v12  ;;  %v7684_v52 = vld [vmem:[%s9344_s5 + $0x10] sm:$0xff] }
 0x852   :  { %2453 = vmatpush1.msra.mxu0 %v7639_v21  ;;  %2524 = vmatpush1.msra.mxu1 %v7651_v3  ;;  %9713 = vst [vmem:[#allocation72_spill] sm:$0xff] %v7684_v52 }
 0x853   :  { %2454 = vmatprep.subr.mxu0 %v7646_v22  ;;  %2525 = vmatprep.subr.mxu1 %v7341_v56  ;;  %v9714_v56 = vld [vmem:[#allocation21_spill] sm:$0xff] }
 0x854   :  { %2455 = vmatpush1.msra.mxu0 %v7658_v35  ;;  %2526 = vmatpush1.msra.mxu1 %v7670_v29  ;;  %v2116_v3 = vsub.s32 3, %v9714_v56  ;;  %v2120_v29 = vsub.s32 4, %v9714_v56  ;;  %v2124_v2 = vsub.s32 5, %v9714_v56 }
 0x855   :  { %2456 = vmatprep.subr.mxu0 %v7665_v47  ;;  %2527 = vmatprep.subr.mxu1 %v7360_v62 }
 0x856   :  { %2457 = vmatpush1.msra.mxu0 %v7677_v12  ;;  %2528 = vmatpush1.msra.mxu1 %v7684_v52  ;;  %v7700_v47 = vrot.slane %v7697_v49, %v2116_v3  ;;  %v2064_v52 = vld [vmem:[%s9346_s7] sm:$0x7] }
 0x857   :  { %2568 = vmatprep.subr.mxu0 %v7084_v31  ;;  %2757 = vmatprep.subr.mxu1 %v7391_v7  ;;  %v7707_v7 = vrot.slane %v7697_v49, %v2120_v29  ;;  %v2278_v14 = vrot.slane %v2064_v52, 1  ;;  %v5676_v29 = vmov 1966171168  }
 0x858   :  { %9715 = vst [vmem:[#allocation21_spill] sm:$0xff] %v7700_v47  ;;  %v2296_v40 = vunpack.c.l.s4 %v5676_v29 }
 0x859   :  { %9716 = vst [vmem:[#allocation73_spill] sm:$0xff] %v7707_v7 }
 0x8f6   :  { %v2195_v62 = vpop.f32.mrf.mxu0  ;;  %v2266_v31 = vpop.f32.mrf.mxu1 }
 0x8f7   :  { %v2196_v12 = vadd.f32 %v2195_v62, %v7700_v47  ;;  %v7713_v62 = vrot.slane %v7697_v49, %v2124_v2 }
 0x8f8   :  { %v2197_v35 = vpop.f32.mrf.mxu0  ;;  %v5381_v22 = vpop.f32.mrf.mxu1 }
 0x8f9   :  { %v2270_v21 = vadd.f32 %v2196_v12, %v2064_v52  ;;  %v2198_v3 = vadd.f32 %v2197_v35, %v7707_v7  ;;  %v2297_v12 = vunpack.c.0.s8 %v2296_v40  ;;  %v2267_v22 = vadd.f32 %v2266_v31, %v7713_v62 }
 0x8fa   :  { %v2288_v35 = vrot.slane %v2064_v52, 2 }
 0x8fb   :  { %v4828_v60 = vmul.f32 -1.442695, %v2270_v21  ;;  %v2280_v44 = vadd.f32 %v2278_v14, %v2198_v3  ;;  %v2294_v14 = vcombine.high %v7381_v61, %v7381_v61  ;;  %v9723_v61 = vld [vmem:[#allocation59_spill] sm:$0xff] }
 0x8fd   :  { %5506 = vpow2.f32 %v4828_v60  ;;  %v4829_v30 = vmul.f32 -1.442695, %v2280_v44 }
 0x8ff   :  { %5508 = vpow2.f32 %v4829_v30  ;;  %v2300_v30 = vsub.s32 %v2297_v12, %v9714_v56  ;;  %v9722_v56 = vld [vmem:[#allocation34_spill] sm:$0xff]  ;;  %v9725_v12 = vld [vmem:[#allocation60_spill] sm:$0xff] }
 0x90a   :  { %v5507_v45 = vpop.eup %5506 }
 0x90b   :  { %v2274_v51 = vadd.f32 1.0, %v5507_v45 }
 0x90c   :  { %v5509_v53 = vpop.eup %5508 }
 0x90d   :  { %5510 = vrcp.f32 %v2274_v51  ;;  %v2284_v21 = vadd.f32 1.0, %v5509_v53  ;;  %v2301_v51 = vrot.slane %v2294_v14, %v2300_v30  ;;  %v9730_v14 = vld [vmem:[#allocation40_spill] sm:$0xff] }
 0x90f   :  { %5512 = vrcp.f32 %v2284_v21  ;;  %v2302_v3 = vcombine.high %v2301_v51, %v2301_v51  ;;  %v9726_v21 = vld [vmem:[#allocation37_spill] sm:$0xff]  ;;  %v9734_v51 = vld [vmem:[#allocation43_spill] sm:$0xff] }
 0x911   :  { %v2309_v29 = vrot.slane %v2302_v3, %v2300_v30  ;;  %v9731_v30 = vld [vmem:[#allocation65_spill] sm:$0xff]  ;;  %v9735_v3 = vld [vmem:[#allocation68_spill] sm:$0xff] }
 0x913   :  { %v2310_v40 = vcombine.high %v2309_v29, %v2309_v29  ;;  %v9736_v29 = vld [vmem:[#allocation41_spill] sm:$0xff] }
 0x91a   :  { %v5511_v60 = vpop.eup %5510 }
 0x91b   :  { %v2287_v45 = vmul.f32 %v5511_v60, %v2267_v22  ;;  %v9727_v22 = vld [vmem:[#allocation62_spill] sm:$0xff]  ;;  %v9729_v60 = vld [vmem:[#allocation63_spill] sm:$0xff] }
 0x91c   :  { %v5513_v2 = vpop.eup %5512 }
 0x91d   :  { %v2290_v44 = vadd.f32 %v2288_v35, %v2287_v45  ;;  %v2292_v7 = vsub.f32 1.0, %v5513_v2  ;;  %v2312_v31 = vmul.f32 %v5513_v2, %v2310_v40  ;;  %v9728_v35 = vld [vmem:[#allocation35_spill] sm:$0xff]  ;;  %v9732_v45 = vld [vmem:[#allocation38_spill] sm:$0xff]  ;;  %v9737_v2 = vld [vmem:[#allocation69_spill] sm:$0xff] }
 0x91e   :  { %v9738_v40 = vld [vmem:[#allocation13_spill] sm:$0xff] }
 0x91f   :  { %5514 = vtanh.f32 %v2290_v44  ;;  %v9733_v44 = vld [vmem:[#allocation66_spill] sm:$0xff] }
 0x92c   :  { %v5515_v53 = vpop.eup %5514 }
 0x92d   :  { %v2293_v47 = vmul.f32 %v5515_v53, %v2292_v7  ;;  %v9724_v7 = vld [vmem:[#allocation32_spill] sm:$0xff]  ;;  %v9739_v53 = vld [vmem:[#allocation45_spill] sm:$0xff] }
 0x92f   :  { %v7719_v52 = vadd.f32 %v2312_v31, %v2293_v47  ;;  %v9721_v47 = vld [vmem:[#allocation57_spill] sm:$0xff]  ;;  %v9740_v31 = vld [vmem:[#allocation71_spill] sm:$0xff] }
 0x931   :  { %2314 = vst [vmem:[#allocation2 + $0x7] sm:$0x1] %v7719_v52  ;;  %2491 = vmatmul.mubr.f32.vlgmr.msra.gmra.mxu0 %v7719_v52  ;;  %2562 = vmatmul.mubr.f32.vlgmr.msra.gmra.mxu1 %v7719_v52 }
 0x932   :  { %2569 = vmatpush1.msra.mxu0 %v7073_v20  ;;  %2632 = vmatprep.mubr.f32.mxu0 %v9603_v24  ;;  %v9717_v20 = vld [vmem:[#allocation54_spill] sm:$0xff] }
 0x933   :  { %2570 = vmatprep.subr.mxu0 %v7103_v13  ;;  %2758 = vmatpush1.msra.mxu1 %v7397_v46 }
 0x934   :  { %2571 = vmatpush1.msra.mxu0 %v7091_v18  ;;  %2759 = vmatprep.subr.mxu1 %v7403_v9  ;;  %v9718_v18 = vld [vmem:[#allocation31_spill] sm:$0xff] }
 0x935   :  { %2572 = vmatprep.subr.mxu0 %v7122_v23  ;;  %2760 = vmatpush1.msra.mxu1 %v7415_v63 }
 0x936   :  { %2573 = vmatpush1.msra.mxu0 %v7110_v17  ;;  %2761 = vmatprep.subr.mxu1 %v7422_v1  ;;  %v9719_v17 = vld [vmem:[#allocation56_spill] sm:$0xff] }
 0x937   :  { %2574 = vmatprep.subr.mxu0 %v7141_v11  ;;  %2762 = vmatpush1.msra.mxu1 %v7434_v6 }
 0x938   :  { %2575 = vmatpush1.msra.mxu0 %v7129_v19  ;;  %2763 = vmatprep.subr.mxu1 %v7441_v8  ;;  %v9720_v19 = vld [vmem:[#allocation29_spill] sm:$0xff] }
 0x939   :  { %2576 = vmatprep.subr.mxu0 %v7160_v15  ;;  %2764 = vmatpush1.msra.mxu1 %v7453_v0 }
 0x93a   :  { %2577 = vmatpush1.msra.mxu0 %v7148_v16  ;;  %2765 = vmatprep.subr.mxu1 %v7460_v5 }
 0x93b   :  { %2578 = vmatprep.subr.mxu0 %v7179_v59  ;;  %2766 = vmatpush1.msra.mxu1 %v7472_v4 }
 0x93c   :  { %2579 = vmatpush1.msra.mxu0 %v7167_v28  ;;  %2767 = vmatprep.subr.mxu1 %v7479_v43 }
 0x93d   :  { %2580 = vmatprep.subr.mxu0 %v7198_v54  ;;  %2768 = vmatpush1.msra.mxu1 %v7491_v25 }
 0x93e   :  { %2581 = vmatpush1.msra.mxu0 %v7186_v26  ;;  %2769 = vmatprep.subr.mxu1 %v7498_v50 }
 0x93f   :  { %2582 = vmatprep.subr.mxu0 %v7215_v34  ;;  %2770 = vmatpush1.msra.mxu1 %v7510_v58 }
 0x940   :  { %2583 = vmatpush1.msra.mxu0 %v7203_v42  ;;  %2771 = vmatprep.subr.mxu1 %v7517_v38 }
 0x941   :  { %2584 = vmatprep.subr.mxu0 %v7232_v33  ;;  %2772 = vmatpush1.msra.mxu1 %v7529_v36 }
 0x942   :  { %2585 = vmatpush1.msra.mxu0 %v7220_v41  ;;  %2773 = vmatprep.subr.mxu1 %v7536_v32 }
 0x943   :  { %2586 = vmatprep.subr.mxu0 %v7251_v57  ;;  %2774 = vmatpush1.msra.mxu1 %v7546_v10 }
 0x944   :  { %2587 = vmatpush1.msra.mxu0 %v7239_v27  ;;  %2775 = vmatprep.subr.mxu1 %v7553_v39 }
 0x945   :  { %2588 = vmatprep.subr.mxu0 %v7270_v48  ;;  %2776 = vmatpush1.msra.mxu1 %v7563_v55 }
 0x946   :  { %2589 = vmatpush1.msra.mxu0 %v7258_v37  ;;  %2777 = vmatprep.subr.mxu1 %v9717_v20 }
 0x947   :  { %2590 = vmatprep.subr.mxu0 %v9718_v18  ;;  %2778 = vmatpush1.msra.mxu1 %v9719_v17 }
 0x948   :  { %2591 = vmatpush1.msra.mxu0 %v9720_v19  ;;  %2779 = vmatprep.subr.mxu1 %v9721_v47 }
 0x949   :  { %2592 = vmatprep.subr.mxu0 %v9722_v56  ;;  %2780 = vmatpush1.msra.mxu1 %v9723_v61 }
 0x94a   :  { %2593 = vmatpush1.msra.mxu0 %v9724_v7  ;;  %2781 = vmatprep.subr.mxu1 %v9725_v12  ;;  %v9775_v12 = vld [vmem:[#allocation22_spill] sm:$0xff]  ;;  %v9776_v7 = vld [vmem:[#allocation73_spill] sm:$0xff] }
 0x94b   :  { %2594 = vmatprep.subr.mxu0 %v9726_v21  ;;  %2782 = vmatpush1.msra.mxu1 %v9727_v22 }
 0x94c   :  { %2595 = vmatpush1.msra.mxu0 %v9728_v35  ;;  %2783 = vmatprep.subr.mxu1 %v9729_v60 }
 0x94d   :  { %2596 = vmatprep.subr.mxu0 %v9730_v14  ;;  %2784 = vmatpush1.msra.mxu1 %v9731_v30  ;;  %v9741_v30 = vld [vmem:[#allocation14_spill] sm:$0xff]  ;;  %v9753_v14 = vld [vmem:[#allocation51_spill] sm:$0xff] }
 0x94e   :  { %2597 = vmatpush1.msra.mxu0 %v9732_v45  ;;  %2785 = vmatprep.subr.mxu1 %v9733_v44  ;;  %v9742_v44 = vld [vmem:[#allocation46_spill] sm:$0xff] }
 0x94f   :  { %2598 = vmatprep.subr.mxu0 %v9734_v51  ;;  %2786 = vmatpush1.msra.mxu1 %v9735_v3  ;;  %v9743_v3 = vld [vmem:[#allocation15_spill] sm:$0xff]  ;;  %v9751_v45 = vld [vmem:[#allocation50_spill] sm:$0xff] }
 0x950   :  { %2599 = vmatpush1.msra.mxu0 %v9736_v29  ;;  %2787 = vmatprep.subr.mxu1 %v9737_v2  ;;  %v9744_v29 = vld [vmem:[#allocation18_spill] sm:$0xff]  ;;  %v9745_v2 = vld [vmem:[#allocation47_spill] sm:$0xff] }
 0x951   :  { %2633 = vmatmul.mubr.f32.vlgmr.msra.gmra.mxu0 %v7719_v52  ;;  %2828 = vmatprep.subr.mxu0 %v9738_v40  ;;  %v9746_v51 = vld [vmem:[#allocation19_spill] sm:$0xff]  ;;  %v9747_v40 = vld [vmem:[#allocation48_spill] sm:$0xff] }
 0x952   :  { %2829 = vmatpush1.msra.mxu0 %v9739_v53  ;;  %2788 = vmatpush1.msra.mxu1 %v9740_v31  ;;  %v9748_v53 = vld [vmem:[#allocation16_spill] sm:$0xff]  ;;  %v9749_v31 = vld [vmem:[#allocation49_spill] sm:$0xff] }
 0x953   :  { %2830 = vmatprep.subr.mxu0 %v9741_v30  ;;  %2821 = vmatprep.mubr.f32.mxu1 %v9603_v24  ;;  %v9750_v30 = vld [vmem:[#allocation17_spill] sm:$0xff] }
 0x954   :  { %2831 = vmatpush1.msra.mxu0 %v9742_v44  ;;  %2892 = vmatprep.mubr.f32.mxu0 %v9603_v24  ;;  %v9752_v44 = vld [vmem:[#allocation20_spill] sm:$0xff] }
 0x955   :  { %2832 = vmatprep.subr.mxu0 %v9743_v3  ;;  %2899 = vmatprep.subr.mxu1 %v9744_v29  ;;  %v9754_v3 = vld [vmem:[#allocation26_spill] sm:$0xff]  ;;  %v9755_v29 = vld [vmem:[#allocation52_spill] sm:$0xff] }
 0x956   :  { %2833 = vmatpush1.msra.mxu0 %v9745_v2  ;;  %v9756_v2 = vld [vmem:[#allocation25_spill] sm:$0xff] }
 0x957   :  { %2834 = vmatprep.subr.mxu0 %v9746_v51  ;;  %v9757_v51 = vld [vmem:[#allocation53_spill] sm:$0xff] }
 0x958   :  { %2835 = vmatpush1.msra.mxu0 %v9747_v40  ;;  %v9758_v40 = vld [vmem:[#allocation27_spill] sm:$0xff] }
 0x959   :  { %2836 = vmatprep.subr.mxu0 %v9748_v53  ;;  %v9759_v53 = vld [vmem:[#allocation55_spill] sm:$0xff] }
 0x95a   :  { %2837 = vmatpush1.msra.mxu0 %v9749_v31  ;;  %v9760_v31 = vld [vmem:[#allocation28_spill] sm:$0xff] }
 0x95b   :  { %2838 = vmatprep.subr.mxu0 %v9750_v30  ;;  %v9761_v30 = vld [vmem:[#allocation58_spill] sm:$0xff] }
 0x95c   :  { %2839 = vmatpush1.msra.mxu0 %v9751_v45  ;;  %v9762_v45 = vld [vmem:[#allocation30_spill] sm:$0xff] }
 0x95d   :  { %2840 = vmatprep.subr.mxu0 %v9752_v44  ;;  %v9763_v44 = vld [vmem:[#allocation61_spill] sm:$0xff] }
 0x95e   :  { %2841 = vmatpush1.msra.mxu0 %v9753_v14  ;;  %v9764_v14 = vld [vmem:[#allocation33_spill] sm:$0xff] }
 0x95f   :  { %2842 = vmatprep.subr.mxu0 %v9754_v3  ;;  %v9765_v3 = vld [vmem:[#allocation64_spill] sm:$0xff] }
 0x960   :  { %2843 = vmatpush1.msra.mxu0 %v9755_v29  ;;  %v9766_v29 = vld [vmem:[#allocation36_spill] sm:$0xff] }
 0x961   :  { %2844 = vmatprep.subr.mxu0 %v9756_v2  ;;  %v9767_v2 = vld [vmem:[#allocation67_spill] sm:$0xff] }
 0x962   :  { %2845 = vmatpush1.msra.mxu0 %v9757_v51  ;;  %v9768_v51 = vld [vmem:[#allocation39_spill] sm:$0xff] }
 0x963   :  { %2846 = vmatprep.subr.mxu0 %v9758_v40  ;;  %v9769_v40 = vld [vmem:[#allocation70_spill] sm:$0xff] }
 0x964   :  { %2847 = vmatpush1.msra.mxu0 %v9759_v53  ;;  %v9770_v53 = vld [vmem:[#allocation42_spill] sm:$0xff] }
 0x965   :  { %2848 = vmatprep.subr.mxu0 %v9760_v31  ;;  %v9771_v31 = vld [vmem:[#allocation72_spill] sm:$0xff] }
 0x966   :  { %2849 = vmatpush1.msra.mxu0 %v9761_v30  ;;  %v9772_v30 = vld [vmem:[#allocation44_spill] sm:$0xff] }
 0x967   :  { %2850 = vmatprep.subr.mxu0 %v9762_v45  ;;  %v9773_v45 = vld [vmem:[#allocation24_spill] sm:$0xff] }
 0x968   :  { %2851 = vmatpush1.msra.mxu0 %v9763_v44  ;;  %v7826_v44 = vrot.slane %v7697_v49, %v9773_v45 }
 0x969   :  { %2852 = vmatprep.subr.mxu0 %v9764_v14 }
 0x96a   :  { %2853 = vmatpush1.msra.mxu0 %v9765_v3 }
 0x96b   :  { %2854 = vmatprep.subr.mxu0 %v9766_v29 }
 0x96c   :  { %2855 = vmatpush1.msra.mxu0 %v9767_v2  ;;  %v9774_v2 = vld [vmem:[#allocation21_spill] sm:$0xff] }
 0x96d   :  { %2856 = vmatprep.subr.mxu0 %v9768_v51 }
 0x96e   :  { %2857 = vmatpush1.msra.mxu0 %v9769_v40 }
 0x96f   :  { %2858 = vmatprep.subr.mxu0 %v9770_v53 }
 0x970   :  { %2859 = vmatpush1.msra.mxu0 %v9771_v31 }
 0x971   :  { %3088 = vmatprep.subr.mxu0 %v9772_v30 }
 0x9f1   :  { %v2492_v14 = vpop.f32.mrf.mxu0  ;;  %v2563_v3 = vpop.f32.mrf.mxu1 }
 0x9f2   :  { %v2493_v29 = vadd.f32 %v2492_v14, %v7826_v44 }
 0x9f3   :  { %v2565_v60 = vpop.f32.mrf.mxu1  ;;  %v2494_v21 = vpop.f32.mrf.mxu0 }
 0x9f4   :  { %v2566_v35 = vadd.f32 %v2565_v60, %v9774_v2  ;;  %v2495_v30 = vadd.f32 %v2494_v21, %v9775_v12 }
 0x9f6   :  { %v2639_v51 = vadd.f32 %v2566_v35, %v2493_v29  ;;  %v9777_v35 = vld [vmem:[#allocation23_spill] sm:$0xff] }
 0x9f7   :  { %v2564_v29 = vadd.f32 %v2563_v3, %v9777_v35  ;;  %v9819_v3 = vld [vmem:[#allocation58_spill] sm:$0xff] }
 0x9f8   :  { %v4830_v22 = vmul.f32 -1.442695, %v2639_v51 }
 0x9fa   :  { %5516 = vpow2.f32 %v4830_v22 }
 0xa07   :  { %v5517_v40 = vpop.eup %5516 }
 0xa08   :  { %v2643_v53 = vadd.f32 1.0, %v5517_v40 }
 0xa0a   :  { %5518 = vrcp.f32 %v2643_v53 }
 0xa11   :  { %v2634_v31 = vpop.f32.mrf.mxu0 }
 0xa12   :  { %v2635_v49 = vadd.f32 %v2634_v31, %v9776_v7 }
 0xa13   :  { %v2636_v56 = vpop.f32.mrf.mxu0 }
 0xa14   :  { %v2646_v45 = vadd.f32 %v2635_v49, %v2495_v30  ;;  %v2637_v14 = vadd.f32 %v2636_v56, %v7713_v62  ;;  %v7840_v56 = vld [vmem:[%s9344_s5 + $0x2f0] sm:$0xff]  ;;  %v9821_v49 = vld [vmem:[#allocation61_spill] sm:$0xff] }
 0xa16   :  { %v4831_v61 = vmul.f32 -1.442695, %v2646_v45  ;;  %v8024_v45 = vld [vmem:[%s9344_s5 + $0x78] sm:$0xff] }
 0xa17   :  { %v5519_v47 = vpop.eup %5518  ;;  %9822 = vst [vmem:[#allocation27_spill] sm:$0xff] %v8024_v45 }
 0xa18   :  { %5520 = vpow2.f32 %v4831_v61  ;;  %v2653_v60 = vmul.f32 %v5519_v47, %v2637_v14  ;;  %v7848_v47 = vld [vmem:[%s9344_s5 + $0x2c0] sm:$0xff]  ;;  %v9823_v14 = vld [vmem:[#allocation64_spill] sm:$0xff] }
 0xa19   :  { %v7865_v61 = vld [vmem:[%s9344_s5 + $0x260] sm:$0xff] }
 0xa1a   :  { %v2654_v40 = vadd.f32 %v2653_v60, %v2564_v29  ;;  %v8031_v60 = vld [vmem:[%s9344_s5 + $0x48] sm:$0xff] }
 0xa1b   :  { %9824 = vst [vmem:[#allocation28_spill] sm:$0xff] %v8031_v60  ;;  %v9825_v29 = vld [vmem:[#allocation67_spill] sm:$0xff] }
 0xa25   :  { %v5521_v22 = vpop.eup %5520 }
 0xa26   :  { %v2650_v51 = vadd.f32 1.0, %v5521_v22  ;;  %v8038_v22 = vld [vmem:[%s9344_s5 + $0x18] sm:$0xff] }
 0xa27   :  { %9826 = vst [vmem:[#allocation30_spill] sm:$0xff] %v8038_v22 }
 0xa28   :  { %5522 = vrcp.f32 %v2650_v51  ;;  %v9827_v51 = vld [vmem:[#allocation70_spill] sm:$0xff] }
 0xa29   :  { %5524 = vtanh.f32 %v2654_v40  ;;  %v9828_v40 = vld [vmem:[#allocation72_spill] sm:$0xff] }
 0xa35   :  { %v5523_v2 = vpop.eup %5522 }
 0xa36   :  { %v2656_v21 = vsub.f32 1.0, %v5523_v2  ;;  %v5525_v53 = vpop.eup %5524  ;;  %v2658_v31 = vmul.f32 %v5523_v2, %v7719_v52  ;;  %v7856_v52 = vld [vmem:[%s9344_s5 + $0x290] sm:$0xff]  ;;  %v8017_v2 = vld [vmem:[%s9344_s5 + $0xa8] sm:$0xff] }
 0xa37   :  { %9820 = vst [vmem:[#allocation25_spill] sm:$0xff] %v8017_v2 }
 0xa38   :  { %v2657_v12 = vmul.f32 %v5525_v53, %v2656_v21 }
 0xa3a   :  { %v7835_v30 = vadd.f32 %v2658_v31, %v2657_v12  ;;  %v8010_v12 = vld [vmem:[%s9344_s5 + $0xd8] sm:$0xff] }
 0xa3b   :  { %9818 = vst [vmem:[#allocation26_spill] sm:$0xff] %v8010_v12 }
 0xa3c   :  { %2660 = vst [vmem:[#allocation2 + $0x6] sm:$0x1] %v7835_v30  ;;  %2822 = vmatmul.mubr.f32.vlgmr.msra.gmra.mxu1 %v7835_v30  ;;  %2893 = vmatmul.mubr.f32.vlgmr.msra.gmra.mxu0 %v7835_v30 }
 0xa3d   :  { %2900 = vmatpush1.msra.mxu1 %v7840_v56  ;;  %2963 = vmatprep.mubr.f32.mxu1 %v9603_v24 }
 0xa3e   :  { %2901 = vmatprep.subr.mxu1 %v7103_v13  ;;  %3089 = vmatpush1.msra.mxu0 %v7397_v46  ;;  %v9778_v13 = vld [vmem:[#allocation57_spill] sm:$0xff] }
 0xa3f   :  { %2902 = vmatpush1.msra.mxu1 %v7848_v47  ;;  %3090 = vmatprep.subr.mxu0 %v7403_v9  ;;  %v9797_v46 = vld [vmem:[#allocation45_spill] sm:$0xff] }
 0xa40   :  { %2903 = vmatprep.subr.mxu1 %v7122_v23  ;;  %3091 = vmatpush1.msra.mxu0 %v7415_v63  ;;  %v9779_v23 = vld [vmem:[#allocation34_spill] sm:$0xff]  ;;  %v7936_v9 = vld [vmem:[%s9344_s5 + $0x2b8] sm:$0xff] }
 0xa41   :  { %2904 = vmatpush1.msra.mxu1 %v7856_v52  ;;  %3092 = vmatprep.subr.mxu0 %v7422_v1  ;;  %9798 = vst [vmem:[#allocation31_spill] sm:$0xff] %v7936_v9  ;;  %v9799_v63 = vld [vmem:[#allocation46_spill] sm:$0xff] }
 0xa42   :  { %2905 = vmatprep.subr.mxu1 %v7141_v11  ;;  %3093 = vmatpush1.msra.mxu0 %v7434_v6  ;;  %v9780_v11 = vld [vmem:[#allocation59_spill] sm:$0xff] }
 0xa43   :  { %2906 = vmatpush1.msra.mxu1 %v7865_v61  ;;  %3094 = vmatprep.subr.mxu0 %v7441_v8  ;;  %v7943_v1 = vld [vmem:[%s9344_s5 + $0x288] sm:$0xff]  ;;  %v7950_v8 = vld [vmem:[%s9344_s5 + $0x258] sm:$0xff] }
 0xa44   :  { %2907 = vmatprep.subr.mxu1 %v7160_v15  ;;  %3095 = vmatpush1.msra.mxu0 %v7453_v0  ;;  %v9782_v15 = vld [vmem:[#allocation60_spill] sm:$0xff]  ;;  %9800 = vst [vmem:[#allocation56_spill] sm:$0xff] %v7943_v1  ;;  %v9801_v6 = vld [vmem:[#allocation47_spill] sm:$0xff]  ;;  %9802 = vst [vmem:[#allocation29_spill] sm:$0xff] %v7950_v8 }
 0xa45   :  { %2908 = vmatpush1.msra.mxu1 %v7148_v16  ;;  %3096 = vmatprep.subr.mxu0 %v7460_v5  ;;  %v9781_v16 = vld [vmem:[#allocation32_spill] sm:$0xff]  ;;  %v7957_v5 = vld [vmem:[%s9344_s5 + $0x228] sm:$0xff] }
 0xa46   :  { %2909 = vmatprep.subr.mxu1 %v7179_v59  ;;  %3097 = vmatpush1.msra.mxu0 %v7472_v4  ;;  %v9784_v59 = vld [vmem:[#allocation62_spill] sm:$0xff]  ;;  %v9803_v0 = vld [vmem:[#allocation48_spill] sm:$0xff]  ;;  %9804 = vst [vmem:[#allocation13_spill] sm:$0xff] %v7957_v5  ;;  %v9805_v4 = vld [vmem:[#allocation49_spill] sm:$0xff] }
 0xa47   :  { %2910 = vmatpush1.msra.mxu1 %v7167_v28  ;;  %3098 = vmatprep.subr.mxu0 %v7479_v43  ;;  %v9783_v28 = vld [vmem:[#allocation37_spill] sm:$0xff] }
 0xa48   :  { %2911 = vmatprep.subr.mxu1 %v7198_v54  ;;  %3099 = vmatpush1.msra.mxu0 %v7491_v25  ;;  %v9787_v54 = vld [vmem:[#allocation40_spill] sm:$0xff]  ;;  %v7971_v25 = vld [vmem:[%s9344_s5 + $0x1c8] sm:$0xff] }
 0xa49   :  { %2912 = vmatpush1.msra.mxu1 %v7186_v26  ;;  %3100 = vmatprep.subr.mxu0 %v7498_v50  ;;  %v9785_v26 = vld [vmem:[#allocation35_spill] sm:$0xff]  ;;  %v7964_v43 = vld [vmem:[%s9344_s5 + $0x1f8] sm:$0xff]  ;;  %9808 = vst [vmem:[#allocation15_spill] sm:$0xff] %v7971_v25 }
 0xa4a   :  { %2913 = vmatprep.subr.mxu1 %v7215_v34  ;;  %3101 = vmatpush1.msra.mxu0 %v7510_v58  ;;  %v9790_v34 = vld [vmem:[#allocation66_spill] sm:$0xff]  ;;  %9806 = vst [vmem:[#allocation14_spill] sm:$0xff] %v7964_v43  ;;  %v7977_v50 = vld [vmem:[%s9344_s5 + $0x198] sm:$0xff]  ;;  %v9810_v58 = vld [vmem:[#allocation51_spill] sm:$0xff] }
 0xa4b   :  { %2914 = vmatpush1.msra.mxu1 %v7203_v42  ;;  %3102 = vmatprep.subr.mxu0 %v7517_v38  ;;  %v9788_v42 = vld [vmem:[#allocation65_spill] sm:$0xff]  ;;  %9809 = vst [vmem:[#allocation18_spill] sm:$0xff] %v7977_v50  ;;  %v7983_v38 = vld [vmem:[%s9344_s5 + $0x168] sm:$0xff] }
 0xa4c   :  { %2915 = vmatprep.subr.mxu1 %v7232_v33  ;;  %3103 = vmatpush1.msra.mxu0 %v7529_v36  ;;  %v9792_v33 = vld [vmem:[#allocation68_spill] sm:$0xff]  ;;  %9811 = vst [vmem:[#allocation19_spill] sm:$0xff] %v7983_v38 }
 0xa4d   :  { %2916 = vmatpush1.msra.mxu1 %v7220_v41  ;;  %3104 = vmatprep.subr.mxu0 %v7536_v32  ;;  %v9786_v32 = vld [vmem:[#allocation63_spill] sm:$0xff]  ;;  %v7990_v36 = vld [vmem:[%s9344_s5 + $0x138] sm:$0xff] }
 0xa4e   :  { %2917 = vmatprep.subr.mxu1 %v7251_v57  ;;  %3105 = vmatpush1.msra.mxu0 %v7546_v10  ;;  %v9791_v41 = vld [vmem:[#allocation43_spill] sm:$0xff]  ;;  %v9794_v57 = vld [vmem:[#allocation69_spill] sm:$0xff]  ;;  %v9812_v10 = vld [vmem:[#allocation52_spill] sm:$0xff]  ;;  %9813 = vst [vmem:[#allocation16_spill] sm:$0xff] %v7990_v36 }
 0xa4f   :  { %2918 = vmatpush1.msra.mxu1 %v7239_v27  ;;  %3106 = vmatprep.subr.mxu0 %v7553_v39  ;;  %v9789_v39 = vld [vmem:[#allocation38_spill] sm:$0xff]  ;;  %v9793_v27 = vld [vmem:[#allocation41_spill] sm:$0xff] }
 0xa50   :  { %2919 = vmatprep.subr.mxu1 %v7270_v48  ;;  %3107 = vmatpush1.msra.mxu0 %v7563_v55  ;;  %v7929_v48 = vld [vmem:[%s9344_s5 + $0x2e8] sm:$0xff] }
 0xa51   :  { %2920 = vmatpush1.msra.mxu1 %v7258_v37  ;;  %3108 = vmatprep.subr.mxu0 %v9717_v20  ;;  %v9795_v37 = vld [vmem:[#allocation71_spill] sm:$0xff]  ;;  %9796 = vst [vmem:[#allocation54_spill] sm:$0xff] %v7929_v48  ;;  %v9807_v55 = vld [vmem:[#allocation50_spill] sm:$0xff]  ;;  %v7995_v20 = vld [vmem:[%s9344_s5 + $0x2f8] sm:$0xff] }
 0xa52   :  { %2921 = vmatprep.subr.mxu1 %v9718_v18  ;;  %3109 = vmatpush1.msra.mxu0 %v9719_v17  ;;  %9814 = vst [vmem:[#allocation17_spill] sm:$0xff] %v7995_v20  ;;  %v9815_v18 = vld [vmem:[#allocation53_spill] sm:$0xff]  ;;  %v8003_v17 = vld [vmem:[%s9344_s5 + $0x108] sm:$0xff] }
 0xa53   :  { %2922 = vmatpush1.msra.mxu1 %v9720_v19  ;;  %3110 = vmatprep.subr.mxu0 %v9778_v13  ;;  %9816 = vst [vmem:[#allocation20_spill] sm:$0xff] %v8003_v17  ;;  %v9817_v19 = vld [vmem:[#allocation55_spill] sm:$0xff] }
 0xa54   :  { %2923 = vmatprep.subr.mxu1 %v9779_v23  ;;  %3111 = vmatpush1.msra.mxu0 %v9780_v11  ;;  %v9829_v23 = vld [vmem:[#allocation21_spill] sm:$0xff] }
 0xa55   :  { %2924 = vmatpush1.msra.mxu1 %v9781_v16  ;;  %3112 = vmatprep.subr.mxu0 %v9782_v15 }
 0xa56   :  { %2925 = vmatprep.subr.mxu1 %v9783_v28  ;;  %3113 = vmatpush1.msra.mxu0 %v9784_v59 }
 0xa57   :  { %2926 = vmatpush1.msra.mxu1 %v9785_v26  ;;  %3114 = vmatprep.subr.mxu0 %v9786_v32 }
 0xa58   :  { %2927 = vmatprep.subr.mxu1 %v9787_v54  ;;  %3115 = vmatpush1.msra.mxu0 %v9788_v42  ;;  %v9830_v54 = vld [vmem:[#allocation22_spill] sm:$0xff] }
 0xa59   :  { %2928 = vmatpush1.msra.mxu1 %v9789_v39  ;;  %3116 = vmatprep.subr.mxu0 %v9790_v34 }
 0xa5a   :  { %2929 = vmatprep.subr.mxu1 %v9791_v41  ;;  %3117 = vmatpush1.msra.mxu0 %v9792_v33 }
 0xa5b   :  { %2930 = vmatpush1.msra.mxu1 %v9793_v27  ;;  %3118 = vmatprep.subr.mxu0 %v9794_v57 }
 0xa5c   :  { %2964 = vmatmul.mubr.f32.vlgmr.msra.gmra.mxu1 %v7835_v30  ;;  %3119 = vmatpush1.msra.mxu0 %v9795_v37 }
 0xa5d   :  { %3152 = vmatprep.mubr.f32.mxu0 %v9603_v24  ;;  %3223 = vmatprep.mubr.f32.mxu1 %v9603_v24 }
 0xa5e   :  { %3159 = vmatprep.subr.mxu1 %v7929_v48  ;;  %3230 = vmatprep.subr.mxu0 %v7995_v20 }
 0xa5f   :  { %3160 = vmatpush1.msra.mxu1 %v9797_v46 }
 0xa60   :  { %3161 = vmatprep.subr.mxu1 %v7936_v9 }
 0xa61   :  { %3162 = vmatpush1.msra.mxu1 %v9799_v63 }
 0xa62   :  { %3163 = vmatprep.subr.mxu1 %v7943_v1 }
 0xa63   :  { %3164 = vmatpush1.msra.mxu1 %v9801_v6 }
 0xa64   :  { %3165 = vmatprep.subr.mxu1 %v7950_v8 }
 0xa65   :  { %3166 = vmatpush1.msra.mxu1 %v9803_v0 }
 0xa66   :  { %3167 = vmatprep.subr.mxu1 %v7957_v5 }
 0xa67   :  { %3168 = vmatpush1.msra.mxu1 %v9805_v4 }
 0xa68   :  { %3169 = vmatprep.subr.mxu1 %v7964_v43 }
 0xa69   :  { %3170 = vmatpush1.msra.mxu1 %v9807_v55 }
 0xa6a   :  { %3171 = vmatprep.subr.mxu1 %v7971_v25 }
 0xa6b   :  { %3172 = vmatpush1.msra.mxu1 %v9810_v58 }
 0xa6c   :  { %3173 = vmatprep.subr.mxu1 %v7977_v50 }
 0xa6d   :  { %3174 = vmatpush1.msra.mxu1 %v9812_v10 }
 0xa6e   :  { %3175 = vmatprep.subr.mxu1 %v7983_v38 }
 0xa6f   :  { %3176 = vmatpush1.msra.mxu1 %v9815_v18 }
 0xa70   :  { %3177 = vmatprep.subr.mxu1 %v7990_v36 }
 0xa71   :  { %3178 = vmatpush1.msra.mxu1 %v9817_v19 }
 0xa72   :  { %3179 = vmatprep.subr.mxu1 %v8003_v17 }
 0xa73   :  { %3180 = vmatpush1.msra.mxu1 %v9819_v3  ;;  %v8056_v3 = vld [vmem:[%s9344_s5 + $0x2c8] sm:$0xff] }
 0xa74   :  { %3181 = vmatprep.subr.mxu1 %v8010_v12 }
 0xa75   :  { %3182 = vmatpush1.msra.mxu1 %v9821_v49  ;;  %v8065_v49 = vld [vmem:[%s9344_s5 + $0x298] sm:$0xff] }
 0xa76   :  { %3183 = vmatprep.subr.mxu1 %v8017_v2 }
 0xa77   :  { %3184 = vmatpush1.msra.mxu1 %v9823_v14  ;;  %v8081_v14 = vld [vmem:[%s9344_s5 + $0x238] sm:$0xff] }
 0xa78   :  { %3185 = vmatprep.subr.mxu1 %v8024_v45 }
 0xa79   :  { %3186 = vmatpush1.msra.mxu1 %v9825_v29  ;;  %v8087_v29 = vld [vmem:[%s9344_s5 + $0x230] sm:$0xff] }
 0xa7a   :  { %3187 = vmatprep.subr.mxu1 %v8031_v60 }
 0xa7b   :  { %3188 = vmatpush1.msra.mxu1 %v9827_v51  ;;  %v8093_v51 = vld [vmem:[%s9344_s5 + $0x208] sm:$0xff] }
 0xa7c   :  { %3189 = vmatprep.subr.mxu1 %v8038_v22 }
 0xa7d   :  { %3190 = vmatpush1.msra.mxu1 %v9828_v40  ;;  %v8099_v40 = vld [vmem:[%s9344_s5 + $0x200] sm:$0xff] }
 0xafc   :  { %v2823_v21 = vpop.f32.mrf.mxu1  ;;  %v2894_v53 = vpop.f32.mrf.mxu0 }
 0xafd   :  { %v2824_v13 = vadd.f32 %v2823_v21, %v7826_v44  ;;  %v2895_v46 = vadd.f32 %v2894_v53, %v9777_v35  ;;  %v8105_v21 = vld [vmem:[%s9344_s5 + $0x1d8] sm:$0xff]  ;;  %v8111_v53 = vld [vmem:[%s9344_s5 + $0x1d0] sm:$0xff] }
 0xafe   :  { %v2896_v31 = vpop.f32.mrf.mxu0  ;;  %v2825_v26 = vpop.f32.mrf.mxu1 }
 0xaff   :  { %v2897_v11 = vadd.f32 %v2896_v31, %v9829_v23  ;;  %v2826_v42 = vadd.f32 %v2825_v26, %v9830_v54  ;;  %v8117_v31 = vld [vmem:[%s9344_s5 + $0x1a8] sm:$0xff]  ;;  %v8159_v26 = vld [vmem:[%s9344_s5 + $0x110] sm:$0xff] }
 0xb00   :  { %9831 = vst [vmem:[#allocation33_spill] sm:$0xff] %v8159_v26 }
 0xb01   :  { %v2970_v16 = vadd.f32 %v2897_v11, %v2824_v13  ;;  %v8123_v13 = vld [vmem:[%s9344_s5 + $0x1a0] sm:$0xff]  ;;  %v8129_v11 = vld [vmem:[%s9344_s5 + $0x178] sm:$0xff] }
 0xb03   :  { %v4832_v15 = vmul.f32 -1.442695, %v2970_v16  ;;  %v8135_v16 = vld [vmem:[%s9344_s5 + $0x170] sm:$0xff] }
 0xb05   :  { %5526 = vpow2.f32 %v4832_v15  ;;  %v8141_v15 = vld [vmem:[%s9344_s5 + $0x148] sm:$0xff] }
 0xb12   :  { %v5527_v28 = vpop.eup %5526 }
 0xb13   :  { %v2974_v59 = vadd.f32 1.0, %v5527_v28  ;;  %v8147_v28 = vld [vmem:[%s9344_s5 + $0x140] sm:$0xff] }
 0xb15   :  { %5528 = vrcp.f32 %v2974_v59  ;;  %v8153_v59 = vld [vmem:[%s9344_s5 + $0x118] sm:$0xff] }
 0xb1c   :  { %v2965_v32 = vpop.f32.mrf.mxu1 }
 0xb1d   :  { %v2966_v39 = vadd.f32 %v2965_v32, %v9776_v7  ;;  %v8165_v32 = vld [vmem:[%s9344_s5 + $0xe8] sm:$0xff] }
 0xb1e   :  { %v2967_v33 = vpop.f32.mrf.mxu1  ;;  %9832 = vst [vmem:[#allocation36_spill] sm:$0xff] %v8165_v32 }
 0xb1f   :  { %v2977_v34 = vadd.f32 %v2966_v39, %v2826_v42  ;;  %v2968_v57 = vadd.f32 %v2967_v33, %v7713_v62  ;;  %v8171_v42 = vld [vmem:[%s9344_s5 + $0xe0] sm:$0xff]  ;;  %v8177_v39 = vld [vmem:[%s9344_s5 + $0xb8] sm:$0xff] }
 0xb20   :  { %9833 = vst [vmem:[#allocation39_spill] sm:$0xff] %v8171_v42  ;;  %9834 = vst [vmem:[#allocation42_spill] sm:$0xff] %v8177_v39  ;;  %v8195_v33 = vld [vmem:[%s9344_s5 + $0x80] sm:$0xff] }
 0xb21   :  { %v4833_v41 = vmul.f32 -1.442695, %v2977_v34  ;;  %v8183_v34 = vld [vmem:[%s9344_s5 + $0xb0] sm:$0xff]  ;;  %9837 = vst [vmem:[#allocation73_spill] sm:$0xff] %v8195_v33 }
 0xb22   :  { %v5529_v27 = vpop.eup %5528  ;;  %9835 = vst [vmem:[#allocation44_spill] sm:$0xff] %v8183_v34 }
 0xb23   :  { %5530 = vpow2.f32 %v4833_v41  ;;  %v2984_v37 = vmul.f32 %v5529_v27, %v2968_v57  ;;  %v8189_v41 = vld [vmem:[%s9344_s5 + $0x88] sm:$0xff]  ;;  %v8201_v27 = vld [vmem:[%s9344_s5 + $0x58] sm:$0xff]  ;;  %v8207_v57 = vld [vmem:[%s9344_s5 + $0x50] sm:$0xff] }
 0xb24   :  { %9836 = vst [vmem:[#allocation24_spill] sm:$0xff] %v8189_v41  ;;  %9838 = vst [vmem:[#allocation23_spill] sm:$0xff] %v8201_v27 }
 0xb25   :  { %v2985_v0 = vadd.f32 %v2984_v37, %v2895_v46  ;;  %9839 = vst [vmem:[#allocation57_spill] sm:$0xff] %v8207_v57  ;;  %v8213_v37 = vld [vmem:[%s9344_s5 + $0x28] sm:$0xff]  ;;  %v8219_v46 = vld [vmem:[%s9344_s5 + $0x20] sm:$0xff] }
 0xb26   :  { %9840 = vst [vmem:[#allocation34_spill] sm:$0xff] %v8213_v37  ;;  %9841 = vst [vmem:[#allocation59_spill] sm:$0xff] %v8219_v46 }
 0xb30   :  { %v5531_v63 = vpop.eup %5530 }
 0xb31   :  { %v2981_v6 = vadd.f32 1.0, %v5531_v63  ;;  %v8230_v63 = vld [vmem:[%s9344_s5 + $0x2d8] sm:$0xff] }
 0xb32   :  { %9842 = vst [vmem:[#allocation32_spill] sm:$0xff] %v8230_v63  ;;  %3419 = vmatprep.subr.mxu1 %v8230_v63 }
 0xb33   :  { %5532 = vrcp.f32 %v2981_v6  ;;  %v8236_v6 = vld [vmem:[%s9344_s5 + $0x2d0] sm:$0xff] }
 0xb34   :  { %5534 = vtanh.f32 %v2985_v0  ;;  %v8242_v0 = vld [vmem:[%s9344_s5 + $0x2a8] sm:$0xff] }
 0xb40   :  { %v5533_v4 = vpop.eup %5532 }
 0xb41   :  { %v2987_v55 = vsub.f32 1.0, %v5533_v4  ;;  %v5535_v58 = vpop.eup %5534  ;;  %v2989_v18 = vmul.f32 %v5533_v4, %v7835_v30  ;;  %v8074_v30 = vld [vmem:[%s9344_s5 + $0x268] sm:$0xff]  ;;  %v8247_v4 = vld [vmem:[%s9344_s5 + $0x2e0] sm:$0xff] }
 0xb42   :  { %9843 = vst [vmem:[#allocation60_spill] sm:$0xff] %v8247_v4 }
 0xb43   :  { %v2988_v10 = vmul.f32 %v5535_v58, %v2987_v55  ;;  %v8254_v55 = vld [vmem:[%s9344_s5 + $0x2a0] sm:$0xff]  ;;  %v8261_v58 = vld [vmem:[%s9344_s5 + $0x278] sm:$0xff] }
 0xb45   :  { %v8051_v19 = vadd.f32 %v2989_v18, %v2988_v10  ;;  %v8266_v10 = vld [vmem:[%s9344_s5 + $0x2b0] sm:$0xff] }
 0xb46   :  { %9844 = vst [vmem:[#allocation37_spill] sm:$0xff] %v8266_v10  ;;  %v8273_v18 = vld [vmem:[%s9344_s5 + $0x270] sm:$0xff] }
 0xb47   :  { %2991 = vst [vmem:[#allocation2 + $0x5] sm:$0x1] %v8051_v19  ;;  %3153 = vmatmul.mubr.f32.vlgmr.msra.gmra.mxu0 %v8051_v19  ;;  %3224 = vmatmul.mubr.f32.vlgmr.msra.gmra.mxu1 %v8051_v19 }
 0xb48   :  { %3231 = vmatpush1.msra.mxu0 %v7840_v56  ;;  %3294 = vmatprep.mubr.f32.mxu0 %v9603_v24 }
 0xb49   :  { %3232 = vmatprep.subr.mxu0 %v8056_v3  ;;  %3483 = vmatprep.mubr.f32.mxu1 %v9603_v24 }
 0xb4a   :  { %3233 = vmatpush1.msra.mxu0 %v7848_v47  ;;  %3420 = vmatpush1.msra.mxu1 %v8236_v6 }
 0xb4b   :  { %3234 = vmatprep.subr.mxu0 %v8065_v49  ;;  %3421 = vmatprep.subr.mxu1 %v8242_v0 }
 0xb4c   :  { %3235 = vmatpush1.msra.mxu0 %v7856_v52  ;;  %3422 = vmatpush1.msra.mxu1 %v8254_v55 }
 0xb4d   :  { %3236 = vmatprep.subr.mxu0 %v8074_v30  ;;  %3423 = vmatprep.subr.mxu1 %v8261_v58 }
 0xb4e   :  { %3237 = vmatpush1.msra.mxu0 %v7865_v61  ;;  %3424 = vmatpush1.msra.mxu1 %v8273_v18 }
 0xb4f   :  { %3238 = vmatprep.subr.mxu0 %v8081_v14 }
 0xb50   :  { %3239 = vmatpush1.msra.mxu0 %v8087_v29 }
 0xb51   :  { %3240 = vmatprep.subr.mxu0 %v8093_v51 }
 0xb52   :  { %3241 = vmatpush1.msra.mxu0 %v8099_v40 }
 0xb53   :  { %3242 = vmatprep.subr.mxu0 %v8105_v21 }
 0xb54   :  { %3243 = vmatpush1.msra.mxu0 %v8111_v53 }
 0xb55   :  { %3244 = vmatprep.subr.mxu0 %v8117_v31 }
 0xb56   :  { %3245 = vmatpush1.msra.mxu0 %v8123_v13 }
 0xb57   :  { %3246 = vmatprep.subr.mxu0 %v8129_v11 }
 0xb58   :  { %3247 = vmatpush1.msra.mxu0 %v8135_v16 }
 0xb59   :  { %3248 = vmatprep.subr.mxu0 %v8141_v15 }
 0xb5a   :  { %3249 = vmatpush1.msra.mxu0 %v8147_v28 }
 0xb5b   :  { %3250 = vmatprep.subr.mxu0 %v8153_v59 }
 0xb5c   :  { %3251 = vmatpush1.msra.mxu0 %v8159_v26 }
 0xb5d   :  { %3252 = vmatprep.subr.mxu0 %v8165_v32  ;;  %v8452_v32 = vld [vmem:[%s9344_s5 + $0xd0] sm:$0xff] }
 0xb5e   :  { %3253 = vmatpush1.msra.mxu0 %v8171_v42  ;;  %v8433_v42 = vld [vmem:[%s9344_s5 + $0x100] sm:$0xff]  ;;  %9859 = vst [vmem:[#allocation47_spill] sm:$0xff] %v8452_v32 }
 0xb5f   :  { %3254 = vmatprep.subr.mxu0 %v8177_v39  ;;  %v8414_v39 = vld [vmem:[%s9344_s5 + $0x130] sm:$0xff]  ;;  %9856 = vst [vmem:[#allocation71_spill] sm:$0xff] %v8433_v42 }
 0xb60   :  { %3255 = vmatpush1.msra.mxu0 %v8183_v34  ;;  %v8402_v34 = vld [vmem:[%s9344_s5 + $0x120] sm:$0xff]  ;;  %9853 = vst [vmem:[#allocation68_spill] sm:$0xff] %v8414_v39 }
 0xb61   :  { %3256 = vmatprep.subr.mxu0 %v8189_v41  ;;  %v8395_v41 = vld [vmem:[%s9344_s5 + $0x160] sm:$0xff] }
 0xb62   :  { %3257 = vmatpush1.msra.mxu0 %v8195_v33  ;;  %v8383_v33 = vld [vmem:[%s9344_s5 + $0x150] sm:$0xff]  ;;  %9851 = vst [vmem:[#allocation66_spill] sm:$0xff] %v8395_v41 }
 0xb63   :  { %3258 = vmatprep.subr.mxu0 %v8201_v27  ;;  %v8378_v27 = vld [vmem:[%s9344_s5 + $0x190] sm:$0xff] }
 0xb64   :  { %3259 = vmatpush1.msra.mxu0 %v8207_v57  ;;  %v8361_v57 = vld [vmem:[%s9344_s5 + $0x1c0] sm:$0xff]  ;;  %9850 = vst [vmem:[#allocation38_spill] sm:$0xff] %v8378_v27 }
 0xb65   :  { %3260 = vmatprep.subr.mxu0 %v8213_v37  ;;  %v8342_v37 = vld [vmem:[%s9344_s5 + $0x1f0] sm:$0xff]  ;;  %9849 = vst [vmem:[#allocation65_spill] sm:$0xff] %v8361_v57 }
 0xb66   :  { %3261 = vmatpush1.msra.mxu0 %v8219_v46  ;;  %v8323_v46 = vld [vmem:[%s9344_s5 + $0x220] sm:$0xff]  ;;  %9848 = vst [vmem:[#allocation40_spill] sm:$0xff] %v8342_v37 }
 0xb67   :  { %3295 = vmatmul.mubr.f32.vlgmr.msra.gmra.mxu0 %v8051_v19  ;;  %3490 = vmatprep.subr.mxu0 %v7929_v48  ;;  %v8304_v48 = vld [vmem:[%s9344_s5 + $0x250] sm:$0xff]  ;;  %9847 = vst [vmem:[#allocation63_spill] sm:$0xff] %v8323_v46 }
 0xb68   :  { %3554 = vmatprep.mubr.f32.mxu0 %v9603_v24  ;;  %3491 = vmatpush1.msra.mxu0 %v8247_v4  ;;  %v8285_v4 = vld [vmem:[%s9344_s5 + $0x280] sm:$0xff]  ;;  %9846 = vst [vmem:[#allocation35_spill] sm:$0xff] %v8304_v48 }
 0xb69   :  { %3492 = vmatprep.subr.mxu0 %v7936_v9  ;;  %v8280_v9 = vld [vmem:[%s9344_s5 + $0x248] sm:$0xff]  ;;  %9845 = vst [vmem:[#allocation62_spill] sm:$0xff] %v8285_v4 }
 0xb6a   :  { %3493 = vmatpush1.msra.mxu0 %v8266_v10  ;;  %3425 = vmatprep.subr.mxu1 %v8280_v9  ;;  %v8292_v10 = vld [vmem:[%s9344_s5 + $0x240] sm:$0xff] }
 0xb6b   :  { %3494 = vmatprep.subr.mxu0 %v7943_v1  ;;  %3426 = vmatpush1.msra.mxu1 %v8292_v10  ;;  %v8299_v1 = vld [vmem:[%s9344_s5 + $0x218] sm:$0xff] }
 0xb6c   :  { %3495 = vmatpush1.msra.mxu0 %v8285_v4  ;;  %3427 = vmatprep.subr.mxu1 %v8299_v1  ;;  %v8311_v4 = vld [vmem:[%s9344_s5 + $0x210] sm:$0xff] }
 0xb6d   :  { %3496 = vmatprep.subr.mxu0 %v7950_v8  ;;  %3428 = vmatpush1.msra.mxu1 %v8311_v4  ;;  %v8318_v8 = vld [vmem:[%s9344_s5 + $0x1e8] sm:$0xff] }
 0xb6e   :  { %3497 = vmatpush1.msra.mxu0 %v8304_v48  ;;  %3429 = vmatprep.subr.mxu1 %v8318_v8  ;;  %v8330_v48 = vld [vmem:[%s9344_s5 + $0x1e0] sm:$0xff] }
 0xb6f   :  { %3498 = vmatprep.subr.mxu0 %v7957_v5  ;;  %3430 = vmatpush1.msra.mxu1 %v8330_v48  ;;  %v8337_v5 = vld [vmem:[%s9344_s5 + $0x1b8] sm:$0xff] }
 0xb70   :  { %3499 = vmatpush1.msra.mxu0 %v8323_v46  ;;  %3431 = vmatprep.subr.mxu1 %v8337_v5  ;;  %v8349_v46 = vld [vmem:[%s9344_s5 + $0x1b0] sm:$0xff] }
 0xb71   :  { %3500 = vmatprep.subr.mxu0 %v7964_v43  ;;  %3432 = vmatpush1.msra.mxu1 %v8349_v46  ;;  %v8356_v43 = vld [vmem:[%s9344_s5 + $0x188] sm:$0xff] }
 0xb72   :  { %3501 = vmatpush1.msra.mxu0 %v8342_v37  ;;  %v8366_v37 = vld [vmem:[%s9344_s5 + $0x180] sm:$0xff]  ;;  %3433 = vmatprep.subr.mxu1 %v8356_v43 }
 0xb73   :  { %3502 = vmatprep.subr.mxu0 %v7971_v25  ;;  %v8373_v25 = vld [vmem:[%s9344_s5 + $0x158] sm:$0xff]  ;;  %3434 = vmatpush1.msra.mxu1 %v8366_v37 }
 0xb74   :  { %3503 = vmatpush1.msra.mxu0 %v8361_v57  ;;  %v8390_v57 = vld [vmem:[%s9344_s5 + $0x128] sm:$0xff]  ;;  %3435 = vmatprep.subr.mxu1 %v8373_v25 }
 0xb75   :  { %3504 = vmatprep.subr.mxu0 %v7977_v50  ;;  %3436 = vmatpush1.msra.mxu1 %v8383_v33  ;;  %v8409_v50 = vld [vmem:[%s9344_s5 + $0xf8] sm:$0xff] }
 0xb76   :  { %3505 = vmatpush1.msra.mxu0 %v8378_v27  ;;  %9852 = vst [vmem:[#allocation43_spill] sm:$0xff] %v8409_v50  ;;  %3437 = vmatprep.subr.mxu1 %v8390_v57  ;;  %v8421_v27 = vld [vmem:[%s9344_s5 + $0xf0] sm:$0xff] }
 0xb77   :  { %3506 = vmatprep.subr.mxu0 %v7983_v38  ;;  %9854 = vst [vmem:[#allocation41_spill] sm:$0xff] %v8421_v27  ;;  %3438 = vmatpush1.msra.mxu1 %v8402_v34  ;;  %v8428_v38 = vld [vmem:[%s9344_s5 + $0xc8] sm:$0xff] }
 0xb78   :  { %3507 = vmatpush1.msra.mxu0 %v8395_v41  ;;  %9855 = vst [vmem:[#allocation69_spill] sm:$0xff] %v8428_v38  ;;  %3439 = vmatprep.subr.mxu1 %v8409_v50  ;;  %v8440_v41 = vld [vmem:[%s9344_s5 + $0xc0] sm:$0xff] }
 0xb79   :  { %3508 = vmatprep.subr.mxu0 %v7990_v36  ;;  %9857 = vst [vmem:[#allocation45_spill] sm:$0xff] %v8440_v41  ;;  %3440 = vmatpush1.msra.mxu1 %v8421_v27  ;;  %v8447_v36 = vld [vmem:[%s9344_s5 + $0x98] sm:$0xff] }
 0xb7a   :  { %3509 = vmatpush1.msra.mxu0 %v8414_v39  ;;  %9858 = vst [vmem:[#allocation46_spill] sm:$0xff] %v8447_v36  ;;  %3441 = vmatprep.subr.mxu1 %v8428_v38  ;;  %v8459_v39 = vld [vmem:[%s9344_s5 + $0x90] sm:$0xff]  ;;  %v8471_v38 = vld [vmem:[%s9344_s5 + $0xa0] sm:$0xff] }
 0xb7b   :  { %3510 = vmatprep.subr.mxu0 %v8003_v17  ;;  %9860 = vst [vmem:[#allocation48_spill] sm:$0xff] %v8459_v39  ;;  %3442 = vmatpush1.msra.mxu1 %v8440_v41  ;;  %v8466_v17 = vld [vmem:[%s9344_s5 + $0x68] sm:$0xff]  ;;  %9862 = vst [vmem:[#allocation50_spill] sm:$0xff] %v8471_v38 }
 0xb7c   :  { %3511 = vmatpush1.msra.mxu0 %v8433_v42  ;;  %9861 = vst [vmem:[#allocation49_spill] sm:$0xff] %v8466_v17  ;;  %3443 = vmatprep.subr.mxu1 %v8447_v36  ;;  %v8478_v42 = vld [vmem:[%s9344_s5 + $0x60] sm:$0xff]  ;;  %v8490_v36 = vld [vmem:[%s9344_s5 + $0x70] sm:$0xff] }
 0xb7d   :  { %3512 = vmatprep.subr.mxu0 %v8010_v12  ;;  %9863 = vst [vmem:[#allocation51_spill] sm:$0xff] %v8478_v42  ;;  %3444 = vmatpush1.msra.mxu1 %v8459_v39  ;;  %v8485_v12 = vld [vmem:[%s9344_s5 + $0x38] sm:$0xff]  ;;  %9865 = vst [vmem:[#allocation53_spill] sm:$0xff] %v8490_v36 }
 0xb7e   :  { %3513 = vmatpush1.msra.mxu0 %v8452_v32  ;;  %9864 = vst [vmem:[#allocation52_spill] sm:$0xff] %v8485_v12  ;;  %3445 = vmatprep.subr.mxu1 %v8466_v17  ;;  %v8497_v32 = vld [vmem:[%s9344_s5 + $0x30] sm:$0xff]  ;;  %v8509_v17 = vld [vmem:[%s9344_s5 + $0x40] sm:$0xff] }
 0xb7f   :  { %3514 = vmatprep.subr.mxu0 %v8017_v2  ;;  %9866 = vst [vmem:[#allocation55_spill] sm:$0xff] %v8497_v32  ;;  %3446 = vmatpush1.msra.mxu1 %v8478_v42  ;;  %v8504_v2 = vld [vmem:[%s9344_s5 + $0x8] sm:$0xff]  ;;  %9868 = vst [vmem:[#allocation61_spill] sm:$0xff] %v8509_v17 }
 0xb80   :  { %3515 = vmatpush1.msra.mxu0 %v8471_v38  ;;  %9867 = vst [vmem:[#allocation58_spill] sm:$0xff] %v8504_v2  ;;  %3447 = vmatprep.subr.mxu1 %v8485_v12  ;;  %v8516_v38 = vld [vmem:[%s9344_s5] sm:$0xff] }
 0xb81   :  { %3516 = vmatprep.subr.mxu0 %v8024_v45  ;;  %9869 = vst [vmem:[#allocation64_spill] sm:$0xff] %v8516_v38  ;;  %3448 = vmatpush1.msra.mxu1 %v8497_v32  ;;  %v8523_v45 = vld [vmem:[%s9344_s5 + $0x10] sm:$0xff] }
 0xb82   :  { %3517 = vmatpush1.msra.mxu0 %v8490_v36  ;;  %9870 = vst [vmem:[#allocation67_spill] sm:$0xff] %v8523_v45  ;;  %3449 = vmatprep.subr.mxu1 %v8504_v2 }
 0xb83   :  { %3518 = vmatprep.subr.mxu0 %v8031_v60  ;;  %3450 = vmatpush1.msra.mxu1 %v8516_v38 }
 0xb84   :  { %3519 = vmatpush1.msra.mxu0 %v8509_v17  ;;  %3561 = vmatprep.subr.mxu1 %v7995_v20 }
 0xb85   :  { %3520 = vmatprep.subr.mxu0 %v8038_v22 }
 0xb86   :  { %3521 = vmatpush1.msra.mxu0 %v8523_v45 }
 0xb87   :  { %3750 = vmatprep.subr.mxu0 %v8230_v63 }
 0xc07   :  { %v3154_v60 = vpop.f32.mrf.mxu0  ;;  %v3225_v36 = vpop.f32.mrf.mxu1 }
 0xc08   :  { %v3155_v12 = vadd.f32 %v3154_v60, %v7826_v44 }
 0xc09   :  { %v3227_v32 = vpop.f32.mrf.mxu1  ;;  %v3156_v41 = vpop.f32.mrf.mxu0 }
 0xc0a   :  { %v3228_v42 = vadd.f32 %v3227_v32, %v9829_v23  ;;  %v3157_v45 = vadd.f32 %v3156_v41, %v9830_v54 }
 0xc0c   :  { %v3301_v2 = vadd.f32 %v3228_v42, %v3155_v12  ;;  %v3226_v12 = vadd.f32 %v3225_v36, %v9777_v35  ;;  %v9876_v36 = vld [vmem:[#allocation69_spill] sm:$0xff] }
 0xc0e   :  { %v4834_v39 = vmul.f32 -1.442695, %v3301_v2 }
 0xc10   :  { %5536 = vpow2.f32 %v4834_v39 }
 0xc1d   :  { %v5537_v17 = vpop.eup %5536 }
 0xc1e   :  { %v3305_v38 = vadd.f32 1.0, %v5537_v17 }
 0xc20   :  { %5538 = vrcp.f32 %v3305_v38 }
 0xc27   :  { %v3296_v22 = vpop.f32.mrf.mxu0 }
 0xc28   :  { %v3297_v20 = vadd.f32 %v3296_v22, %v9776_v7  ;;  %v9877_v22 = vld [vmem:[#allocation42_spill] sm:$0xff] }
 0xc29   :  { %v3298_v50 = vpop.f32.mrf.mxu0 }
 0xc2a   :  { %v3308_v63 = vadd.f32 %v3297_v20, %v3157_v45  ;;  %v3299_v60 = vadd.f32 %v3298_v50, %v7713_v62  ;;  %v9875_v50 = vld [vmem:[#allocation39_spill] sm:$0xff] }
 0xc2c   :  { %v4835_v27 = vmul.f32 -1.442695, %v3308_v63  ;;  %v9882_v63 = vld [vmem:[#allocation48_spill] sm:$0xff] }
 0xc2d   :  { %v5539_v26 = vpop.eup %5538 }
 0xc2e   :  { %5540 = vpow2.f32 %v4835_v27  ;;  %v3315_v32 = vmul.f32 %v5539_v26, %v3299_v60  ;;  %v9880_v26 = vld [vmem:[#allocation46_spill] sm:$0xff]  ;;  %v9881_v27 = vld [vmem:[#allocation24_spill] sm:$0xff]  ;;  %v9883_v60 = vld [vmem:[#allocation73_spill] sm:$0xff] }
 0xc30   :  { %v3316_v17 = vadd.f32 %v3315_v32, %v3226_v12  ;;  %v9884_v32 = vld [vmem:[#allocation49_spill] sm:$0xff]  ;;  %v9885_v12 = vld [vmem:[#allocation23_spill] sm:$0xff] }
 0xc3b   :  { %v5541_v2 = vpop.eup %5540 }
 0xc3c   :  { %v3312_v42 = vadd.f32 1.0, %v5541_v2  ;;  %v9886_v2 = vld [vmem:[#allocation51_spill] sm:$0xff] }
 0xc3e   :  { %5542 = vrcp.f32 %v3312_v42  ;;  %v9887_v42 = vld [vmem:[#allocation57_spill] sm:$0xff] }
 0xc3f   :  { %5544 = vtanh.f32 %v3316_v17  ;;  %v9888_v17 = vld [vmem:[#allocation52_spill] sm:$0xff] }
 0xc4b   :  { %v5543_v39 = vpop.eup %5542 }
 0xc4c   :  { %v3318_v41 = vsub.f32 1.0, %v5543_v39  ;;  %v5545_v38 = vpop.eup %5544  ;;  %v3320_v20 = vmul.f32 %v5543_v39, %v8051_v19  ;;  %v9879_v19 = vld [vmem:[#allocation44_spill] sm:$0xff]  ;;  %v9889_v39 = vld [vmem:[#allocation34_spill] sm:$0xff] }
 0xc4e   :  { %v3319_v54 = vmul.f32 %v5545_v38, %v3318_v41  ;;  %v9890_v41 = vld [vmem:[#allocation55_spill] sm:$0xff] }
 0xc4f   :  { %v9891_v38 = vld [vmem:[#allocation59_spill] sm:$0xff] }
 0xc50   :  { %v8539_v45 = vadd.f32 %v3320_v20, %v3319_v54  ;;  %v9878_v54 = vld [vmem:[#allocation45_spill] sm:$0xff]  ;;  %v9892_v20 = vld [vmem:[#allocation58_spill] sm:$0xff] }
 0xc52   :  { %3322 = vst [vmem:[#allocation2 + $0x4] sm:$0x1] %v8539_v45  ;;  %3484 = vmatmul.mubr.f32.vlgmr.msra.gmra.mxu1 %v8539_v45  ;;  %3555 = vmatmul.mubr.f32.vlgmr.msra.gmra.mxu0 %v8539_v45 }
 0xc53   :  { %3562 = vmatpush1.msra.mxu1 %v7840_v56  ;;  %3625 = vmatprep.mubr.f32.mxu1 %v9603_v24  ;;  %v9871_v56 = vld [vmem:[#allocation33_spill] sm:$0xff] }
 0xc54   :  { %3563 = vmatprep.subr.mxu1 %v8056_v3  ;;  %3751 = vmatpush1.msra.mxu0 %v8236_v6 }
 0xc55   :  { %3564 = vmatpush1.msra.mxu1 %v7848_v47  ;;  %3752 = vmatprep.subr.mxu0 %v8242_v0  ;;  %v9872_v47 = vld [vmem:[#allocation43_spill] sm:$0xff] }
 0xc56   :  { %3565 = vmatprep.subr.mxu1 %v8065_v49  ;;  %3753 = vmatpush1.msra.mxu0 %v8254_v55 }
 0xc57   :  { %3566 = vmatpush1.msra.mxu1 %v7856_v52  ;;  %3754 = vmatprep.subr.mxu0 %v8261_v58  ;;  %v9873_v52 = vld [vmem:[#allocation36_spill] sm:$0xff] }
 0xc58   :  { %3567 = vmatprep.subr.mxu1 %v8074_v30  ;;  %3755 = vmatpush1.msra.mxu0 %v8273_v18 }
 0xc59   :  { %3568 = vmatpush1.msra.mxu1 %v7865_v61  ;;  %3756 = vmatprep.subr.mxu0 %v8280_v9  ;;  %v9874_v61 = vld [vmem:[#allocation41_spill] sm:$0xff] }
 0xc5a   :  { %3569 = vmatprep.subr.mxu1 %v8081_v14  ;;  %3757 = vmatpush1.msra.mxu0 %v8292_v10 }
 0xc5b   :  { %3570 = vmatpush1.msra.mxu1 %v8087_v29  ;;  %3758 = vmatprep.subr.mxu0 %v8299_v1 }
 0xc5c   :  { %3571 = vmatprep.subr.mxu1 %v8093_v51  ;;  %3759 = vmatpush1.msra.mxu0 %v8311_v4 }
 0xc5d   :  { %3572 = vmatpush1.msra.mxu1 %v8099_v40  ;;  %3760 = vmatprep.subr.mxu0 %v8318_v8 }
 0xc5e   :  { %3573 = vmatprep.subr.mxu1 %v8105_v21  ;;  %3761 = vmatpush1.msra.mxu0 %v8330_v48 }
 0xc5f   :  { %3574 = vmatpush1.msra.mxu1 %v8111_v53  ;;  %3762 = vmatprep.subr.mxu0 %v8337_v5 }
 0xc60   :  { %3575 = vmatprep.subr.mxu1 %v8117_v31  ;;  %3763 = vmatpush1.msra.mxu0 %v8349_v46 }
 0xc61   :  { %3576 = vmatpush1.msra.mxu1 %v8123_v13  ;;  %3764 = vmatprep.subr.mxu0 %v8356_v43 }
 0xc62   :  { %3577 = vmatprep.subr.mxu1 %v8129_v11  ;;  %3765 = vmatpush1.msra.mxu0 %v8366_v37 }
 0xc63   :  { %3578 = vmatpush1.msra.mxu1 %v8135_v16  ;;  %3766 = vmatprep.subr.mxu0 %v8373_v25 }
 0xc64   :  { %3579 = vmatprep.subr.mxu1 %v8141_v15  ;;  %3767 = vmatpush1.msra.mxu0 %v8383_v33 }
 0xc65   :  { %3580 = vmatpush1.msra.mxu1 %v8147_v28  ;;  %3768 = vmatprep.subr.mxu0 %v8390_v57 }
 0xc66   :  { %3581 = vmatprep.subr.mxu1 %v8153_v59  ;;  %3769 = vmatpush1.msra.mxu0 %v8402_v34 }
 0xc67   :  { %3582 = vmatpush1.msra.mxu1 %v9871_v56  ;;  %3770 = vmatprep.subr.mxu0 %v9872_v47 }
 0xc68   :  { %3583 = vmatprep.subr.mxu1 %v9873_v52  ;;  %3771 = vmatpush1.msra.mxu0 %v9874_v61 }
 0xc69   :  { %3584 = vmatpush1.msra.mxu1 %v9875_v50  ;;  %3772 = vmatprep.subr.mxu0 %v9876_v36 }
 0xc6a   :  { %3585 = vmatprep.subr.mxu1 %v9877_v22  ;;  %3773 = vmatpush1.msra.mxu0 %v9878_v54  ;;  %v9928_v54 = vld [vmem:[#allocation22_spill] sm:$0xff] }
 0xc6b   :  { %3586 = vmatpush1.msra.mxu1 %v9879_v19  ;;  %3774 = vmatprep.subr.mxu0 %v9880_v26 }
 0xc6c   :  { %3587 = vmatprep.subr.mxu1 %v9881_v27  ;;  %3775 = vmatpush1.msra.mxu0 %v9882_v63  ;;  %v9908_v63 = vld [vmem:[#allocation65_spill] sm:$0xff] }
 0xc6d   :  { %3588 = vmatpush1.msra.mxu1 %v9883_v60  ;;  %3776 = vmatprep.subr.mxu0 %v9884_v32  ;;  %v9893_v60 = vld [vmem:[#allocation54_spill] sm:$0xff]  ;;  %v9894_v32 = vld [vmem:[#allocation60_spill] sm:$0xff] }
 0xc6e   :  { %3589 = vmatprep.subr.mxu1 %v9885_v12  ;;  %3777 = vmatpush1.msra.mxu0 %v9886_v2  ;;  %v9895_v12 = vld [vmem:[#allocation64_spill] sm:$0xff]  ;;  %v9896_v2 = vld [vmem:[#allocation31_spill] sm:$0xff] }
 0xc6f   :  { %3590 = vmatpush1.msra.mxu1 %v9887_v42  ;;  %3778 = vmatprep.subr.mxu0 %v9888_v17  ;;  %v9897_v17 = vld [vmem:[#allocation37_spill] sm:$0xff]  ;;  %v9906_v42 = vld [vmem:[#allocation40_spill] sm:$0xff] }
 0xc70   :  { %3591 = vmatprep.subr.mxu1 %v9889_v39  ;;  %3779 = vmatpush1.msra.mxu0 %v9890_v41  ;;  %v9898_v41 = vld [vmem:[#allocation56_spill] sm:$0xff]  ;;  %v9901_v39 = vld [vmem:[#allocation29_spill] sm:$0xff] }
 0xc71   :  { %3592 = vmatpush1.msra.mxu1 %v9891_v38  ;;  %3780 = vmatprep.subr.mxu0 %v9892_v20  ;;  %v9899_v38 = vld [vmem:[#allocation17_spill] sm:$0xff]  ;;  %v9900_v20 = vld [vmem:[#allocation62_spill] sm:$0xff] }
 0xc72   :  { %3626 = vmatmul.mubr.f32.vlgmr.msra.gmra.mxu1 %v8539_v45  ;;  %3821 = vmatprep.subr.mxu1 %v9893_v60  ;;  %v9902_v60 = vld [vmem:[#allocation35_spill] sm:$0xff] }
 0xc73   :  { %3822 = vmatpush1.msra.mxu1 %v9894_v32  ;;  %3781 = vmatpush1.msra.mxu0 %v9895_v12  ;;  %v9903_v32 = vld [vmem:[#allocation13_spill] sm:$0xff]  ;;  %v9904_v12 = vld [vmem:[#allocation63_spill] sm:$0xff] }
 0xc74   :  { %3823 = vmatprep.subr.mxu1 %v9896_v2  ;;  %3814 = vmatprep.mubr.f32.mxu0 %v9603_v24  ;;  %v9905_v2 = vld [vmem:[#allocation14_spill] sm:$0xff] }
 0xc75   :  { %3824 = vmatpush1.msra.mxu1 %v9897_v17  ;;  %3885 = vmatprep.mubr.f32.mxu1 %v9603_v24  ;;  %v9907_v17 = vld [vmem:[#allocation15_spill] sm:$0xff] }
 0xc76   :  { %3825 = vmatprep.subr.mxu1 %v9898_v41  ;;  %3892 = vmatprep.subr.mxu0 %v9899_v38  ;;  %v9909_v41 = vld [vmem:[#allocation18_spill] sm:$0xff] }
 0xc77   :  { %3826 = vmatpush1.msra.mxu1 %v9900_v20  ;;  %v9910_v38 = vld [vmem:[#allocation38_spill] sm:$0xff]  ;;  %v9911_v20 = vld [vmem:[#allocation19_spill] sm:$0xff] }
 0xc78   :  { %3827 = vmatprep.subr.mxu1 %v9901_v39  ;;  %v9912_v39 = vld [vmem:[#allocation66_spill] sm:$0xff] }
 0xc79   :  { %3828 = vmatpush1.msra.mxu1 %v9902_v60  ;;  %v9913_v60 = vld [vmem:[#allocation16_spill] sm:$0xff] }
 0xc7a   :  { %3829 = vmatprep.subr.mxu1 %v9903_v32  ;;  %v9914_v32 = vld [vmem:[#allocation68_spill] sm:$0xff] }
 0xc7b   :  { %3830 = vmatpush1.msra.mxu1 %v9904_v12  ;;  %v9915_v12 = vld [vmem:[#allocation20_spill] sm:$0xff] }
 0xc7c   :  { %3831 = vmatprep.subr.mxu1 %v9905_v2  ;;  %v9916_v2 = vld [vmem:[#allocation71_spill] sm:$0xff] }
 0xc7d   :  { %3832 = vmatpush1.msra.mxu1 %v9906_v42  ;;  %v9917_v42 = vld [vmem:[#allocation26_spill] sm:$0xff] }
 0xc7e   :  { %3833 = vmatprep.subr.mxu1 %v9907_v17  ;;  %v9918_v17 = vld [vmem:[#allocation47_spill] sm:$0xff] }
 0xc7f   :  { %3834 = vmatpush1.msra.mxu1 %v9908_v63  ;;  %v9919_v63 = vld [vmem:[#allocation25_spill] sm:$0xff] }
 0xc80   :  { %3835 = vmatprep.subr.mxu1 %v9909_v41  ;;  %v9920_v41 = vld [vmem:[#allocation50_spill] sm:$0xff] }
 0xc81   :  { %3836 = vmatpush1.msra.mxu1 %v9910_v38  ;;  %v9921_v38 = vld [vmem:[#allocation27_spill] sm:$0xff] }
 0xc82   :  { %3837 = vmatprep.subr.mxu1 %v9911_v20  ;;  %v9922_v20 = vld [vmem:[#allocation53_spill] sm:$0xff] }
 0xc83   :  { %3838 = vmatpush1.msra.mxu1 %v9912_v39  ;;  %v9923_v39 = vld [vmem:[#allocation28_spill] sm:$0xff] }
 0xc84   :  { %3839 = vmatprep.subr.mxu1 %v9913_v60  ;;  %v9924_v60 = vld [vmem:[#allocation61_spill] sm:$0xff] }
 0xc85   :  { %3840 = vmatpush1.msra.mxu1 %v9914_v32  ;;  %v9925_v32 = vld [vmem:[#allocation30_spill] sm:$0xff] }
 0xc86   :  { %3841 = vmatprep.subr.mxu1 %v9915_v12  ;;  %v9926_v12 = vld [vmem:[#allocation67_spill] sm:$0xff] }
 0xc87   :  { %3842 = vmatpush1.msra.mxu1 %v9916_v2  ;;  %v9927_v2 = vld [vmem:[#allocation32_spill] sm:$0xff] }
 0xc88   :  { %3843 = vmatprep.subr.mxu1 %v9917_v42 }
 0xc89   :  { %3844 = vmatpush1.msra.mxu1 %v9918_v17 }
 0xc8a   :  { %3845 = vmatprep.subr.mxu1 %v9919_v63 }
 0xc8b   :  { %3846 = vmatpush1.msra.mxu1 %v9920_v41 }
 0xc8c   :  { %3847 = vmatprep.subr.mxu1 %v9921_v38 }
 0xc8d   :  { %3848 = vmatpush1.msra.mxu1 %v9922_v20 }
 0xc8e   :  { %3849 = vmatprep.subr.mxu1 %v9923_v39 }
 0xc8f   :  { %3850 = vmatpush1.msra.mxu1 %v9924_v60 }
 0xc90   :  { %3851 = vmatprep.subr.mxu1 %v9925_v32 }
 0xc91   :  { %3852 = vmatpush1.msra.mxu1 %v9926_v12 }
 0xc92   :  { %4081 = vmatprep.subr.mxu1 %v9927_v2 }
 0xd12   :  { %v3485_v42 = vpop.f32.mrf.mxu1  ;;  %v3556_v17 = vpop.f32.mrf.mxu0 }
 0xd13   :  { %v3486_v63 = vadd.f32 %v3485_v42, %v7826_v44 }
 0xd14   :  { %v3558_v27 = vpop.f32.mrf.mxu0  ;;  %v3487_v19 = vpop.f32.mrf.mxu1 }
 0xd15   :  { %v3559_v41 = vadd.f32 %v3558_v27, %v9829_v23  ;;  %v3488_v32 = vadd.f32 %v3487_v19, %v9928_v54 }
 0xd17   :  { %v3632_v38 = vadd.f32 %v3559_v41, %v3486_v63  ;;  %v3557_v41 = vadd.f32 %v3556_v17, %v9777_v35  ;;  %v9957_v17 = vld [vmem:[#allocation68_spill] sm:$0xff] }
 0xd19   :  { %v4836_v26 = vmul.f32 -1.442695, %v3632_v38 }
 0xd1b   :  { %5546 = vpow2.f32 %v4836_v26 }
 0xd28   :  { %v5547_v20 = vpop.eup %5546 }
 0xd29   :  { %v3636_v39 = vadd.f32 1.0, %v5547_v20 }
 0xd2b   :  { %5548 = vrcp.f32 %v3636_v39 }
 0xd32   :  { %v3627_v60 = vpop.f32.mrf.mxu1 }
 0xd33   :  { %v3628_v12 = vadd.f32 %v3627_v60, %v9776_v7 }
 0xd34   :  { %v3629_v36 = vpop.f32.mrf.mxu1 }
 0xd35   :  { %v3639_v2 = vadd.f32 %v3628_v12, %v3488_v32  ;;  %v3630_v42 = vadd.f32 %v3629_v36, %v7713_v62  ;;  %v8656_v36 = vld [vmem:[%s9344_s5 + $0x2f0] sm:$0xff]  ;;  %v8826_v32 = vld [vmem:[%s9344_s5 + $0xd8] sm:$0xff] }
 0xd37   :  { %v4837_v22 = vmul.f32 -1.442695, %v3639_v2  ;;  %v9958_v2 = vld [vmem:[#allocation71_spill] sm:$0xff] }
 0xd38   :  { %v5549_v50 = vpop.eup %5548 }
 0xd39   :  { %5550 = vpow2.f32 %v4837_v22  ;;  %v3646_v27 = vmul.f32 %v5549_v50, %v3630_v42  ;;  %v8664_v50 = vld [vmem:[%s9344_s5 + $0x2c0] sm:$0xff]  ;;  %v8833_v42 = vld [vmem:[%s9344_s5 + $0xa8] sm:$0xff] }
 0xd3a   :  { %v8681_v22 = vld [vmem:[%s9344_s5 + $0x260] sm:$0xff] }
 0xd3b   :  { %v3647_v20 = vadd.f32 %v3646_v27, %v3557_v41  ;;  %v9959_v27 = vld [vmem:[#allocation47_spill] sm:$0xff]  ;;  %v8840_v41 = vld [vmem:[%s9344_s5 + $0x78] sm:$0xff] }
 0xd46   :  { %v5551_v26 = vpop.eup %5550 }
 0xd47   :  { %v3643_v63 = vadd.f32 1.0, %v5551_v26  ;;  %v9960_v26 = vld [vmem:[#allocation50_spill] sm:$0xff] }
 0xd49   :  { %5552 = vrcp.f32 %v3643_v63  ;;  %v8847_v63 = vld [vmem:[%s9344_s5 + $0x48] sm:$0xff] }
 0xd4a   :  { %5554 = vtanh.f32 %v3647_v20  ;;  %v9961_v20 = vld [vmem:[#allocation53_spill] sm:$0xff] }
 0xd56   :  { %v5553_v38 = vpop.eup %5552 }
 0xd57   :  { %v3649_v19 = vsub.f32 1.0, %v5553_v38  ;;  %v5555_v39 = vpop.eup %5554  ;;  %v3651_v60 = vmul.f32 %v5553_v38, %v8539_v45  ;;  %v8672_v45 = vld [vmem:[%s9344_s5 + $0x290] sm:$0xff]  ;;  %v8854_v38 = vld [vmem:[%s9344_s5 + $0x18] sm:$0xff] }
 0xd59   :  { %v3650_v54 = vmul.f32 %v5555_v39, %v3649_v19  ;;  %v9962_v19 = vld [vmem:[#allocation61_spill] sm:$0xff]  ;;  %v9963_v39 = vld [vmem:[#allocation67_spill] sm:$0xff] }
 0xd5b   :  { %v8651_v12 = vadd.f32 %v3651_v60, %v3650_v54  ;;  %v8819_v54 = vld [vmem:[%s9344_s5 + $0x108] sm:$0xff] }
 0xd5d   :  { %3653 = vst [vmem:[#allocation2 + $0x3] sm:$0x1] %v8651_v12  ;;  %3815 = vmatmul.mubr.f32.vlgmr.msra.gmra.mxu0 %v8651_v12  ;;  %3886 = vmatmul.mubr.f32.vlgmr.msra.gmra.mxu1 %v8651_v12 }
 0xd5e   :  { %3893 = vmatpush1.msra.mxu0 %v8656_v36  ;;  %3956 = vmatprep.mubr.f32.mxu0 %v9603_v24 }
 0xd5f   :  { %3894 = vmatprep.subr.mxu0 %v8056_v3  ;;  %4082 = vmatpush1.msra.mxu1 %v8236_v6  ;;  %v9936_v3 = vld [vmem:[#allocation48_spill] sm:$0xff]  ;;  %v9952_v6 = vld [vmem:[#allocation63_spill] sm:$0xff] }
 0xd60   :  { %3895 = vmatpush1.msra.mxu0 %v8664_v50  ;;  %4083 = vmatprep.subr.mxu1 %v8242_v0  ;;  %v8780_v0 = vld [vmem:[%s9344_s5 + $0x1f8] sm:$0xff] }
 0xd61   :  { %3896 = vmatprep.subr.mxu0 %v8065_v49  ;;  %4084 = vmatpush1.msra.mxu1 %v8254_v55  ;;  %v9937_v49 = vld [vmem:[#allocation73_spill] sm:$0xff]  ;;  %v8787_v55 = vld [vmem:[%s9344_s5 + $0x1c8] sm:$0xff] }
 0xd62   :  { %3897 = vmatpush1.msra.mxu0 %v8672_v45  ;;  %4085 = vmatprep.subr.mxu1 %v8261_v58  ;;  %v8793_v58 = vld [vmem:[%s9344_s5 + $0x198] sm:$0xff] }
 0xd63   :  { %3898 = vmatprep.subr.mxu0 %v8074_v30  ;;  %4086 = vmatpush1.msra.mxu1 %v8273_v18  ;;  %v9938_v30 = vld [vmem:[#allocation49_spill] sm:$0xff]  ;;  %v8799_v18 = vld [vmem:[%s9344_s5 + $0x168] sm:$0xff] }
 0xd64   :  { %3899 = vmatpush1.msra.mxu0 %v8681_v22  ;;  %4087 = vmatprep.subr.mxu1 %v8280_v9  ;;  %v9930_v9 = vld [vmem:[#allocation69_spill] sm:$0xff] }
 0xd65   :  { %3900 = vmatprep.subr.mxu0 %v8081_v14  ;;  %4088 = vmatpush1.msra.mxu1 %v8292_v10  ;;  %v9939_v14 = vld [vmem:[#allocation23_spill] sm:$0xff]  ;;  %v9954_v10 = vld [vmem:[#allocation65_spill] sm:$0xff] }
 0xd66   :  { %3901 = vmatpush1.msra.mxu0 %v8087_v29  ;;  %4089 = vmatprep.subr.mxu1 %v8299_v1  ;;  %v9931_v1 = vld [vmem:[#allocation42_spill] sm:$0xff]  ;;  %v9940_v29 = vld [vmem:[#allocation51_spill] sm:$0xff] }
 0xd67   :  { %3902 = vmatprep.subr.mxu0 %v8093_v51  ;;  %4090 = vmatpush1.msra.mxu1 %v8311_v4  ;;  %v9941_v51 = vld [vmem:[#allocation57_spill] sm:$0xff]  ;;  %v9953_v4 = vld [vmem:[#allocation40_spill] sm:$0xff] }
 0xd68   :  { %3903 = vmatpush1.msra.mxu0 %v8099_v40  ;;  %4091 = vmatprep.subr.mxu1 %v8318_v8  ;;  %v9932_v8 = vld [vmem:[#allocation45_spill] sm:$0xff]  ;;  %v9942_v40 = vld [vmem:[#allocation52_spill] sm:$0xff] }
 0xd69   :  { %3904 = vmatprep.subr.mxu0 %v8105_v21  ;;  %4092 = vmatpush1.msra.mxu1 %v8330_v48  ;;  %v9929_v48 = vld [vmem:[#allocation39_spill] sm:$0xff]  ;;  %v9943_v21 = vld [vmem:[#allocation34_spill] sm:$0xff] }
 0xd6a   :  { %3905 = vmatpush1.msra.mxu0 %v8111_v53  ;;  %4093 = vmatprep.subr.mxu1 %v8337_v5  ;;  %v9933_v5 = vld [vmem:[#allocation44_spill] sm:$0xff]  ;;  %v9944_v53 = vld [vmem:[#allocation55_spill] sm:$0xff] }
 0xd6b   :  { %3906 = vmatprep.subr.mxu0 %v8117_v31  ;;  %4094 = vmatpush1.msra.mxu1 %v8349_v46  ;;  %v9945_v31 = vld [vmem:[#allocation59_spill] sm:$0xff] }
 0xd6c   :  { %3907 = vmatpush1.msra.mxu0 %v8123_v13  ;;  %4095 = vmatprep.subr.mxu1 %v8356_v43  ;;  %v9934_v43 = vld [vmem:[#allocation46_spill] sm:$0xff] }
 0xd6d   :  { %3908 = vmatprep.subr.mxu0 %v8129_v11  ;;  %4096 = vmatpush1.msra.mxu1 %v8366_v37  ;;  %v9946_v13 = vld [vmem:[#allocation58_spill] sm:$0xff]  ;;  %v9947_v11 = vld [vmem:[#allocation64_spill] sm:$0xff]  ;;  %v9951_v37 = vld [vmem:[#allocation35_spill] sm:$0xff] }
 0xd6e   :  { %3909 = vmatpush1.msra.mxu0 %v8135_v16  ;;  %4097 = vmatprep.subr.mxu1 %v8373_v25  ;;  %v9935_v25 = vld [vmem:[#allocation24_spill] sm:$0xff]  ;;  %v8745_v16 = vld [vmem:[%s9344_s5 + $0x2e8] sm:$0xff] }
 0xd6f   :  { %3910 = vmatprep.subr.mxu0 %v8141_v15  ;;  %4098 = vmatpush1.msra.mxu1 %v8383_v33  ;;  %v9948_v15 = vld [vmem:[#allocation60_spill] sm:$0xff]  ;;  %v9950_v33 = vld [vmem:[#allocation62_spill] sm:$0xff] }
 0xd70   :  { %3911 = vmatpush1.msra.mxu0 %v8147_v28  ;;  %4099 = vmatprep.subr.mxu1 %v8390_v57  ;;  %v8752_v28 = vld [vmem:[%s9344_s5 + $0x2b8] sm:$0xff]  ;;  %v8773_v46 = vld [vmem:[%s9344_s5 + $0x228] sm:$0xff] }
 0xd71   :  { %3912 = vmatprep.subr.mxu0 %v8153_v59  ;;  %4100 = vmatpush1.msra.mxu1 %v8402_v34  ;;  %v9949_v59 = vld [vmem:[#allocation37_spill] sm:$0xff]  ;;  %v8759_v34 = vld [vmem:[%s9344_s5 + $0x288] sm:$0xff] }
 0xd72   :  { %3913 = vmatpush1.msra.mxu0 %v9871_v56  ;;  %4101 = vmatprep.subr.mxu1 %v9872_v47  ;;  %v8766_v57 = vld [vmem:[%s9344_s5 + $0x258] sm:$0xff]  ;;  %v9955_v56 = vld [vmem:[#allocation38_spill] sm:$0xff] }
 0xd73   :  { %3914 = vmatprep.subr.mxu0 %v9873_v52  ;;  %4102 = vmatpush1.msra.mxu1 %v9874_v61  ;;  %v8806_v47 = vld [vmem:[%s9344_s5 + $0x138] sm:$0xff]  ;;  %v9956_v61 = vld [vmem:[#allocation66_spill] sm:$0xff] }
 0xd74   :  { %3915 = vmatpush1.msra.mxu0 %v9929_v48  ;;  %4103 = vmatprep.subr.mxu1 %v9930_v9  ;;  %v8811_v52 = vld [vmem:[%s9344_s5 + $0x2f8] sm:$0xff] }
 0xd75   :  { %3916 = vmatprep.subr.mxu0 %v9931_v1  ;;  %4104 = vmatpush1.msra.mxu1 %v9932_v8 }
 0xd76   :  { %3917 = vmatpush1.msra.mxu0 %v9933_v5  ;;  %4105 = vmatprep.subr.mxu1 %v9934_v43 }
 0xd77   :  { %3918 = vmatprep.subr.mxu0 %v9935_v25  ;;  %4106 = vmatpush1.msra.mxu1 %v9936_v3 }
 0xd78   :  { %3919 = vmatpush1.msra.mxu0 %v9937_v49  ;;  %4107 = vmatprep.subr.mxu1 %v9938_v30 }
 0xd79   :  { %3920 = vmatprep.subr.mxu0 %v9939_v14  ;;  %4108 = vmatpush1.msra.mxu1 %v9940_v29  ;;  %v9964_v14 = vld [vmem:[#allocation22_spill] sm:$0xff] }
 0xd7a   :  { %3921 = vmatpush1.msra.mxu0 %v9941_v51  ;;  %4109 = vmatprep.subr.mxu1 %v9942_v40 }
 0xd7b   :  { %3922 = vmatprep.subr.mxu0 %v9943_v21  ;;  %4110 = vmatpush1.msra.mxu1 %v9944_v53 }
 0xd7c   :  { %3923 = vmatpush1.msra.mxu0 %v9945_v31  ;;  %4111 = vmatprep.subr.mxu1 %v9946_v13 }
 0xd7d   :  { %3957 = vmatmul.mubr.f32.vlgmr.msra.gmra.mxu0 %v8651_v12  ;;  %4112 = vmatpush1.msra.mxu1 %v9947_v11 }
 0xd7e   :  { %4145 = vmatprep.mubr.f32.mxu1 %v9603_v24  ;;  %4216 = vmatprep.mubr.f32.mxu0 %v9603_v24 }
 0xd7f   :  { %4152 = vmatprep.subr.mxu0 %v8745_v16  ;;  %4223 = vmatprep.subr.mxu1 %v8811_v52 }
 0xd80   :  { %4153 = vmatpush1.msra.mxu0 %v9948_v15 }
 0xd81   :  { %4154 = vmatprep.subr.mxu0 %v8752_v28 }
 0xd82   :  { %4155 = vmatpush1.msra.mxu0 %v9949_v59 }
 0xd83   :  { %4156 = vmatprep.subr.mxu0 %v8759_v34 }
 0xd84   :  { %4157 = vmatpush1.msra.mxu0 %v9950_v33 }
 0xd85   :  { %4158 = vmatprep.subr.mxu0 %v8766_v57 }
 0xd86   :  { %4159 = vmatpush1.msra.mxu0 %v9951_v37 }
 0xd87   :  { %4160 = vmatprep.subr.mxu0 %v8773_v46 }
 0xd88   :  { %4161 = vmatpush1.msra.mxu0 %v9952_v6 }
 0xd89   :  { %4162 = vmatprep.subr.mxu0 %v8780_v0 }
 0xd8a   :  { %4163 = vmatpush1.msra.mxu0 %v9953_v4 }
 0xd8b   :  { %4164 = vmatprep.subr.mxu0 %v8787_v55 }
 0xd8c   :  { %4165 = vmatpush1.msra.mxu0 %v9954_v10 }
 0xd8d   :  { %4166 = vmatprep.subr.mxu0 %v8793_v58 }
 0xd8e   :  { %4167 = vmatpush1.msra.mxu0 %v9955_v56 }
 0xd8f   :  { %4168 = vmatprep.subr.mxu0 %v8799_v18 }
 0xd90   :  { %4169 = vmatpush1.msra.mxu0 %v9956_v61 }
 0xd91   :  { %4170 = vmatprep.subr.mxu0 %v8806_v47 }
 0xd92   :  { %4171 = vmatpush1.msra.mxu0 %v9957_v17 }
 0xd93   :  { %4172 = vmatprep.subr.mxu0 %v8819_v54 }
 0xd94   :  { %4173 = vmatpush1.msra.mxu0 %v9958_v2  ;;  %v8872_v2 = vld [vmem:[%s9344_s5 + $0x2c8] sm:$0xff] }
 0xd95   :  { %4174 = vmatprep.subr.mxu0 %v8826_v32 }
 0xd96   :  { %4175 = vmatpush1.msra.mxu0 %v9959_v27  ;;  %v8881_v27 = vld [vmem:[%s9344_s5 + $0x298] sm:$0xff] }
 0xd97   :  { %4176 = vmatprep.subr.mxu0 %v8833_v42 }
 0xd98   :  { %4177 = vmatpush1.msra.mxu0 %v9960_v26  ;;  %v8897_v26 = vld [vmem:[%s9344_s5 + $0x238] sm:$0xff] }
 0xd99   :  { %4178 = vmatprep.subr.mxu0 %v8840_v41 }
 0xd9a   :  { %4179 = vmatpush1.msra.mxu0 %v9961_v20  ;;  %v8903_v20 = vld [vmem:[%s9344_s5 + $0x230] sm:$0xff] }
 0xd9b   :  { %4180 = vmatprep.subr.mxu0 %v8847_v63 }
 0xd9c   :  { %4181 = vmatpush1.msra.mxu0 %v9962_v19  ;;  %v8909_v19 = vld [vmem:[%s9344_s5 + $0x208] sm:$0xff] }
 0xd9d   :  { %4182 = vmatprep.subr.mxu0 %v8854_v38 }
 0xd9e   :  { %4183 = vmatpush1.msra.mxu0 %v9963_v39  ;;  %v8915_v39 = vld [vmem:[%s9344_s5 + $0x200] sm:$0xff] }
 0xe1d   :  { %v3816_v60 = vpop.f32.mrf.mxu0  ;;  %v3887_v48 = vpop.f32.mrf.mxu1 }
 0xe1e   :  { %v3817_v1 = vadd.f32 %v3816_v60, %v7826_v44  ;;  %v3888_v15 = vadd.f32 %v3887_v48, %v9777_v35  ;;  %v8921_v60 = vld [vmem:[%s9344_s5 + $0x1d8] sm:$0xff]  ;;  %v8927_v48 = vld [vmem:[%s9344_s5 + $0x1d0] sm:$0xff] }
 0xe1f   :  { %v3889_v9 = vpop.f32.mrf.mxu1  ;;  %v3818_v49 = vpop.f32.mrf.mxu0 }
 0xe20   :  { %v3890_v8 = vadd.f32 %v3889_v9, %v9829_v23  ;;  %v3819_v29 = vadd.f32 %v3818_v49, %v9964_v14  ;;  %v8933_v9 = vld [vmem:[%s9344_s5 + $0x1a8] sm:$0xff]  ;;  %v8975_v49 = vld [vmem:[%s9344_s5 + $0x110] sm:$0xff] }
 0xe22   :  { %v3963_v5 = vadd.f32 %v3890_v8, %v3817_v1  ;;  %v8939_v1 = vld [vmem:[%s9344_s5 + $0x1a0] sm:$0xff]  ;;  %v8945_v8 = vld [vmem:[%s9344_s5 + $0x178] sm:$0xff] }
 0xe24   :  { %v4838_v43 = vmul.f32 -1.442695, %v3963_v5  ;;  %v8951_v5 = vld [vmem:[%s9344_s5 + $0x170] sm:$0xff] }
 0xe26   :  { %5556 = vpow2.f32 %v4838_v43  ;;  %v8957_v43 = vld [vmem:[%s9344_s5 + $0x148] sm:$0xff] }
 0xe33   :  { %v5557_v25 = vpop.eup %5556 }
 0xe34   :  { %v3967_v3 = vadd.f32 1.0, %v5557_v25  ;;  %v8963_v25 = vld [vmem:[%s9344_s5 + $0x140] sm:$0xff] }
 0xe36   :  { %5558 = vrcp.f32 %v3967_v3  ;;  %v8969_v3 = vld [vmem:[%s9344_s5 + $0x118] sm:$0xff] }
 0xe3d   :  { %v3958_v30 = vpop.f32.mrf.mxu0 }
 0xe3e   :  { %v3959_v51 = vadd.f32 %v3958_v30, %v9776_v7  ;;  %v8981_v30 = vld [vmem:[%s9344_s5 + $0xe8] sm:$0xff] }
 0xe3f   :  { %v3960_v53 = vpop.f32.mrf.mxu0 }
 0xe40   :  { %v3970_v40 = vadd.f32 %v3959_v51, %v3819_v29  ;;  %v3961_v13 = vadd.f32 %v3960_v53, %v7713_v62  ;;  %v8987_v29 = vld [vmem:[%s9344_s5 + $0xe0] sm:$0xff]  ;;  %v8993_v51 = vld [vmem:[%s9344_s5 + $0xb8] sm:$0xff] }
 0xe41   :  { %v9011_v53 = vld [vmem:[%s9344_s5 + $0x80] sm:$0xff] }
 0xe42   :  { %v4839_v21 = vmul.f32 -1.442695, %v3970_v40  ;;  %v8999_v40 = vld [vmem:[%s9344_s5 + $0xb0] sm:$0xff] }
 0xe43   :  { %v5559_v31 = vpop.eup %5558 }
 0xe44   :  { %5560 = vpow2.f32 %v4839_v21  ;;  %v3977_v11 = vmul.f32 %v5559_v31, %v3961_v13  ;;  %v9005_v21 = vld [vmem:[%s9344_s5 + $0x88] sm:$0xff]  ;;  %v9017_v31 = vld [vmem:[%s9344_s5 + $0x58] sm:$0xff]  ;;  %v9023_v13 = vld [vmem:[%s9344_s5 + $0x50] sm:$0xff] }
 0xe46   :  { %v3978_v37 = vadd.f32 %v3977_v11, %v3888_v15  ;;  %v9029_v11 = vld [vmem:[%s9344_s5 + $0x28] sm:$0xff]  ;;  %v9035_v15 = vld [vmem:[%s9344_s5 + $0x20] sm:$0xff] }
 0xe51   :  { %v5561_v59 = vpop.eup %5560 }
 0xe52   :  { %v3974_v33 = vadd.f32 1.0, %v5561_v59  ;;  %v4407_v59 = vld [vmem:[%s9344_s5 + $0x2d8] sm:$0xff] }
 0xe53   :  { %4412 = vmatprep.subr.mxu0 %v4407_v59  ;;  %v4388_v59 = vld [vmem:[%s9344_s5 + $0x240] sm:$0xff] }
 0xe54   :  { %5562 = vrcp.f32 %v3974_v33  ;;  %v4406_v33 = vld [vmem:[%s9344_s5 + $0x2d0] sm:$0xff] }
 0xe55   :  { %5564 = vtanh.f32 %v3978_v37  ;;  %v4401_v37 = vld [vmem:[%s9344_s5 + $0x2a8] sm:$0xff] }
 0xe61   :  { %v5563_v6 = vpop.eup %5562 }
 0xe62   :  { %v3980_v4 = vsub.f32 1.0, %v5563_v6  ;;  %v5565_v10 = vpop.eup %5564  ;;  %v3982_v61 = vmul.f32 %v5563_v6, %v8651_v12  ;;  %v8890_v12 = vld [vmem:[%s9344_s5 + $0x268] sm:$0xff]  ;;  %v4400_v6 = vld [vmem:[%s9344_s5 + $0x2a0] sm:$0xff] }
 0xe64   :  { %v3981_v56 = vmul.f32 %v5565_v10, %v3980_v4  ;;  %v4395_v4 = vld [vmem:[%s9344_s5 + $0x278] sm:$0xff]  ;;  %v4402_v10 = vld [vmem:[%s9344_s5 + $0x2b0] sm:$0xff] }
 0xe66   :  { %v8867_v17 = vadd.f32 %v3982_v61, %v3981_v56  ;;  %v4394_v56 = vld [vmem:[%s9344_s5 + $0x270] sm:$0xff]  ;;  %v4396_v61 = vld [vmem:[%s9344_s5 + $0x280] sm:$0xff] }
 0xe68   :  { %3984 = vst [vmem:[#allocation2 + $0x2] sm:$0x1] %v8867_v17  ;;  %4146 = vmatmul.mubr.f32.vlgmr.msra.gmra.mxu1 %v8867_v17  ;;  %4217 = vmatmul.mubr.f32.vlgmr.msra.gmra.mxu0 %v8867_v17 }
 0xe69   :  { %4224 = vmatpush1.msra.mxu1 %v8656_v36  ;;  %4287 = vmatprep.mubr.f32.mxu1 %v9603_v24 }
 0xe6a   :  { %4225 = vmatprep.subr.mxu1 %v8872_v2  ;;  %4476 = vmatprep.mubr.f32.mxu0 %v9603_v24 }
 0xe6b   :  { %4226 = vmatpush1.msra.mxu1 %v8664_v50  ;;  %4413 = vmatpush1.msra.mxu0 %v4406_v33  ;;  %v4390_v33 = vld [vmem:[%s9344_s5 + $0x250] sm:$0xff] }
 0xe6c   :  { %4227 = vmatprep.subr.mxu1 %v8881_v27  ;;  %4414 = vmatprep.subr.mxu0 %v4401_v37  ;;  %v4382_v37 = vld [vmem:[%s9344_s5 + $0x210] sm:$0xff] }
 0xe6d   :  { %4228 = vmatpush1.msra.mxu1 %v8672_v45  ;;  %4415 = vmatpush1.msra.mxu0 %v4400_v6  ;;  %v4376_v6 = vld [vmem:[%s9344_s5 + $0x1e0] sm:$0xff] }
 0xe6e   :  { %4229 = vmatprep.subr.mxu1 %v8890_v12  ;;  %4416 = vmatprep.subr.mxu0 %v4395_v4  ;;  %v4378_v4 = vld [vmem:[%s9344_s5 + $0x1f0] sm:$0xff] }
 0xe6f   :  { %4230 = vmatpush1.msra.mxu1 %v8681_v22  ;;  %4417 = vmatpush1.msra.mxu0 %v4394_v56  ;;  %v4372_v56 = vld [vmem:[%s9344_s5 + $0x1c0] sm:$0xff] }
 0xe70   :  { %4231 = vmatprep.subr.mxu1 %v8897_v26 }
 0xe71   :  { %4232 = vmatpush1.msra.mxu1 %v8903_v20 }
 0xe72   :  { %4233 = vmatprep.subr.mxu1 %v8909_v19 }
 0xe73   :  { %4234 = vmatpush1.msra.mxu1 %v8915_v39 }
 0xe74   :  { %4235 = vmatprep.subr.mxu1 %v8921_v60 }
 0xe75   :  { %4236 = vmatpush1.msra.mxu1 %v8927_v48 }
 0xe76   :  { %4237 = vmatprep.subr.mxu1 %v8933_v9 }
 0xe77   :  { %4238 = vmatpush1.msra.mxu1 %v8939_v1 }
 0xe78   :  { %4239 = vmatprep.subr.mxu1 %v8945_v8 }
 0xe79   :  { %4240 = vmatpush1.msra.mxu1 %v8951_v5 }
 0xe7a   :  { %4241 = vmatprep.subr.mxu1 %v8957_v43 }
 0xe7b   :  { %4242 = vmatpush1.msra.mxu1 %v8963_v25 }
 0xe7c   :  { %4243 = vmatprep.subr.mxu1 %v8969_v3 }
 0xe7d   :  { %4244 = vmatpush1.msra.mxu1 %v8975_v49 }
 0xe7e   :  { %4245 = vmatprep.subr.mxu1 %v8981_v30 }
 0xe7f   :  { %4246 = vmatpush1.msra.mxu1 %v8987_v29 }
 0xe80   :  { %4247 = vmatprep.subr.mxu1 %v8993_v51 }
 0xe81   :  { %4248 = vmatpush1.msra.mxu1 %v8999_v40 }
 0xe82   :  { %4249 = vmatprep.subr.mxu1 %v9005_v21 }
 0xe83   :  { %4250 = vmatpush1.msra.mxu1 %v9011_v53 }
 0xe84   :  { %4251 = vmatprep.subr.mxu1 %v9017_v31 }
 0xe85   :  { %4252 = vmatpush1.msra.mxu1 %v9023_v13 }
 0xe86   :  { %4253 = vmatprep.subr.mxu1 %v9029_v11 }
 0xe87   :  { %4254 = vmatpush1.msra.mxu1 %v9035_v15 }
 0xe88   :  { %4288 = vmatmul.mubr.f32.vlgmr.msra.gmra.mxu1 %v8867_v17  ;;  %4483 = vmatprep.subr.mxu1 %v8745_v16  ;;  %v4408_v16 = vld [vmem:[%s9344_s5 + $0x2e0] sm:$0xff] }
 0xe89   :  { %4547 = vmatprep.mubr.f32.mxu1 %v9603_v24  ;;  %4484 = vmatpush1.msra.mxu1 %v4408_v16  ;;  %v4384_v16 = vld [vmem:[%s9344_s5 + $0x220] sm:$0xff] }
 0xe8a   :  { %4485 = vmatprep.subr.mxu1 %v8752_v28  ;;  %v4389_v28 = vld [vmem:[%s9344_s5 + $0x248] sm:$0xff] }
 0xe8b   :  { %4486 = vmatpush1.msra.mxu1 %v4402_v10  ;;  %4418 = vmatprep.subr.mxu0 %v4389_v28  ;;  %v4370_v10 = vld [vmem:[%s9344_s5 + $0x1b0] sm:$0xff]  ;;  %v4364_v28 = vld [vmem:[%s9344_s5 + $0x180] sm:$0xff] }
 0xe8c   :  { %4487 = vmatprep.subr.mxu1 %v8759_v34  ;;  %4419 = vmatpush1.msra.mxu0 %v4388_v59  ;;  %v4383_v34 = vld [vmem:[%s9344_s5 + $0x218] sm:$0xff]  ;;  %v4358_v59 = vld [vmem:[%s9344_s5 + $0x150] sm:$0xff] }
 0xe8d   :  { %4488 = vmatpush1.msra.mxu1 %v4396_v61  ;;  %4420 = vmatprep.subr.mxu0 %v4383_v34  ;;  %v4359_v61 = vld [vmem:[%s9344_s5 + $0x158] sm:$0xff]  ;;  %v4353_v34 = vld [vmem:[%s9344_s5 + $0x128] sm:$0xff] }
 0xe8e   :  { %4489 = vmatprep.subr.mxu1 %v8766_v57  ;;  %4421 = vmatpush1.msra.mxu0 %v4382_v37  ;;  %v4377_v57 = vld [vmem:[%s9344_s5 + $0x1e8] sm:$0xff]  ;;  %v4352_v37 = vld [vmem:[%s9344_s5 + $0x120] sm:$0xff] }
 0xe8f   :  { %4490 = vmatpush1.msra.mxu1 %v4390_v33  ;;  %4422 = vmatprep.subr.mxu0 %v4377_v57  ;;  %v4360_v33 = vld [vmem:[%s9344_s5 + $0x160] sm:$0xff]  ;;  %v4354_v57 = vld [vmem:[%s9344_s5 + $0x130] sm:$0xff] }
 0xe90   :  { %4491 = vmatprep.subr.mxu1 %v8773_v46  ;;  %4423 = vmatpush1.msra.mxu0 %v4376_v6  ;;  %v4371_v46 = vld [vmem:[%s9344_s5 + $0x1b8] sm:$0xff]  ;;  %v4348_v6 = vld [vmem:[%s9344_s5 + $0x100] sm:$0xff] }
 0xe91   :  { %4492 = vmatpush1.msra.mxu1 %v4384_v16  ;;  %4424 = vmatprep.subr.mxu0 %v4371_v46  ;;  %v4346_v16 = vld [vmem:[%s9344_s5 + $0xf0] sm:$0xff]  ;;  %v4340_v46 = vld [vmem:[%s9344_s5 + $0xc0] sm:$0xff] }
 0xe92   :  { %4493 = vmatprep.subr.mxu1 %v8780_v0  ;;  %4425 = vmatpush1.msra.mxu0 %v4370_v10  ;;  %v4365_v0 = vld [vmem:[%s9344_s5 + $0x188] sm:$0xff]  ;;  %v4334_v10 = vld [vmem:[%s9344_s5 + $0x90] sm:$0xff] }
 0xe93   :  { %4494 = vmatpush1.msra.mxu1 %v4378_v4  ;;  %4426 = vmatprep.subr.mxu0 %v4365_v0  ;;  %v4342_v4 = vld [vmem:[%s9344_s5 + $0xd0] sm:$0xff]  ;;  %v4336_v0 = vld [vmem:[%s9344_s5 + $0xa0] sm:$0xff] }
 0xe94   :  { %4495 = vmatprep.subr.mxu1 %v8787_v55  ;;  %v4366_v55 = vld [vmem:[%s9344_s5 + $0x190] sm:$0xff]  ;;  %4427 = vmatpush1.msra.mxu0 %v4364_v28 }
 0xe95   :  { %4496 = vmatpush1.msra.mxu1 %v4372_v56  ;;  %4428 = vmatprep.subr.mxu0 %v4359_v61  ;;  %v4328_v56 = vld [vmem:[%s9344_s5 + $0x60] sm:$0xff]  ;;  %v4330_v28 = vld [vmem:[%s9344_s5 + $0x70] sm:$0xff] }
 0xe96   :  { %4497 = vmatprep.subr.mxu1 %v8793_v58  ;;  %4429 = vmatpush1.msra.mxu0 %v4358_v59  ;;  %v4347_v58 = vld [vmem:[%s9344_s5 + $0xf8] sm:$0xff]  ;;  %v4322_v61 = vld [vmem:[%s9344_s5 + $0x30] sm:$0xff]  ;;  %v4316_v59 = vld [vmem:[%s9344_s5] sm:$0xff] }
 0xe97   :  { %4498 = vmatpush1.msra.mxu1 %v4366_v55  ;;  %4430 = vmatprep.subr.mxu0 %v4353_v34  ;;  %v4324_v55 = vld [vmem:[%s9344_s5 + $0x40] sm:$0xff] }
 0xe98   :  { %4499 = vmatprep.subr.mxu1 %v8799_v18  ;;  %4431 = vmatpush1.msra.mxu0 %v4352_v37  ;;  %v4341_v18 = vld [vmem:[%s9344_s5 + $0xc8] sm:$0xff] }
 0xe99   :  { %4500 = vmatpush1.msra.mxu1 %v4360_v33  ;;  %4432 = vmatprep.subr.mxu0 %v4347_v58 }
 0xe9a   :  { %4501 = vmatprep.subr.mxu1 %v8806_v47  ;;  %4433 = vmatpush1.msra.mxu0 %v4346_v16  ;;  %v4335_v47 = vld [vmem:[%s9344_s5 + $0x98] sm:$0xff] }
 0xe9b   :  { %4502 = vmatpush1.msra.mxu1 %v4354_v57  ;;  %4434 = vmatprep.subr.mxu0 %v4341_v18 }
 0xe9c   :  { %4503 = vmatprep.subr.mxu1 %v8819_v54  ;;  %4435 = vmatpush1.msra.mxu0 %v4340_v46  ;;  %v4329_v54 = vld [vmem:[%s9344_s5 + $0x68] sm:$0xff] }
 0xe9d   :  { %4504 = vmatpush1.msra.mxu1 %v4348_v6  ;;  %4436 = vmatprep.subr.mxu0 %v4335_v47 }
 0xe9e   :  { %4505 = vmatprep.subr.mxu1 %v8826_v32  ;;  %4437 = vmatpush1.msra.mxu0 %v4334_v10  ;;  %v4323_v32 = vld [vmem:[%s9344_s5 + $0x38] sm:$0xff] }
 0xe9f   :  { %4506 = vmatpush1.msra.mxu1 %v4342_v4  ;;  %4438 = vmatprep.subr.mxu0 %v4329_v54 }
 0xea0   :  { %4507 = vmatprep.subr.mxu1 %v8833_v42  ;;  %4439 = vmatpush1.msra.mxu0 %v4328_v56  ;;  %v4317_v42 = vld [vmem:[%s9344_s5 + $0x8] sm:$0xff] }
 0xea1   :  { %4508 = vmatpush1.msra.mxu1 %v4336_v0  ;;  %4440 = vmatprep.subr.mxu0 %v4323_v32 }
 0xea2   :  { %4509 = vmatprep.subr.mxu1 %v8840_v41  ;;  %4441 = vmatpush1.msra.mxu0 %v4322_v61  ;;  %v4318_v41 = vld [vmem:[%s9344_s5 + $0x10] sm:$0xff] }
 0xea3   :  { %4510 = vmatpush1.msra.mxu1 %v4330_v28  ;;  %4442 = vmatprep.subr.mxu0 %v4317_v42 }
 0xea4   :  { %4511 = vmatprep.subr.mxu1 %v8847_v63  ;;  %4443 = vmatpush1.msra.mxu0 %v4316_v59 }
 0xea5   :  { %4512 = vmatpush1.msra.mxu1 %v4324_v55  ;;  %4554 = vmatprep.subr.mxu0 %v8811_v52 }
 0xea6   :  { %4513 = vmatprep.subr.mxu1 %v8854_v38 }
 0xea7   :  { %4514 = vmatpush1.msra.mxu1 %v4318_v41 }
 0xea8   :  { %5382 = vmatprep.subr.mxu1 %v9603_v24 }
 0xf28   :  { %v4147_v34 = vpop.f32.mrf.mxu1  ;;  %v4218_v33 = vpop.f32.mrf.mxu0 }
 0xf29   :  { %v4148_v58 = vadd.f32 %v4147_v34, %v7826_v44  ;;  %v4219_v28 = vadd.f32 %v4218_v33, %v9777_v35 }
 0xf2a   :  { %v4220_v37 = vpop.f32.mrf.mxu0  ;;  %v4149_v46 = vpop.f32.mrf.mxu1 }
 0xf2b   :  { %v4221_v63 = vadd.f32 %v4220_v37, %v9829_v23  ;;  %v4150_v38 = vadd.f32 %v4149_v46, %v9964_v14 }
 0xf2d   :  { %v4294_v57 = vadd.f32 %v4221_v63, %v4148_v58 }
 0xf2f   :  { %v4840_v16 = vmul.f32 -1.442695, %v4294_v57 }
 0xf31   :  { %5566 = vpow2.f32 %v4840_v16 }
 0xf3e   :  { %v5567_v18 = vpop.eup %5566 }
 0xf3f   :  { %v4298_v6 = vadd.f32 1.0, %v5567_v18 }
 0xf41   :  { %5568 = vrcp.f32 %v4298_v6 }
 0xf48   :  { %v4289_v47 = vpop.f32.mrf.mxu1 }
 0xf49   :  { %v4290_v52 = vadd.f32 %v4289_v47, %v9776_v7 }
 0xf4a   :  { %v4291_v54 = vpop.f32.mrf.mxu1 }
 0xf4b   :  { %v4301_v4 = vadd.f32 %v4290_v52, %v4150_v38  ;;  %v4292_v56 = vadd.f32 %v4291_v54, %v7713_v62  ;;  %v5587_v54 = vld [vmem:[%s9339_s0] sm:$0xff] }
 0xf4d   :  { %v4841_v10 = vmul.f32 -1.442695, %v4301_v4 }
 0xf4e   :  { %v5569_v0 = vpop.eup %5568 }
 0xf4f   :  { %5570 = vpow2.f32 %v4841_v10  ;;  %v4308_v32 = vmul.f32 %v5569_v0, %v4292_v56 }
 0xf51   :  { %v4309_v55 = vadd.f32 %v4308_v32, %v4219_v28 }
 0xf5c   :  { %v5571_v61 = vpop.eup %5570 }
 0xf5d   :  { %v4305_v42 = vadd.f32 1.0, %v5571_v61 }
 0xf5f   :  { %5572 = vrcp.f32 %v4305_v42 }
 0xf60   :  { %5574 = vtanh.f32 %v4309_v55 }
 0xf6c   :  { %v5573_v59 = vpop.eup %5572 }
 0xf6d   :  { %v4311_v41 = vsub.f32 1.0, %v5573_v59  ;;  %v5575_v34 = vpop.eup %5574  ;;  %v4313_v58 = vmul.f32 %v5573_v59, %v8867_v17  ;;  %v4659_v17 = vld [vmem:[%s9347_s8 + $0x58] sm:$0xff] }
 0xf6f   :  { %v4312_v37 = vmul.f32 %v5575_v34, %v4311_v41 }
 0xf71   :  { %v9211_v63 = vadd.f32 %v4313_v58, %v4312_v37 }
 0xf73   :  { %4315 = vst [vmem:[#allocation2 + $0x1] sm:$0x1] %v9211_v63  ;;  %4477 = vmatmul.mubr.f32.vlgmr.msra.gmra.mxu0 %v9211_v63  ;;  %4548 = vmatmul.mubr.f32.vlgmr.msra.gmra.mxu1 %v9211_v63 }
 0xf74   :  { %4555 = vmatpush1.msra.mxu0 %v8656_v36  ;;  %4618 = vmatprep.mubr.f32.mxu0 %v9603_v24  ;;  %v4663_v36 = vld [vmem:[%s9347_s8 + $0x78] sm:$0xff] }
 0xf75   :  { %4556 = vmatprep.subr.mxu0 %v8872_v2  ;;  %5414 = vmatprep.mubr.msk.f32.mxu1 %vm5675_vm0, %v9603_v24  ;;  %v4658_v2 = vld [vmem:[%s9347_s8 + $0x50] sm:$0xff] }
 0xf76   :  { %4557 = vmatpush1.msra.mxu0 %v8664_v50  ;;  %5383 = vmatpush3.msra.mxu1 %v4663_v36  ;;  %v4662_v50 = vld [vmem:[%s9347_s8 + $0x70] sm:$0xff] }
 0xf77   :  { %4558 = vmatprep.subr.mxu0 %v8881_v27  ;;  %5384 = vmatprep.subr.mxu1 %v9603_v24  ;;  %v4657_v27 = vld [vmem:[%s9347_s8 + $0x48] sm:$0xff] }
 0xf78   :  { %4559 = vmatpush1.msra.mxu0 %v8672_v45  ;;  %5385 = vmatpush3.msra.mxu1 %v4662_v50  ;;  %v4661_v45 = vld [vmem:[%s9347_s8 + $0x68] sm:$0xff] }
 0xf79   :  { %4560 = vmatprep.subr.mxu0 %v8890_v12  ;;  %5386 = vmatprep.subr.mxu1 %v9603_v24  ;;  %v4656_v12 = vld [vmem:[%s9347_s8 + $0x40] sm:$0xff] }
 0xf7a   :  { %4561 = vmatpush1.msra.mxu0 %v8681_v22  ;;  %5387 = vmatpush3.msra.mxu1 %v4661_v45  ;;  %v4660_v22 = vld [vmem:[%s9347_s8 + $0x60] sm:$0xff] }
 0xf7b   :  { %4562 = vmatprep.subr.mxu0 %v8897_v26  ;;  %5388 = vmatprep.subr.mxu1 %v9603_v24  ;;  %v4655_v26 = vld [vmem:[%s9347_s8 + $0x38] sm:$0xff] }
 0xf7c   :  { %4563 = vmatpush1.msra.mxu0 %v8903_v20  ;;  %5389 = vmatpush3.msra.mxu1 %v4660_v22  ;;  %v4654_v20 = vld [vmem:[%s9347_s8 + $0x30] sm:$0xff] }
 0xf7d   :  { %4564 = vmatprep.subr.mxu0 %v8909_v19  ;;  %5390 = vmatprep.subr.mxu1 %v9603_v24  ;;  %v4653_v19 = vld [vmem:[%s9347_s8 + $0x28] sm:$0xff] }
 0xf7e   :  { %4565 = vmatpush1.msra.mxu0 %v8915_v39  ;;  %5391 = vmatpush3.msra.mxu1 %v4659_v17  ;;  %v4652_v39 = vld [vmem:[%s9347_s8 + $0x20] sm:$0xff] }
 0xf7f   :  { %4566 = vmatprep.subr.mxu0 %v8921_v60  ;;  %5392 = vmatprep.subr.mxu1 %v9603_v24  ;;  %v4651_v60 = vld [vmem:[%s9347_s8 + $0x18] sm:$0xff] }
 0xf80   :  { %4567 = vmatpush1.msra.mxu0 %v8927_v48  ;;  %5393 = vmatpush3.msra.mxu1 %v4658_v2  ;;  %v4650_v48 = vld [vmem:[%s9347_s8 + $0x10] sm:$0xff] }
 0xf81   :  { %4568 = vmatprep.subr.mxu0 %v8933_v9  ;;  %5394 = vmatprep.subr.mxu1 %v9603_v24  ;;  %v4649_v9 = vld [vmem:[%s9347_s8 + $0x8] sm:$0xff] }
 0xf82   :  { %4569 = vmatpush1.msra.mxu0 %v8939_v1  ;;  %5395 = vmatpush3.msra.mxu1 %v4657_v27  ;;  %v4648_v1 = vld [vmem:[%s9347_s8] sm:$0xff] }
 0xf83   :  { %4570 = vmatprep.subr.mxu0 %v8945_v8  ;;  %5396 = vmatprep.subr.mxu1 %v9603_v24 }
 0xf84   :  { %4571 = vmatpush1.msra.mxu0 %v8951_v5  ;;  %5397 = vmatpush3.msra.mxu1 %v4656_v12 }
 0xf85   :  { %4572 = vmatprep.subr.mxu0 %v8957_v43  ;;  %5398 = vmatprep.subr.mxu1 %v9603_v24 }
 0xf86   :  { %4573 = vmatpush1.msra.mxu0 %v8963_v25  ;;  %5399 = vmatpush3.msra.mxu1 %v4655_v26 }
 0xf87   :  { %4574 = vmatprep.subr.mxu0 %v8969_v3  ;;  %5400 = vmatprep.subr.mxu1 %v9603_v24 }
 0xf88   :  { %4575 = vmatpush1.msra.mxu0 %v8975_v49  ;;  %5401 = vmatpush3.msra.mxu1 %v4654_v20 }
 0xf89   :  { %4576 = vmatprep.subr.mxu0 %v8981_v30  ;;  %5402 = vmatprep.subr.mxu1 %v9603_v24 }
 0xf8a   :  { %4577 = vmatpush1.msra.mxu0 %v8987_v29  ;;  %5403 = vmatpush3.msra.mxu1 %v4653_v19 }
 0xf8b   :  { %4578 = vmatprep.subr.mxu0 %v8993_v51  ;;  %5404 = vmatprep.subr.mxu1 %v9603_v24 }
 0xf8c   :  { %4579 = vmatpush1.msra.mxu0 %v8999_v40  ;;  %5405 = vmatpush3.msra.mxu1 %v4652_v39 }
 0xf8d   :  { %4580 = vmatprep.subr.mxu0 %v9005_v21  ;;  %5406 = vmatprep.subr.mxu1 %v9603_v24 }
 0xf8e   :  { %4581 = vmatpush1.msra.mxu0 %v9011_v53  ;;  %5407 = vmatpush3.msra.mxu1 %v4651_v60 }
 0xf8f   :  { %4582 = vmatprep.subr.mxu0 %v9017_v31  ;;  %5408 = vmatprep.subr.mxu1 %v9603_v24 }
 0xf90   :  { %4583 = vmatpush1.msra.mxu0 %v9023_v13  ;;  %5409 = vmatpush3.msra.mxu1 %v4650_v48 }
 0xf91   :  { %4584 = vmatprep.subr.mxu0 %v9029_v11  ;;  %5410 = vmatprep.subr.mxu1 %v9603_v24 }
 0xf92   :  { %4585 = vmatpush1.msra.mxu0 %v9035_v15  ;;  %5411 = vmatpush3.msra.mxu1 %v4649_v9 }
 0xf93   :  { %4619 = vmatmul.mubr.f32.vlgmr.msra.gmra.mxu0 %v9211_v63  ;;  %5412 = vmatprep.subr.mxu1 %v9603_v24 }
 0xf94   :  { %5413 = vmatpush3.msra.mxu1 %v4648_v1 }
0x1033   :  { %v4478_v8 = vpop.f32.mrf.mxu0  ;;  %v4549_v5 = vpop.f32.mrf.mxu1 }
0x1034   :  { %v4479_v25 = vadd.f32 %v4478_v8, %v7826_v44  ;;  %v4550_v33 = vadd.f32 %v4549_v5, %v9777_v35 }
0x1035   :  { %v4551_v43 = vpop.f32.mrf.mxu1  ;;  %v4480_v40 = vpop.f32.mrf.mxu0 }
0x1036   :  { %v4552_v3 = vadd.f32 %v4551_v43, %v9829_v23  ;;  %v4481_v53 = vadd.f32 %v4480_v40, %v9964_v14 }
0x1038   :  { %v4625_v49 = vadd.f32 %v4552_v3, %v4479_v25 }
0x103a   :  { %v4842_v30 = vmul.f32 -1.442695, %v4625_v49 }
0x103c   :  { %5576 = vpow2.f32 %v4842_v30 }
0x1049   :  { %v5577_v29 = vpop.eup %5576 }
0x104a   :  { %v4629_v51 = vadd.f32 1.0, %v5577_v29 }
0x104c   :  { %5578 = vrcp.f32 %v4629_v51 }
0x1053   :  { %v4620_v21 = vpop.f32.mrf.mxu0 }
0x1054   :  { %v4621_v24 = vadd.f32 %v4620_v21, %v9776_v7 }
0x1055   :  { %v4622_v11 = vpop.f32.mrf.mxu0 }
0x1056   :  { %v4632_v31 = vadd.f32 %v4621_v24, %v4481_v53  ;;  %v4623_v44 = vadd.f32 %v4622_v11, %v7713_v62  ;;  %v4844_v62 = vld [vmem:[%s9348_s9] ss:$0 sm:$0xff] }
0x1058   :  { %v4843_v13 = vmul.f32 -1.442695, %v4632_v31 }
0x1059   :  { %v5579_v15 = vpop.eup %5578 }
0x105a   :  { %5580 = vpow2.f32 %v4843_v13  ;;  %v4639_v23 = vmul.f32 %v5579_v15, %v4623_v44 }
0x105c   :  { %v4640_v18 = vadd.f32 %v4639_v23, %v4550_v33 }
0x1067   :  { %v5581_v57 = vpop.eup %5580 }
0x1068   :  { %v4636_v16 = vadd.f32 1.0, %v5581_v57 }
0x106a   :  { %5582 = vrcp.f32 %v4636_v16 }
0x106b   :  { %5584 = vtanh.f32 %v4640_v18 }
0x1077   :  { %v5583_v6 = vpop.eup %5582 }
0x1078   :  { %v4642_v14 = vsub.f32 1.0, %v5583_v6  ;;  %v5585_v46 = vpop.eup %5584  ;;  %v4644_v7 = vmul.f32 %v5583_v6, %v9211_v63 }
0x107a   :  { %v4643_v47 = vmul.f32 %v5585_v46, %v4642_v14 }
0x107c   :  { %v4645_v38 = vadd.f32 %v4644_v7, %v4643_v47 }
0x107e   :  { %4646 = vst [vmem:[#allocation2] sm:$0x1] %v4645_v38 }
0x1085   :  { %v4647_v52 = vld [vmem:[#allocation2] sm:$0xff] }
0x1086   :  { %5415 = vmatmul.mubr.f32.vlgmr.msra.gmra.mxu1 %v4647_v52 }
0x1146   :  { %v4737_v35 = vpop.f32.mrf.mxu1 }
0x1147   :  { %v4738_v4 = vadd.f32 %v4844_v62, %v4737_v35 }
0x1148   :  { %v5416_v10 = vpop.f32.mrf.mxu1 }
0x1149   :  { %4741 = vst [vmem:[#allocation5] sm:$0xff] %v4738_v4  ;;  %v4742_v0 = vsub.f32 %v5587_v54, %v4738_v4 }
0x114b   :  { %v4743_v56 = vmul.f32 %v4742_v0, %v4742_v0 }
0x114d   :  { %4744 = vadd.xlane.f32.xlu0 %v4743_v56 }
0x114e   :  { %5599 = shalt.err (!%p5596_p4)
}
0x114f   :  { %4776 = dma.vmem_to_hbm [thread:$0]  %s4774_s18, 128, %s9350_s11, [#allocation6]  }
0x1150   :  { %s5608_s0 = scalar_lea.vmem %s4764_s20, 128  ;;  %p5613_p6 = scmp.lt.s32.totalorder %s4764_s20, %s4764_s20 }
0x1151   :  { %p5609_p5 = scmp.ne.s32.totalorder %s4764_s20, %s5608_s0  ;;  %p5614_p7 = scmp.lt.s32.totalorder %s5608_s0, %s5608_s0 }
0x1153   :  { %p5615_p8 = por %p5614_p7, %p5613_p6 }
0x1155   :  { %p5616_p9 = pnand %p5615_p8, %p5609_p5 }
0x1157   :  { %5619 = shalt.err (!%p5616_p9)
}
0x1158   :  { %4766 = dma.vmem_to_hbm [thread:$0]  %s4764_s20, 128, %s9349_s10, [#allocation4]  }
0x1159   :  { %s5679_s25 = smov [#allocation7]  }
0x115a   :  { %s4783_s26 = sshll.u32 %s5679_s25, 4  ;;  %s4784_s26 = int_to_ptr.vmem [resolvable:$true] %s4783_s26 }
0x115b   :  { %s5628_s27 = scalar_lea.vmem %s4784_s26, 16  ;;  %s5632_s28 = scalar_lea.vmem %s4784_s26, 32 }
0x115c   :  { %p5629_p10 = scmp.ne.s32.totalorder %s4784_s26, %s5628_s27  ;;  %p5633_p11 = scmp.lt.s32.totalorder %s4784_s26, %s4784_s26 }
0x115d   :  { %p5634_p12 = scmp.lt.s32.totalorder %s5632_s28, %s5628_s27 }
0x115f   :  { %p5635_p13 = por %p5634_p12, %p5633_p11 }
0x1161   :  { %p5636_p0 = pnand %p5635_p13, %p5629_p10 }
0x1163   :  { %5639 = shalt.err (!%p5636_p0)
}
0x1164   :  { %4786 = dma.vmem_to_hbm [thread:$0]  %s4784_s26, 16, %s9351_s12, [#allocation6]   ;;  %vm4755_vm1 = vcmask 0  }
0x1165   :  { %s5680_s10 = smov [#allocation8]  }
0x1166   :  { %s4793_s5 = sshll.u32 %s5680_s10, 4  ;;  %s4794_s5 = int_to_ptr.vmem [resolvable:$true] %s4793_s5 }
0x1167   :  { %s5648_s1 = scalar_lea.vmem %s4794_s5, 16  ;;  %s5652_s30 = scalar_lea.vmem %s4794_s5, 32 }
0x1168   :  { %p5649_p1 = scmp.ne.s32.totalorder %s4794_s5, %s5648_s1  ;;  %p5653_p2 = scmp.lt.s32.totalorder %s4794_s5, %s4794_s5 }
0x1169   :  { %p5654_p3 = scmp.lt.s32.totalorder %s5652_s30, %s5648_s1 }
0x116b   :  { %p5655_p4 = por %p5654_p3, %p5653_p2 }
0x116d   :  { %p5656_p5 = pnand %p5655_p4, %p5649_p1 }
0x11d6   :  { %v4745_v32 = vpop.xlane.xlu0 %4744 }
0x11d7   :  { %v4746_v28 = vrot.slane %v4745_v32, 4 }
0x11d9   :  { %v4747_v61 = vadd.f32 %v4746_v28, %v4745_v32 }
0x11db   :  { %v4748_v42 = vrot.slane %v4747_v61, 2 }
0x11dd   :  { %v4749_v55 = vadd.f32 %v4748_v42, %v4747_v61 }
0x11df   :  { %v4750_v59 = vrot.slane %v4749_v55, 1 }
0x11e1   :  { %v4751_v41 = vadd.f32 %v4750_v59, %v4749_v55 }
0x11e3   :  { %5417 = vpush %v4751_v41 }
0x1214   :  { %s5418_s3 = spop %5417 }
0x1215   :  { %v4753_v34 = vstv %s5418_s3 }
0x1216   :  { %v4754_v37 = vmul.f32 0.0018115942, %v4753_v34 }
0x1218   :  { %4756 = vst.msk [vmem:[#allocation8] sm:$0x1] %vm4755_vm1, %v4754_v37 }
0x1219   :  { %5659 = shalt.err (!%p5656_p5)
}
0x121a   :  { %4796 = dma.vmem_to_hbm [thread:$0]  %s4794_s5, 16, %s9352_s13, [#allocation9]  }
0x121b   :  { %5668 = dma.done.wait [#allocation4], 128  }
0x121c   :  { %5669 = vsyncadd [#allocation4], 4294967168 }
0x121d   :  { %5670 = dma.done.wait [#allocation6], 144  }
0x121e   :  { %5671 = vsyncadd [#allocation6], 4294967152 }
0x121f   :  { %5672 = dma.done.wait [#allocation9], 16  }
0x1220   :  { %5673 = vsyncadd [#allocation9], 4294967280 }
0x1221   :  { %4809 = vsyncpa [#allocation4], 1 }
0x1222   :  { %4810 = vsyncpa [#allocation6], 1 }
0x1223   :  { %4811 = vsyncpa [#allocation9], 1 }

</bundles_post_ra>
